<compile_context>
chip_gen: v5e
topology: v5e:2x2
jax: 0.10.0
libtpu: 0.0.40
codegen_flags: <defaults>
</compile_context>

<pallas_src>
import functools
import math

import jax
import jax.numpy as jnp
from jax.experimental import pallas as pl
from jax.experimental.pallas import tpu as pltpu


# ---------------------------------------------------------------------------
# Kernel 1: fused q / latent / k / v projections
# ---------------------------------------------------------------------------
def proj_kernel(x_ref, wql_ref, bql_ref, wkv_ref, bkv_ref,
                q_ref, k_ref, v_ref, *, hidden_size, kv_size):
    x = x_ref[...]                                                    # (ts, H) bf16
    # [q | latent] = x @ [Wq^T | Wl^T] + [bq | bl]      (bf16 operands, f32 acc)
    ql = jnp.dot(x, wql_ref[...], preferred_element_type=jnp.float32) + bql_ref[...]
    q = ql[:, :hidden_size]
    latent = ql[:, hidden_size:].astype(jnp.bfloat16)
    # [k | v] = latent @ [Wk^T | Wv^T] + [bk | bv]
    kv = jnp.dot(latent, wkv_ref[...], preferred_element_type=jnp.float32) + bkv_ref[...]
    q_ref[...] = q.astype(q_ref.dtype)
    k_ref[...] = kv[:, :kv_size].astype(k_ref.dtype)
    v_ref[...] = kv[:, kv_size:].astype(v_ref.dtype)


# ---------------------------------------------------------------------------
# Kernel 2: flash-style GQA attention fused with the output projection
# grid = (batch, q_tile, head, kv_tile); out accumulated across (head, kv)
# ---------------------------------------------------------------------------
def attn_kernel(q_ref, k_ref, v_ref, wo_ref, bo_ref, out_ref,
                m_ref, l_ref, acc_ref, *, scale):
    h = pl.program_id(2)
    kv = pl.program_id(3)
    nkv = pl.num_programs(3)

    @pl.when((h == 0) & (kv == 0))
    def _init_out():
        # Output block is resident across the (head, kv) axes; seed it with bo.
        out_ref[...] = jnp.broadcast_to(bo_ref[...], out_ref.shape).astype(out_ref.dtype)

    @pl.when(kv == 0)
    def _init_state():
        m_ref[...] = jnp.full(m_ref.shape, -jnp.inf, dtype=m_ref.dtype)
        l_ref[...] = jnp.zeros(l_ref.shape, dtype=l_ref.dtype)
        acc_ref[...] = jnp.zeros(acc_ref.shape, dtype=acc_ref.dtype)

    q = q_ref[...]                                                    # (tq, hd)  bf16
    k = k_ref[...]                                                    # (tkv, hd) bf16
    v = v_ref[...]                                                    # (tkv, hd) bf16

    # scores = q @ k^T without materializing a transpose (contract on last dims)
    s = jax.lax.dot_general(
        q, k, (((1,), (1,)), ((), ())),
        preferred_element_type=jnp.float32) * scale                   # (tq, tkv) f32

    m_prev = m_ref[...]
    m_new = jnp.maximum(m_prev, jnp.max(s, axis=-1, keepdims=True))
    alpha = jnp.exp(m_prev - m_new)
    p = jnp.exp(s - m_new)
    l_ref[...] = alpha * l_ref[...] + jnp.sum(p, axis=-1, keepdims=True)
    acc_ref[...] = alpha * acc_ref[...] + jnp.dot(
        p.astype(v.dtype), v, preferred_element_type=jnp.float32)
    m_ref[...] = m_new

    @pl.when(kv == nkv - 1)
    def _finalize_head():
        ctx = acc_ref[...] * pl.reciprocal(l_ref[...], approx=True)   # (tq, hd) f32
        out_ref[...] += jnp.dot(
            ctx.astype(wo_ref.dtype), wo_ref[...],
            preferred_element_type=jnp.float32).astype(out_ref.dtype)


# ---------------------------------------------------------------------------
# Wrapper
# ---------------------------------------------------------------------------
def gqla_forward(x, params, *, num_heads, num_kv_groups, head_dim,
                 s_tile=None, q_tile=None, kv_tile=None):
    """x: (B, S, H) float32. params: PyTorch-style Linear weights/biases."""
    B, S, H = x.shape
    assert H == num_heads * head_dim
    assert num_heads % num_kv_groups == 0
    assert head_dim % 128 == 0, "kernel assumes lane-aligned head_dim (multiple of 128)"
    hpg = num_heads // num_kv_groups
    kv_size = num_kv_groups * head_dim
    latent_size = params["wl"].shape[0]
    scale = 1.0 / math.sqrt(head_dim)

    def pick(t):
        t = min(S, 256) if t is None else t
        assert S % t == 0 and t % 8 == 0
        return t
    s_tile, q_tile, kv_tile = pick(s_tile), pick(q_tile), pick(kv_tile)

    f32, bf16 = jnp.float32, jnp.bfloat16
    # Host-side weight packing: pre-transpose, fuse [Wq|Wl] and [Wk|Wv], cast bf16.
    w_ql = jnp.concatenate([params["wq"].T, params["wl"].T], axis=1).astype(bf16)  # (H, H+L)
    b_ql = jnp.concatenate([params["bq"], params["bl"]]).reshape(1, -1).astype(f32)
    w_kv = jnp.concatenate([params["wk"].T, params["wv"].T], axis=1).astype(bf16)  # (L, 2*KV)
    b_kv = jnp.concatenate([params["bk"], params["bv"]]).reshape(1, -1).astype(f32)
    w_o = params["wo"].T.astype(bf16)                                              # (H, H)
    b_o = params["bo"].reshape(1, -1).astype(f32)
    x_bf = x.astype(bf16)

    # ---- kernel 1: projections ----
    q, k, v = pl.pallas_call(
        functools.partial(proj_kernel, hidden_size=H, kv_size=kv_size),
        out_shape=(
            jax.ShapeDtypeStruct((B, S, H), bf16),
            jax.ShapeDtypeStruct((B, S, kv_size), bf16),
            jax.ShapeDtypeStruct((B, S, kv_size), bf16),
        ),
        grid=(B, S // s_tile),
        in_specs=[
            pl.BlockSpec((None, s_tile, H), lambda b, si: (b, si, 0)),
            pl.BlockSpec((H, H + latent_size), lambda b, si: (0, 0)),
            pl.BlockSpec((1, H + latent_size), lambda b, si: (0, 0)),
            pl.BlockSpec((latent_size, 2 * kv_size), lambda b, si: (0, 0)),
            pl.BlockSpec((1, 2 * kv_size), lambda b, si: (0, 0)),
        ],
        out_specs=(
            pl.BlockSpec((None, s_tile, H), lambda b, si: (b, si, 0)),
            pl.BlockSpec((None, s_tile, kv_size), lambda b, si: (b, si, 0)),
            pl.BlockSpec((None, s_tile, kv_size), lambda b, si: (b, si, 0)),
        ),
        compiler_params=pltpu.CompilerParams(
            dimension_semantics=("parallel", "parallel")),
    )(x_bf, w_ql, b_ql, w_kv, b_kv)

    # ---- kernel 2: attention + output projection ----
    out = pl.pallas_call(
        functools.partial(attn_kernel, scale=scale),
        out_shape=jax.ShapeDtypeStruct((B, S, H), f32),
        grid=(B, S // q_tile, num_heads, S // kv_tile),
        in_specs=[
            # per-head q tile (BlockSpec does the head slicing via DMA)
            pl.BlockSpec((None, q_tile, head_dim),
                         lambda b, qi, h, kv: (b, qi, h)),
            # k/v tile of the head's kv group
            pl.BlockSpec((None, kv_tile, head_dim),
                         lambda b, qi, h, kv, _hpg=hpg: (b, kv, h // _hpg)),
            pl.BlockSpec((None, kv_tile, head_dim),
                         lambda b, qi, h, kv, _hpg=hpg: (b, kv, h // _hpg)),
            # Wo rows for this head; bias
            pl.BlockSpec((head_dim, H), lambda b, qi, h, kv: (h, 0)),
            pl.BlockSpec((1, H), lambda b, qi, h, kv: (0, 0)),
        ],
        out_specs=pl.BlockSpec((None, q_tile, H), lambda b, qi, h, kv: (b, qi, 0)),
        scratch_shapes=[
            pltpu.VMEM((q_tile, 1), jnp.float32),         # running max
            pltpu.VMEM((q_tile, 1), jnp.float32),         # running denom
            pltpu.VMEM((q_tile, head_dim), jnp.float32),  # running context
        ],
        compiler_params=pltpu.CompilerParams(
            dimension_semantics=("parallel", "parallel", "arbitrary", "arbitrary")),
    )(q, k, v, w_o, b_o)
    return out


# ---------------------------------------------------------------------------
# Plain-JAX reference (mirrors the PyTorch forward, eval mode, no cache/mask)
# ---------------------------------------------------------------------------
def gqla_reference(x, params, *, num_heads, num_kv_groups, head_dim):
    B, S, H = x.shape
    hpg = num_heads // num_kv_groups
    q = x @ params["wq"].T + params["bq"]
    latent = x @ params["wl"].T + params["bl"]
    k = latent @ params["wk"].T + params["bk"]
    v = latent @ params["wv"].T + params["bv"]
    q = q.reshape(B, S, num_heads, head_dim).transpose(0, 2, 1, 3)
    k = k.reshape(B, S, num_kv_groups, head_dim).transpose(0, 2, 1, 3)
    v = v.reshape(B, S, num_kv_groups, head_dim).transpose(0, 2, 1, 3)
    k = jnp.repeat(k, hpg, axis=1)
    v = jnp.repeat(v, hpg, axis=1)
    scores = jnp.einsum("bhqd,bhkd->bhqk", q, k) / math.sqrt(head_dim)
    probs = jax.nn.softmax(scores, axis=-1)
    ctx = jnp.einsum("bhqk,bhkd->bhqd", probs, v)
    ctx = ctx.transpose(0, 2, 1, 3).reshape(B, S, H)
    return ctx @ params["wo"].T + params["bo"]


if __name__ == "__main__":
    # Small but lane-aligned config: hidden=512, heads=4, kv_groups=2,
    # head_dim=128, latent=128, kv_size=256 (kernel requires head_dim % 128 == 0).
    B, S = 2, 256
    NUM_HEADS, NUM_KV_GROUPS = 4, 2
    HEAD_DIM = 128
    H = NUM_HEADS * HEAD_DIM                       # 512
    LATENT = 128
    KV_SIZE = H * NUM_KV_GROUPS // NUM_HEADS       # 256

    key = jax.random.PRNGKey(0)
    ks = jax.random.split(key, 11)
    sc = 0.05
    params = {
        "wq": jax.random.normal(ks[0], (H, H), jnp.float32) * sc,
        "bq": jax.random.normal(ks[1], (H,), jnp.float32) * sc,
        "wl": jax.random.normal(ks[2], (LATENT, H), jnp.float32) * sc,
        "bl": jax.random.normal(ks[3], (LATENT,), jnp.float32) * sc,
        "wk": jax.random.normal(ks[4], (KV_SIZE, LATENT), jnp.float32) * sc,
        "bk": jax.random.normal(ks[5], (KV_SIZE,), jnp.float32) * sc,
        "wv": jax.random.normal(ks[6], (KV_SIZE, LATENT), jnp.float32) * sc,
        "bv": jax.random.normal(ks[7], (KV_SIZE,), jnp.float32) * sc,
        "wo": jax.random.normal(ks[8], (H, H), jnp.float32) * sc,
        "bo": jax.random.normal(ks[9], (H,), jnp.float32) * sc,
    }
    x = jax.random.normal(ks[10], (B, S, H), jnp.float32)

    # tiles of 128 so both the q-tile and kv-tile (online-softmax) paths run
    out = gqla_forward(
        x, params,
        num_heads=NUM_HEADS, num_kv_groups=NUM_KV_GROUPS, head_dim=HEAD_DIM,
        s_tile=128, q_tile=128, kv_tile=128,
    )
    out = jax.block_until_ready(out)

    # Reference on the same bf16-rounded inputs (kernel uses bf16 MXU operands
    # with f32 accumulation), f32 math everywhere else.
    rparams = {k_: v_.astype(jnp.bfloat16).astype(jnp.float32) for k_, v_ in params.items()}
    xr = x.astype(jnp.bfloat16).astype(jnp.float32)
    ref = gqla_reference(
        xr, rparams,
        num_heads=NUM_HEADS, num_kv_groups=NUM_KV_GROUPS, head_dim=HEAD_DIM,
    )

    assert out.shape == (B, S, H)
    max_err = float(jnp.max(jnp.abs(out - ref)))
    assert jnp.allclose(out, ref, atol=3e-2, rtol=3e-2), f"mismatch vs reference, max err {max_err}"
    print("KERNEL_OK")
</pallas_src>

<mosaic_0001>
module attributes {stable_mosaic.version = 11 : i64} {
  func.func @proj_kernel(%arg0: i32, %arg1: i32, %arg2: memref<1x128x512xbf16, #tpu.memory_space<vmem>>, %arg3: memref<512x640xbf16, #tpu.memory_space<vmem>>, %arg4: memref<1x640xf32, #tpu.memory_space<vmem>>, %arg5: memref<128x512xbf16, #tpu.memory_space<vmem>>, %arg6: memref<1x512xf32, #tpu.memory_space<vmem>>, %arg7: memref<1x128x512xbf16, #tpu.memory_space<vmem>>, %arg8: memref<1x128x256xbf16, #tpu.memory_space<vmem>>, %arg9: memref<1x128x256xbf16, #tpu.memory_space<vmem>>) attributes {dimension_semantics = [#tpu.dimension_semantics<parallel>, #tpu.dimension_semantics<parallel>], iteration_bounds = array<i64: 2, 2>, scalar_prefetch = 0 : i64, scratch_operands = 0 : i64, tpu.core_type = #tpu.core_type<tc>, window_params = [{transform_indices = @transform_0, window_bounds = array<i64: 1, 128, 512>}, {pipeline_mode = #tpu.pipeline_mode<synchronous>, transform_indices = @transform_1, window_bounds = array<i64: 512, 640>}, {pipeline_mode = #tpu.pipeline_mode<synchronous>, transform_indices = @transform_2, window_bounds = array<i64: 1, 640>}, {pipeline_mode = #tpu.pipeline_mode<synchronous>, transform_indices = @transform_3, window_bounds = array<i64: 128, 512>}, {pipeline_mode = #tpu.pipeline_mode<synchronous>, transform_indices = @transform_4, window_bounds = array<i64: 1, 512>}, {transform_indices = @transform_5, window_bounds = array<i64: 1, 128, 512>}, {transform_indices = @transform_6, window_bounds = array<i64: 1, 128, 256>}, {transform_indices = @transform_7, window_bounds = array<i64: 1, 128, 256>}]} {
    %c0 = arith.constant 0 : index
    %c0_0 = arith.constant 0 : index
    %c0_1 = arith.constant 0 : index
    %0 = vector.load %arg2[%c0, %c0_0, %c0_1] : memref<1x128x512xbf16, #tpu.memory_space<vmem>>, vector<1x128x512xbf16>
    %1 = vector.shape_cast %0 : vector<1x128x512xbf16> to vector<128x512xbf16>
    %c0_2 = arith.constant 0 : index
    %c0_3 = arith.constant 0 : index
    %2 = vector.load %arg3[%c0_2, %c0_3] : memref<512x640xbf16, #tpu.memory_space<vmem>>, vector<512x640xbf16>
    %cst = arith.constant dense<0.000000e+00> : vector<128x640xf32>
    %3 = tpu.matmul %1, %2, %cst {dimension_numbers = #tpu.dot_dimension_numbers<[1], [0], [0], [1], [0, 0, 1, 1], [], []>} : vector<128x512xbf16>, vector<512x640xbf16>, vector<128x640xf32> -> vector<128x640xf32>
    %c0_4 = arith.constant 0 : index
    %c0_5 = arith.constant 0 : index
    %4 = vector.load %arg4[%c0_4, %c0_5] : memref<1x640xf32, #tpu.memory_space<vmem>>, vector<1x640xf32>
    %5 = vector.broadcast %4 : vector<1x640xf32> to vector<128x640xf32>
    %6 = arith.addf %3, %5 : vector<128x640xf32>
    %7 = vector.extract_strided_slice %6 {offsets = [0, 0], sizes = [128, 512], strides = [1, 1]} : vector<128x640xf32> to vector<128x512xf32>
    %8 = vector.extract_strided_slice %6 {offsets = [0, 512], sizes = [128, 128], strides = [1, 1]} : vector<128x640xf32> to vector<128x128xf32>
    %9 = arith.truncf %8 : vector<128x128xf32> to vector<128x128xbf16>
    %c0_6 = arith.constant 0 : index
    %c0_7 = arith.constant 0 : index
    %10 = vector.load %arg5[%c0_6, %c0_7] : memref<128x512xbf16, #tpu.memory_space<vmem>>, vector<128x512xbf16>
    %cst_8 = arith.constant dense<0.000000e+00> : vector<128x512xf32>
    %11 = tpu.matmul %9, %10, %cst_8 {dimension_numbers = #tpu.dot_dimension_numbers<[1], [0], [0], [1], [0, 0, 1, 1], [], []>} : vector<128x128xbf16>, vector<128x512xbf16>, vector<128x512xf32> -> vector<128x512xf32>
    %c0_9 = arith.constant 0 : index
    %c0_10 = arith.constant 0 : index
    %12 = vector.load %arg6[%c0_9, %c0_10] : memref<1x512xf32, #tpu.memory_space<vmem>>, vector<1x512xf32>
    %13 = vector.broadcast %12 : vector<1x512xf32> to vector<128x512xf32>
    %14 = arith.addf %11, %13 : vector<128x512xf32>
    %15 = arith.truncf %7 : vector<128x512xf32> to vector<128x512xbf16>
    %c0_11 = arith.constant 0 : index
    %c0_12 = arith.constant 0 : index
    %c0_13 = arith.constant 0 : index
    %16 = vector.load %arg7[%c0_11, %c0_12, %c0_13] : memref<1x128x512xbf16, #tpu.memory_space<vmem>>, vector<1x128x512xbf16>
    %17 = vector.shape_cast %16 : vector<1x128x512xbf16> to vector<128x512xbf16>
    %18 = vector.shape_cast %15 : vector<128x512xbf16> to vector<1x128x512xbf16>
    tpu.vector_store %arg7[%c0_11, %c0_12, %c0_13], %18 {strides = array<i32>} : memref<1x128x512xbf16, #tpu.memory_space<vmem>>, vector<1x128x512xbf16>,
    %19 = vector.extract_strided_slice %14 {offsets = [0, 0], sizes = [128, 256], strides = [1, 1]} : vector<128x512xf32> to vector<128x256xf32>
    %20 = arith.truncf %19 : vector<128x256xf32> to vector<128x256xbf16>
    %c0_14 = arith.constant 0 : index
    %c0_15 = arith.constant 0 : index
    %c0_16 = arith.constant 0 : index
    %21 = vector.load %arg8[%c0_14, %c0_15, %c0_16] : memref<1x128x256xbf16, #tpu.memory_space<vmem>>, vector<1x128x256xbf16>
    %22 = vector.shape_cast %21 : vector<1x128x256xbf16> to vector<128x256xbf16>
    %23 = vector.shape_cast %20 : vector<128x256xbf16> to vector<1x128x256xbf16>
    tpu.vector_store %arg8[%c0_14, %c0_15, %c0_16], %23 {strides = array<i32>} : memref<1x128x256xbf16, #tpu.memory_space<vmem>>, vector<1x128x256xbf16>,
    %24 = vector.extract_strided_slice %14 {offsets = [0, 256], sizes = [128, 256], strides = [1, 1]} : vector<128x512xf32> to vector<128x256xf32>
    %25 = arith.truncf %24 : vector<128x256xf32> to vector<128x256xbf16>
    %c0_17 = arith.constant 0 : index
    %c0_18 = arith.constant 0 : index
    %c0_19 = arith.constant 0 : index
    %26 = vector.load %arg9[%c0_17, %c0_18, %c0_19] : memref<1x128x256xbf16, #tpu.memory_space<vmem>>, vector<1x128x256xbf16>
    %27 = vector.shape_cast %26 : vector<1x128x256xbf16> to vector<128x256xbf16>
    %28 = vector.shape_cast %25 : vector<128x256xbf16> to vector<1x128x256xbf16>
    tpu.vector_store %arg9[%c0_17, %c0_18, %c0_19], %28 {strides = array<i32>} : memref<1x128x256xbf16, #tpu.memory_space<vmem>>, vector<1x128x256xbf16>,
    return
  }
  func.func @transform_0(%arg0: i32, %arg1: i32) -> (i32, i32, i32) {
    %c0_i32 = arith.constant 0 : i32
    %c0_i32_0 = arith.constant 0 : i32
    return %arg0, %arg1, %c0_i32 : i32, i32, i32
  }
  func.func @transform_1(%arg0: i32, %arg1: i32) -> (i32, i32) {
    %c0_i32 = arith.constant 0 : i32
    %c0_i32_0 = arith.constant 0 : i32
    %c0_i32_1 = arith.constant 0 : i32
    return %c0_i32, %c0_i32_0 : i32, i32
  }
  func.func @transform_2(%arg0: i32, %arg1: i32) -> (i32, i32) {
    %c0_i32 = arith.constant 0 : i32
    %c0_i32_0 = arith.constant 0 : i32
    %c0_i32_1 = arith.constant 0 : i32
    return %c0_i32, %c0_i32_0 : i32, i32
  }
  func.func @transform_3(%arg0: i32, %arg1: i32) -> (i32, i32) {
    %c0_i32 = arith.constant 0 : i32
    %c0_i32_0 = arith.constant 0 : i32
    %c0_i32_1 = arith.constant 0 : i32
    return %c0_i32, %c0_i32_0 : i32, i32
  }
  func.func @transform_4(%arg0: i32, %arg1: i32) -> (i32, i32) {
    %c0_i32 = arith.constant 0 : i32
    %c0_i32_0 = arith.constant 0 : i32
    %c0_i32_1 = arith.constant 0 : i32
    return %c0_i32, %c0_i32_0 : i32, i32
  }
  func.func @transform_5(%arg0: i32, %arg1: i32) -> (i32, i32, i32) {
    %c0_i32 = arith.constant 0 : i32
    %c0_i32_0 = arith.constant 0 : i32
    return %arg0, %arg1, %c0_i32 : i32, i32, i32
  }
  func.func @transform_6(%arg0: i32, %arg1: i32) -> (i32, i32, i32) {
    %c0_i32 = arith.constant 0 : i32
    %c0_i32_0 = arith.constant 0 : i32
    return %arg0, %arg1, %c0_i32 : i32, i32, i32
  }
  func.func @transform_7(%arg0: i32, %arg1: i32) -> (i32, i32, i32) {
    %c0_i32 = arith.constant 0 : i32
    %c0_i32_0 = arith.constant 0 : i32
    return %arg0, %arg1, %c0_i32 : i32, i32, i32
  }
}

</mosaic_0001>

<bundles_post_ra>
// kernel: tpu_custom_call.1
= control target key start
LH: loop header
LB: loop body
LE: loop exit
PB: predicated region body
PF: predicated region fallthrough
CT: control target
= control target key end

     0   :  { %s5960_s0 = inlined_call_operand.hbm [shape: bf16[2,256,512], index: 0, kind: input, shape index: {}]   ;;  %s5961_s1 = inlined_call_operand.hbm [shape: bf16[512,640], index: 1, kind: input, shape index: {}]   ;;  %s5962_s2 = inlined_call_operand.hbm [shape: f32[1,640], index: 2, kind: input, shape index: {}]   ;;  %s5963_s3 = inlined_call_operand.hbm [shape: bf16[128,512], index: 3, kind: input, shape index: {}]   ;;  %s5964_s4 = inlined_call_operand.hbm [shape: f32[1,512], index: 4, kind: input, shape index: {}]   ;;  %s5965_s5 = inlined_call_operand.hbm [shape: bf16[2,256,512], index: 5, kind: output, shape index: {0}]   ;;  %s5966_s6 = inlined_call_operand.hbm [shape: bf16[2,256,256], index: 6, kind: output, shape index: {1}]   ;;  %s5967_s7 = inlined_call_operand.hbm [shape: bf16[2,256,256], index: 7, kind: output, shape index: {2}]  }
   0x1   :  { %5992 = sst [smem:[#allocation31_spill]] %s5961_s1 }
   0x2   :  { %5993 = sst [smem:[#allocation32_spill]] %s5962_s2 }
   0x3   :  { %5994 = sst [smem:[#allocation33_spill]] %s5963_s3 }
   0x4   :  { %5995 = sst [smem:[#allocation34_spill]] %s5964_s4 }
   0x5   :  { %5996 = sst [smem:[#allocation35_spill]] %s5966_s6 }
   0x6   :  { %5997 = sst [smem:[#allocation36_spill]] %s5967_s7 }
   0x7   :  { %13 = vsyncpa [#allocation3], 0 }
   0x8   :  { %15 = vsyncpa [#allocation3 + $0x1], 0 }
   0x9   :  { %16 = vsyncpa [#allocation6], 0 }
   0xa   :  { %17 = vsyncpa [#allocation9], 0 }
   0xb   :  { %18 = vsyncpa [#allocation4], 0 }
   0xc   :  { %20 = vsyncpa [#allocation4 + $0x1], 0 }
   0xd   :  { %21 = vsyncpa [#allocation13], 0 }
   0xe   :  { %23 = vsyncpa [#allocation13 + $0x1], 0  ;;  %s5086_s24 = smov 0   ;;  %s5088_s25 = smov 0  }
   0xf   :  { %s5090_s26 = smov 0   ;;  %s5092_s27 = smov 0  }
  0x10   :  { %s5094_s28 = smov 0   ;;  %s5096_s29 = smov 0  }
  0x11   :  { %s5098_s30 = smov 0   ;;  %s5100_s8 = smov 0  }
  0x12 LB: > { %5998 = sst [smem:[#allocation20_spill]] %s5004_s24  ;;  %s5127_s9 = sadd.s32 4294967295, %s5032_s8   ;;  %s5032_s8 = sphi %s5100_s8, %s29_s8   ;;  %s5028_s30 = sphi %s5098_s30, %s6043_s30   ;;  %s5024_s29 = sphi %s5096_s29, %s6042_s29   ;;  %s5020_s28 = sphi %s5094_s28, %s6041_s28   ;;  %s5016_s27 = sphi %s5092_s27, %s6040_s27   ;;  %s5012_s26 = sphi %s5090_s26, %s6039_s26   ;;  %s5008_s25 = sphi %s5088_s25, %s6038_s25   ;;  %s5004_s24 = sphi %s5086_s24, %s6037_s24  }
  0x13   : > { %s5968_s10 = sadd.s32 4294967294, %s5032_s8   ;;  %p63_p0 = scmp.ne.s32.totalorder %s5008_s25, %s5004_s24 }
  0x14   : > { %p64_p1 = scmp.eq.s32.totalorder %s5127_s9, 0  ;;  %p173_p2 = scmp.eq.s32.totalorder %s5127_s9, 3 }
  0x15   : > { %p179_p3 = scmp.eq.s32.totalorder %s5968_s10, 3  ;;  %p3416_p5 = scmp.ge.s32.totalorder %s5032_s8, 1 }
  0x16   : > { %p5138_p4 = por %p64_p1, %p63_p0  ;;  %p242_p7 = scmp.lt.s32.totalorder %s5032_s8, 5 }
  0x17   : > { %p5143_p6 = por %p179_p3, %p63_p0  ;;  %s6002_s1 = sld [smem:[#allocation31_spill]] }
  0x18   : > { %p5151_p8 = pnand %p3416_p5, %p242_p7  ;;  %s5034_s17 = smov [#allocation5]  }
  0x19   : > { %s6000_s12 = scalar_select %p5143_p6, 1, 0 }
  0x1a   : > { %p4601_p9 = pneg %p5151_p8  ;;  %s255_s18 = sshll.u32 %s5034_s17, 4  ;;  %s256_s18 = int_to_ptr.vmem [resolvable:$true] %s255_s18 }
  0x1b   : > { %6001 = sst [smem:[#allocation21_spill]] %s6000_s12  ;;  %s5035_s23 = smov 320  }
  0x1c   : > { %p5159_p10 = pnand %p4601_p9, %p64_p1  ;;  %s6005_s3 = sld [smem:[#allocation33_spill]] }
  0x1d   : > { %s253_s15 = sshll.u32 %s6002_s1, 4  ;;  %s5036_s13 = smov 20   ;;  %s254_s15 = int_to_ptr.hbm [resolvable:$true] %s253_s15 }
  0x1e   : > { %4604 = dma.hbm_to_vmem [thread:$0]  (!%p5159_p10), %s254_s15, 20480, %s256_s18, [#allocation6], %s5035_s23, %s5035_s23, %s5036_s13  }
  0x1f   : > { %s5037_s14 = smov [#allocation8]   ;;  %s5969_s10 = smov 256  }
  0x20   : > { %s281_s17 = sshll.u32 %s5037_s14, 4  ;;  %s5970_s1 = smov 16   ;;  %s282_s17 = int_to_ptr.vmem [resolvable:$true] %s281_s17 }
  0x21   : > { %s6006_s2 = sld [smem:[#allocation32_spill]]  ;;  %s5040_s15 = smov [#allocation7]  }
  0x22   : > { %s279_s22 = sshll.u32 %s6005_s3, 4  ;;  %s270_s18 = sshll.u32 %s5040_s15, 4  ;;  %s280_s22 = int_to_ptr.hbm [resolvable:$true] %s279_s22  ;;  %s271_s18 = int_to_ptr.vmem [resolvable:$true] %s270_s18 }
  0x23   : > { %4610 = dma.hbm_to_vmem [thread:$0]  (!%p5159_p10), %s280_s22, 4096, %s282_s17, [#allocation9], %s5969_s10, %s5969_s10, %s5970_s1  }
  0x24   : > { %s6007_s4 = sld [smem:[#allocation34_spill]]  ;;  %s5041_s22 = smov [#allocation10]  }
  0x25   : > { %s296_s17 = sshll.u32 %s5041_s22, 4  ;;  %s38_s20 = sadd.s32 1, %s5024_s29  ;;  %s297_s17 = int_to_ptr.vmem [resolvable:$true] %s296_s17 }
  0x26   : > { %s41_s21 = sadd.s32 1, %s5028_s30  ;;  %p39_p11 = scmp.ge.s32.totalorder %s38_s20, 2 }
  0x27   : > { %s268_s3 = sshll.u32 %s6006_s2, 4  ;;  %s50_s15 = sadd.s32 1, %s5012_s26  ;;  %s269_s3 = int_to_ptr.hbm [resolvable:$true] %s268_s3 }
  0x28   : > { %4607 = dma.hbm_to_vmem [thread:$0]  (!%p5159_p10), %s269_s3, 80, %s271_s18, [#allocation6]  }
  0x29   : > { %p57_p12 = scmp.ne.s32.totalorder %s5012_s26, %s5008_s25  ;;  %p58_p13 = scmp.eq.s32.totalorder %s5032_s8, 0 }
  0x2a   : > { %s294_s14 = sshll.u32 %s6007_s4, 4  ;;  %s6045_s20 = smov (%p39_p11, %s38_s20), 0  ;;  %s295_s14 = int_to_ptr.hbm [resolvable:$true] %s294_s14 }
  0x2b   : > { %4613 = dma.hbm_to_vmem [thread:$0]  (!%p5159_p10), %s295_s14, 64, %s297_s17, [#allocation9]  }
  0x2c   : > { %6008 = sst [smem:[#allocation22_spill]] %s6045_s20  ;;  %s6047_s21 = smov (!%p39_p11, %s41_s21), %s5028_s30 }
  0x2d   : > { %s46_s3 = ssub.s32 %s5024_s29, %s6045_s20  ;;  %p5194_p0 = por %p58_p13, %p57_p12 }
  0x2e   : > { %p43_p3 = scmp.ge.s32.totalorder %s6047_s21, 2  ;;  %p5200_p5 = por %p173_p2, %p57_p12 }
  0x2f   : > { %p4632_p7 = scmp.lt.s32.totalorder %s5032_s8, 4  ;;  %s307_s23 = sand.u32 1, %s5012_s26  }
  0x30   : > { %s6010_s19 = scalar_select %p5200_p5, 1, 0 }
  0x31   : > { %s6049_s21 = smov (%p43_p3, %s6047_s21), 0  ;;  %s3422_s13 = sshll.u32 %s307_s23, 8 }
  0x32   : > { %6011 = sst [smem:[#allocation23_spill]] %s6010_s19  ;;  %s45_s14 = ssub.s32 %s5028_s30, %s6049_s21 }
  0x33   : > { %s47_s22 = sor.u32 %s46_s3, %s45_s14  ;;  %s4349_s17 = sshll.u32 %s5024_s29, 6 }
  0x34   : > { %p48_p9 = scmp.eq.s32.totalorder %s47_s22, 0  ;;  %s3425_s10 = sshll.u32 %s5028_s30, 7 }
  0x35   : > { %s317_s1 = sadd.s32 %s4349_s17, %s3425_s10  ;;  %s311_s2 = scalar_lea.vmem [#allocation2], %s3422_s13 }
  0x36   : > { %s322_s4 = sshll.u32 %s311_s2, 4  ;;  %s3426_s12 = sshll.u32 %s317_s1, 2  ;;  %s323_s4 = int_to_ptr.vmem [resolvable:$true] %s322_s4 }
  0x37   : > { %s5213_s20 = scalar_select %p48_p9, %s5012_s26, %s50_s15  }
  0x38   : > { %s319_s6 = scalar_lea.hbm %s5960_s0, %s3426_s12  ;;  %p4615_p2 = pnand %p4632_p7, %p5194_p0 }
  0x39   : > { %s320_s19 = sshll.u32 %s319_s6, 4  ;;  %s308_s3 = scalar_lea.sflag [#allocation3], %s307_s23  ;;  %s321_s19 = int_to_ptr.hbm [resolvable:$true] %s320_s19 }
  0x3a   : > { %s6012_s14 = smov 16   ;;  %s6013_s22 = smov 256  }
  0x3b   : > { %4617 = dma.hbm_to_vmem [thread:$0]  (!%p4615_p2), %s321_s19, 4096, %s323_s4, %s308_s3, %s6013_s22, %s6013_s22, %s6012_s14  }
  0x3c   : > { %334 = sbr.rel (%p5151_p8) target bundleno = 1034 (0x40a), region = 40 }
  0x41   : > { %s5228_s1 = sand.u32 1, %s5008_s25  }
  0x42   : > { %s3428_s2 = sshll.u32 %s5228_s1, 8  ;;  %s337_s7 = scalar_lea.sflag [#allocation3], %s5228_s1 }
  0x43   : > { %s5234_s6 = scalar_lea.vmem [#allocation2], %s3428_s2 }
  0x44   : > { %4983 = dma.done.wait (%p5138_p4), %s337_s7, 4096  }
  0x45   : > { %4985 = vsyncadd (%p5138_p4), %s337_s7, 4294963200 }
  0x46   : > { %4987 = dma.done.wait (%p64_p1), [#allocation6], 20560  }
  0x47   : > { %4989 = vsyncadd (%p64_p1), [#allocation6], 4294946736 }
  0x48   : > { %4991 = dma.done.wait (%p64_p1), [#allocation9], 4160  }
  0x49   : > { %4993 = vsyncadd (%p64_p1), [#allocation9], 4294963136  ;;  %v3706_v0 = vld [vmem:[#allocation5 + $0x118] sm:$0xf]  ;;  %v4419_v1 = vld [vmem:[#allocation5 + $0x128] sm:$0xf0] }
  0x4a   : > { %v3866_v2 = vld [vmem:[#allocation5 + $0x258] sm:$0xf]  ;;  %v3707_v3 = vor.u32 %v4419_v1, %v3706_v0  ;;  %v4459_v4 = vld [vmem:[#allocation5 + $0x268] sm:$0xf0]  ;;  %v3686_v11 = vld [vmem:[#allocation5 + $0xf0] sm:$0xf] }
  0x4b   : > { %v4026_v5 = vld [vmem:[#allocation5 + $0x398] sm:$0xf]  ;;  %v4499_v6 = vld [vmem:[#allocation5 + $0x3a8] sm:$0xf0]  ;;  %v3867_v7 = vor.u32 %v4459_v4, %v3866_v2  ;;  %v4414_v13 = vld [vmem:[#allocation5 + $0x100] sm:$0xf0] }
  0x4c   : > { %v4027_v8 = vor.u32 %v4499_v6, %v4026_v5  ;;  %v4186_v9 = vld [vmem:[#allocation5 + $0x4d8] sm:$0xf]  ;;  %v4539_v10 = vld [vmem:[#allocation5 + $0x4e8] sm:$0xf0]  ;;  %1634 = vmatpush.bf16.msra.mxu0 %v3707_v3  ;;  %v3846_v14 = vld [vmem:[#allocation5 + $0x230] sm:$0xf]  ;;  %v3687_v16 = vor.u32 %v4414_v13, %v3686_v11 }
  0x4d   : > { %v4187_v12 = vor.u32 %v4539_v10, %v4186_v9  ;;  %v4454_v15 = vld [vmem:[#allocation5 + $0x240] sm:$0xf0]  ;;  %1683 = vmatpush.bf16.msra.mxu1 %v3867_v7  ;;  %v4006_v18 = vld [vmem:[#allocation5 + $0x370] sm:$0xf]  ;;  %v3666_v23 = vld [vmem:[#allocation5 + $0xc8] sm:$0xf] }
  0x4e   : > { %1732 = vmatpush.bf16.msra.mxu2 %v4027_v8  ;;  %v3847_v17 = vor.u32 %v4454_v15, %v3846_v14  ;;  %v4494_v19 = vld [vmem:[#allocation5 + $0x380] sm:$0xf0]  ;;  %v4166_v20 = vld [vmem:[#allocation5 + $0x4b0] sm:$0xf]  ;;  %v4409_v24 = vld [vmem:[#allocation5 + $0xd8] sm:$0xf0] }
  0x4f   : > { %1781 = vmatpush.bf16.msra.mxu3 %v4187_v12  ;;  %v4007_v21 = vor.u32 %v4494_v19, %v4006_v18  ;;  %v4534_v22 = vld [vmem:[#allocation5 + $0x4c0] sm:$0xf0]  ;;  %v3826_v26 = vld [vmem:[#allocation5 + $0x208] sm:$0xf]  ;;  %v4449_v27 = vld [vmem:[#allocation5 + $0x218] sm:$0xf0]  ;;  %v3667_v29 = vor.u32 %v4409_v24, %v3666_v23 }
  0x50   : > { %v4167_v25 = vor.u32 %v4534_v22, %v4166_v20  ;;  %v3986_v28 = vld [vmem:[#allocation5 + $0x348] sm:$0xf]  ;;  %1635 = vmatpush.bf16.msra.mxu0 %v3687_v16  ;;  %v4489_v30 = vld [vmem:[#allocation5 + $0x358] sm:$0xf0]  ;;  %v3827_v33 = vor.u32 %v4449_v27, %v3826_v26  ;;  %v3646_v35 = vld [vmem:[#allocation5 + $0xa0] sm:$0xf] }
  0x51   : > { %v4146_v31 = vld [vmem:[#allocation5 + $0x488] sm:$0xf]  ;;  %v4529_v32 = vld [vmem:[#allocation5 + $0x498] sm:$0xf0]  ;;  %1684 = vmatpush.bf16.msra.mxu1 %v3847_v17  ;;  %v3987_v34 = vor.u32 %v4489_v30, %v3986_v28  ;;  %v4404_v36 = vld [vmem:[#allocation5 + $0xb0] sm:$0xf0] }
  0x52   : > { %1733 = vmatpush.bf16.msra.mxu2 %v4007_v21  ;;  %v3806_v37 = vld [vmem:[#allocation5 + $0x1e0] sm:$0xf]  ;;  %v4147_v38 = vor.u32 %v4529_v32, %v4146_v31  ;;  %v4444_v39 = vld [vmem:[#allocation5 + $0x1f0] sm:$0xf0]  ;;  %v3647_v44 = vor.u32 %v4404_v36, %v3646_v35  ;;  %v3626_v47 = vld [vmem:[#allocation5 + $0x78] sm:$0xf] }
  0x53   : > { %1782 = vmatpush.bf16.msra.mxu3 %v4167_v25  ;;  %v3966_v40 = vld [vmem:[#allocation5 + $0x320] sm:$0xf]  ;;  %v4484_v41 = vld [vmem:[#allocation5 + $0x330] sm:$0xf0]  ;;  %v3807_v45 = vor.u32 %v4444_v39, %v3806_v37  ;;  %v4399_v48 = vld [vmem:[#allocation5 + $0x88] sm:$0xf0] }
  0x54   : > { %v4126_v42 = vld [vmem:[#allocation5 + $0x460] sm:$0xf]  ;;  %v4524_v43 = vld [vmem:[#allocation5 + $0x470] sm:$0xf0]  ;;  %1636 = vmatpush.bf16.msra.mxu0 %v3667_v29  ;;  %v3967_v46 = vor.u32 %v4484_v41, %v3966_v40  ;;  %v3786_v49 = vld [vmem:[#allocation5 + $0x1b8] sm:$0xf]  ;;  %v3627_v56 = vor.u32 %v4399_v48, %v3626_v47 }
  0x55   : > { %1685 = vmatpush.bf16.msra.mxu1 %v3827_v33  ;;  %v4127_v50 = vor.u32 %v4524_v43, %v4126_v42  ;;  %v4439_v51 = vld [vmem:[#allocation5 + $0x1c8] sm:$0xf0]  ;;  %v3946_v52 = vld [vmem:[#allocation5 + $0x2f8] sm:$0xf]  ;;  %v3606_v59 = vld [vmem:[#allocation5 + $0x50] sm:$0xf] }
  0x56   : > { %1734 = vmatpush.bf16.msra.mxu2 %v3987_v34  ;;  %v4479_v53 = vld [vmem:[#allocation5 + $0x308] sm:$0xf0]  ;;  %v4106_v54 = vld [vmem:[#allocation5 + $0x438] sm:$0xf]  ;;  %v3787_v57 = vor.u32 %v4439_v51, %v3786_v49  ;;  %v4394_v60 = vld [vmem:[#allocation5 + $0x60] sm:$0xf0] }
  0x57   : > { %1783 = vmatpush.bf16.msra.mxu3 %v4147_v38  ;;  %v4519_v55 = vld [vmem:[#allocation5 + $0x448] sm:$0xf0]  ;;  %v3947_v58 = vor.u32 %v4479_v53, %v3946_v52  ;;  %v3766_v61 = vld [vmem:[#allocation5 + $0x190] sm:$0xf]  ;;  %v4434_v63 = vld [vmem:[#allocation5 + $0x1a0] sm:$0xf0]  ;;  %v3607_v4 = vor.u32 %v4394_v60, %v3606_v59 }
  0x58   : > { %1637 = vmatpush.bf16.msra.mxu0 %v3647_v44  ;;  %v4107_v62 = vor.u32 %v4519_v55, %v4106_v54  ;;  %v3926_v0 = vld [vmem:[#allocation5 + $0x2d0] sm:$0xf]  ;;  %v4474_v1 = vld [vmem:[#allocation5 + $0x2e0] sm:$0xf0]  ;;  %v3767_v5 = vor.u32 %v4434_v63, %v3766_v61  ;;  %v3586_v7 = vld [vmem:[#allocation5 + $0x28] sm:$0xf] }
  0x59   : > { %1686 = vmatpush.bf16.msra.mxu1 %v3807_v45  ;;  %v4086_v2 = vld [vmem:[#allocation5 + $0x410] sm:$0xf]  ;;  %v4514_v3 = vld [vmem:[#allocation5 + $0x420] sm:$0xf0]  ;;  %v3927_v6 = vor.u32 %v4474_v1, %v3926_v0  ;;  %v4389_v8 = vld [vmem:[#allocation5 + $0x38] sm:$0xf0] }
  0x5a   : > { %1735 = vmatpush.bf16.msra.mxu2 %v3967_v46  ;;  %v3746_v9 = vld [vmem:[#allocation5 + $0x168] sm:$0xf]  ;;  %v4087_v10 = vor.u32 %v4514_v3, %v4086_v2  ;;  %v4429_v11 = vld [vmem:[#allocation5 + $0x178] sm:$0xf0]  ;;  %v3566_v16 = vld [vmem:[#allocation5] sm:$0xf]  ;;  %v3587_v17 = vor.u32 %v4389_v8, %v3586_v7 }
  0x5b   : > { %1784 = vmatpush.bf16.msra.mxu3 %v4127_v50  ;;  %v3906_v12 = vld [vmem:[#allocation5 + $0x2a8] sm:$0xf]  ;;  %v4469_v13 = vld [vmem:[#allocation5 + $0x2b8] sm:$0xf0]  ;;  %v4384_v18 = vld [vmem:[#allocation5 + $0x10] sm:$0xf0]  ;;  %v3747_v21 = vor.u32 %v4429_v11, %v3746_v9 }
  0x5c   : > { %1638 = vmatpush.bf16.msra.mxu0 %v3627_v56  ;;  %v4066_v14 = vld [vmem:[#allocation5 + $0x3e8] sm:$0xf]  ;;  %v4509_v15 = vld [vmem:[#allocation5 + $0x3f8] sm:$0xf0]  ;;  %v3726_v19 = vld [vmem:[#allocation5 + $0x140] sm:$0xf]  ;;  %v3907_v22 = vor.u32 %v4469_v13, %v3906_v12  ;;  %v3567_v34 = vor.u32 %v4384_v18, %v3566_v16 }
  0x5d   : > { %1687 = vmatpush.bf16.msra.mxu1 %v3787_v57  ;;  %v4424_v20 = vld [vmem:[#allocation5 + $0x150] sm:$0xf0]  ;;  %v3886_v23 = vld [vmem:[#allocation5 + $0x280] sm:$0xf]  ;;  %v4067_v26 = vor.u32 %v4509_v15, %v4066_v14  ;;  %v4352_v29 = vld [vmem:[%s5234_s6 + $0xc] sm:$0xf0] }
  0x5e   : > { %1736 = vmatpush.bf16.msra.mxu2 %v3947_v58  ;;  %v4464_v24 = vld [vmem:[#allocation5 + $0x290] sm:$0xf0]  ;;  %v4046_v25 = vld [vmem:[#allocation5 + $0x3c0] sm:$0xf]  ;;  %v4350_v30 = vld [vmem:[%s5234_s6 + $0x4] sm:$0xf]  ;;  %v3727_v38 = vor.u32 %v4424_v20, %v3726_v19 }
  0x5f   : > { %1785 = vmatpush.bf16.msra.mxu3 %v4107_v62  ;;  %v4504_v27 = vld [vmem:[#allocation5 + $0x3d0] sm:$0xf0]  ;;  %v3438_v28 = vld [vmem:[%s5234_s6] sm:$0xf]  ;;  %v4497_v32 = vld [vmem:[#allocation5 + $0x39c] sm:$0xf]  ;;  %v3887_v39 = vor.u32 %v4464_v24, %v3886_v23 }
  0x60   : > { %1639 = vmatpush.bf16.msra.mxu0 %v3607_v4  ;;  %v3440_v31 = vld [vmem:[%s5234_s6 + $0x10] sm:$0xf0]  ;;  %v4028_v33 = vld [vmem:[#allocation5 + $0x3ac] sm:$0xf0]  ;;  %v3446_v35 = vld [vmem:[%s5234_s6 + $0x8] sm:$0xf]  ;;  %v4047_v43 = vor.u32 %v4504_v27, %v4046_v25  ;;  %v5256_v48 = vor.u32 %v4352_v29, %v3438_v28 }
  0x61   : > { %1688 = vmatpush.bf16.msra.mxu1 %v3767_v5  ;;  %v4537_v36 = vld [vmem:[#allocation5 + $0x4dc] sm:$0xf]  ;;  %v4188_v37 = vld [vmem:[#allocation5 + $0x4ec] sm:$0xf0]  ;;  %v4353_v40 = vld [vmem:[%s5234_s6 + $0x14] sm:$0xf0]  ;;  %v4031_v44 = vor.u32 %v4497_v32, %v4028_v33  ;;  %v5258_v53 = vor.u32 %v4350_v30, %v3440_v31 }
  0x62   : > { %1737 = vmatpush.bf16.msra.mxu2 %v3927_v6  ;;  %v4351_v41 = vld [vmem:[%s5234_s6 + $0xc] sm:$0xf]  ;;  %v3448_v42 = vld [vmem:[%s5234_s6 + $0x18] sm:$0xf0]  ;;  %v3708_v46 = vld [vmem:[#allocation5 + $0x12c] sm:$0xf0]  ;;  %v4191_v49 = vor.u32 %v4537_v36, %v4188_v37  ;;  %v5260_v54 = vor.u32 %v4353_v40, %v3446_v35 }
  0x63   : > { %1786 = vmatpush.bf16.msra.mxu3 %v4087_v10  ;;  %v4417_v45 = vld [vmem:[#allocation5 + $0x11c] sm:$0xf]  ;;  %v3868_v50 = vld [vmem:[#allocation5 + $0x26c] sm:$0xf0]  ;;  %v4492_v51 = vld [vmem:[#allocation5 + $0x374] sm:$0xf]  ;;  %v5262_v57 = vor.u32 %v4351_v41, %v3448_v42 }
  0x64   : > { %1640 = vmatpush.bf16.msra.mxu0 %v3587_v17  ;;  %v4457_v47 = vld [vmem:[#allocation5 + $0x25c] sm:$0xf]  ;;  %v4008_v52 = vld [vmem:[#allocation5 + $0x384] sm:$0xf0]  ;;  %v4532_v55 = vld [vmem:[#allocation5 + $0x4b4] sm:$0xf]  ;;  %v3711_v58 = vor.u32 %v4417_v45, %v3708_v46 }
  0x65   : > { %1689 = vmatpush.bf16.msra.mxu1 %v3747_v21  ;;  %v4168_v56 = vld [vmem:[#allocation5 + $0x4c4] sm:$0xf0]  ;;  %v3871_v59 = vor.u32 %v4457_v47, %v3868_v50  ;;  %v4011_v60 = vor.u32 %v4492_v51, %v4008_v52  ;;  %v4412_v61 = vld [vmem:[#allocation5 + $0xf4] sm:$0xf]  ;;  %v4487_v3 = vld [vmem:[#allocation5 + $0x34c] sm:$0xf] }
  0x66   : > { %1738 = vmatpush.bf16.msra.mxu2 %v3907_v22  ;;  %v3688_v62 = vld [vmem:[#allocation5 + $0x104] sm:$0xf0]  ;;  %v4171_v63 = vor.u32 %v4532_v55, %v4168_v56  ;;  %v4452_v0 = vld [vmem:[#allocation5 + $0x234] sm:$0xf]  ;;  %v3988_v4 = vld [vmem:[#allocation5 + $0x35c] sm:$0xf0] }
  0x67   : > { %1787 = vmatpush.bf16.msra.mxu3 %v4067_v26  ;;  %v3848_v1 = vld [vmem:[#allocation5 + $0x244] sm:$0xf0]  ;;  %v3691_v2 = vor.u32 %v4412_v61, %v3688_v62  ;;  %v4407_v5 = vld [vmem:[#allocation5 + $0xcc] sm:$0xf]  ;;  %v3991_v7 = vor.u32 %v4487_v3, %v3988_v4  ;;  %v3668_v8 = vld [vmem:[#allocation5 + $0xdc] sm:$0xf0] }
  0x68   : > { %1641 = vmatpush.bf16.msra.mxu0 %v3567_v34  ;;  %v3851_v6 = vor.u32 %v4452_v0, %v3848_v1  ;;  %v4527_v9 = vld [vmem:[#allocation5 + $0x48c] sm:$0xf]  ;;  %v4148_v10 = vld [vmem:[#allocation5 + $0x49c] sm:$0xf0]  ;;  %v3671_v14 = vor.u32 %v4407_v5, %v3668_v8  ;;  %v4356_v17 = vld [vmem:[%s5234_s6 + $0x2c] sm:$0xf0] }
  0x69   : > { %1690 = vmatpush.bf16.msra.mxu1 %v3727_v38  ;;  %v4151_v11 = vor.u32 %v4527_v9, %v4148_v10  ;;  %v4447_v12 = vld [vmem:[#allocation5 + $0x20c] sm:$0xf]  ;;  %v3828_v13 = vld [vmem:[#allocation5 + $0x21c] sm:$0xf0]  ;;  %v4354_v18 = vld [vmem:[%s5234_s6 + $0x24] sm:$0xf] }
  0x6a   : > { %1739 = vmatpush.bf16.msra.mxu2 %v3887_v39  ;;  %v3831_v15 = vor.u32 %v4447_v12, %v3828_v13  ;;  %v3454_v16 = vld [vmem:[%s5234_s6 + $0x20] sm:$0xf]  ;;  %v3456_v19 = vld [vmem:[%s5234_s6 + $0x30] sm:$0xf0]  ;;  %v3462_v20 = vld [vmem:[%s5234_s6 + $0x28] sm:$0xf] }
  0x6b   : > { %1788 = vmatpush.bf16.msra.mxu3 %v4047_v43  ;;  %1642 = vmatmul.bf16.vlgmr.msra.gmra.mxu0 %v5256_v48  ;;  %v4357_v21 = vld [vmem:[%s5234_s6 + $0x34] sm:$0xf0]  ;;  %v4355_v22 = vld [vmem:[%s5234_s6 + $0x2c] sm:$0xf]  ;;  %v3464_v23 = vld [vmem:[%s5234_s6 + $0x38] sm:$0xf0]  ;;  %v5276_v24 = vor.u32 %v4356_v17, %v3454_v16  ;;  %v5278_v25 = vor.u32 %v4354_v18, %v3456_v19 }
  0x6c   : > { %1691 = vmatmul.bf16.vlgmr.msra.gmra.mxu1 %v5258_v53  ;;  %1830 = vmatpush.bf16.msrb.mxu0 %v3711_v58  ;;  %v5280_v26 = vor.u32 %v4357_v21, %v3462_v20  ;;  %v5282_v27 = vor.u32 %v4355_v22, %v3464_v23  ;;  %v4482_v28 = vld [vmem:[#allocation5 + $0x324] sm:$0xf]  ;;  %v3968_v29 = vld [vmem:[#allocation5 + $0x334] sm:$0xf0]  ;;  %v3470_v40 = vld [vmem:[%s5234_s6 + $0x40] sm:$0xf] }
  0x6d   : > { %1740 = vmatmul.bf16.vlgmr.msra.gmra.mxu2 %v5260_v54  ;;  %1879 = vmatpush.bf16.msrb.mxu1 %v3871_v59  ;;  %v4402_v30 = vld [vmem:[#allocation5 + $0xa4] sm:$0xf]  ;;  %v3971_v31 = vor.u32 %v4482_v28, %v3968_v29  ;;  %v3648_v32 = vld [vmem:[#allocation5 + $0xb4] sm:$0xf0]  ;;  %v4360_v41 = vld [vmem:[%s5234_s6 + $0x4c] sm:$0xf0] }
  0x6e   : > { %1928 = vmatpush.bf16.msrb.mxu2 %v4031_v44  ;;  %1789 = vmatmul.bf16.vlgmr.msra.gmra.mxu3 %v5262_v57  ;;  %v4522_v33 = vld [vmem:[#allocation5 + $0x464] sm:$0xf]  ;;  %v4128_v34 = vld [vmem:[#allocation5 + $0x474] sm:$0xf0]  ;;  %v3651_v35 = vor.u32 %v4402_v30, %v3648_v32  ;;  %v3472_v43 = vld [vmem:[%s5234_s6 + $0x50] sm:$0xf0] }
  0x6f   : > { %1977 = vmatpush.bf16.msrb.mxu3 %v4191_v49  ;;  %v4131_v36 = vor.u32 %v4522_v33, %v4128_v34  ;;  %v4442_v37 = vld [vmem:[#allocation5 + $0x1e4] sm:$0xf]  ;;  %v3808_v38 = vld [vmem:[#allocation5 + $0x1f4] sm:$0xf0]  ;;  %v3478_v44 = vld [vmem:[%s5234_s6 + $0x48] sm:$0xf]  ;;  %v5296_v49 = vor.u32 %v4360_v41, %v3470_v40 }
  0x70   : > { %1831 = vmatpush.bf16.msrb.mxu0 %v3691_v2  ;;  %v3811_v39 = vor.u32 %v4442_v37, %v3808_v38  ;;  %v4358_v42 = vld [vmem:[%s5234_s6 + $0x44] sm:$0xf]  ;;  %v4361_v45 = vld [vmem:[%s5234_s6 + $0x54] sm:$0xf0]  ;;  %v4359_v46 = vld [vmem:[%s5234_s6 + $0x4c] sm:$0xf] }
  0x71   : > { %1880 = vmatpush.bf16.msrb.mxu1 %v3851_v6  ;;  %v3480_v47 = vld [vmem:[%s5234_s6 + $0x58] sm:$0xf0]  ;;  %v5298_v50 = vor.u32 %v4358_v42, %v3472_v43  ;;  %v5300_v51 = vor.u32 %v4361_v45, %v3478_v44  ;;  %v3948_v56 = vld [vmem:[#allocation5 + $0x30c] sm:$0xf0]  ;;  %v3486_v4 = vld [vmem:[%s5234_s6 + $0x60] sm:$0xf] }
  0x72   : > { %1929 = vmatpush.bf16.msrb.mxu2 %v4011_v60  ;;  %v5302_v52 = vor.u32 %v4359_v46, %v3480_v47  ;;  %v4477_v55 = vld [vmem:[#allocation5 + $0x2fc] sm:$0xf]  ;;  %v3628_v60 = vld [vmem:[#allocation5 + $0x8c] sm:$0xf0]  ;;  %v4362_v6 = vld [vmem:[%s5234_s6 + $0x64] sm:$0xf] }
  0x73   : > { %1978 = vmatpush.bf16.msrb.mxu3 %v4171_v63  ;;  %v4397_v58 = vld [vmem:[#allocation5 + $0x7c] sm:$0xf]  ;;  %v3951_v59 = vor.u32 %v4477_v55, %v3948_v56  ;;  %v4108_v62 = vld [vmem:[#allocation5 + $0x44c] sm:$0xf0]  ;;  %v3494_v8 = vld [vmem:[%s5234_s6 + $0x68] sm:$0xf] }
  0x74   : > { %1832 = vmatpush.bf16.msrb.mxu0 %v3671_v14  ;;  %v4517_v61 = vld [vmem:[#allocation5 + $0x43c] sm:$0xf]  ;;  %v3631_v63 = vor.u32 %v4397_v58, %v3628_v60  ;;  %v3788_v2 = vld [vmem:[#allocation5 + $0x1cc] sm:$0xf0]  ;;  %v4365_v9 = vld [vmem:[%s5234_s6 + $0x74] sm:$0xf0] }
  0x75   : > { %1881 = vmatpush.bf16.msrb.mxu1 %v3831_v15  ;;  %v4111_v0 = vor.u32 %v4517_v61, %v4108_v62  ;;  %v4437_v1 = vld [vmem:[#allocation5 + $0x1bc] sm:$0xf]  ;;  %v4364_v5 = vld [vmem:[%s5234_s6 + $0x6c] sm:$0xf0]  ;;  %v4363_v10 = vld [vmem:[%s5234_s6 + $0x6c] sm:$0xf]  ;;  %v5320_v14 = vor.u32 %v4365_v9, %v3494_v8 }
  0x76   : > { %1930 = vmatpush.bf16.msrb.mxu2 %v3991_v7  ;;  %v3791_v3 = vor.u32 %v4437_v1, %v3788_v2  ;;  %v3488_v7 = vld [vmem:[%s5234_s6 + $0x70] sm:$0xf0]  ;;  %v5316_v12 = vor.u32 %v4364_v5, %v3486_v4  ;;  %v3928_v17 = vld [vmem:[#allocation5 + $0x2e4] sm:$0xf0]  ;;  %v3502_v32 = vld [vmem:[%s5234_s6 + $0x80] sm:$0xf] }
  0x77   : > { %1979 = vmatpush.bf16.msrb.mxu3 %v4151_v11  ;;  %v3496_v11 = vld [vmem:[%s5234_s6 + $0x78] sm:$0xf0]  ;;  %v5318_v13 = vor.u32 %v4362_v6, %v3488_v7  ;;  %v4472_v16 = vld [vmem:[#allocation5 + $0x2d4] sm:$0xf]  ;;  %v3608_v20 = vld [vmem:[#allocation5 + $0x64] sm:$0xf0] }
  0x78   : > { %1833 = vmatpush.bf16.msrb.mxu0 %v3651_v35  ;;  %v5322_v15 = vor.u32 %v4363_v10, %v3496_v11  ;;  %v4392_v18 = vld [vmem:[#allocation5 + $0x54] sm:$0xf]  ;;  %v3931_v19 = vor.u32 %v4472_v16, %v3928_v17  ;;  %v4088_v22 = vld [vmem:[#allocation5 + $0x424] sm:$0xf0]  ;;  %v4368_v33 = vld [vmem:[%s5234_s6 + $0x8c] sm:$0xf0] }
  0x79   : > { %1882 = vmatpush.bf16.msrb.mxu1 %v3811_v39  ;;  %v4512_v21 = vld [vmem:[#allocation5 + $0x414] sm:$0xf]  ;;  %v3611_v23 = vor.u32 %v4392_v18, %v3608_v20  ;;  %v3768_v30 = vld [vmem:[#allocation5 + $0x1a4] sm:$0xf0]  ;;  %v4366_v34 = vld [vmem:[%s5234_s6 + $0x84] sm:$0xf]  ;;  %v5336_v40 = vor.u32 %v4368_v33, %v3502_v32 }
  0x7a   : > { %1931 = vmatpush.bf16.msrb.mxu2 %v3971_v31  ;;  %v4091_v28 = vor.u32 %v4512_v21, %v4088_v22  ;;  %v4432_v29 = vld [vmem:[#allocation5 + $0x194] sm:$0xf]  ;;  %v4369_v37 = vld [vmem:[%s5234_s6 + $0x94] sm:$0xf0]  ;;  %v4367_v38 = vld [vmem:[%s5234_s6 + $0x8c] sm:$0xf] }
  0x7b   : > { %1647 = vmatmul.bf16.gmra.mxu0 %v5276_v24  ;;  %1980 = vmatpush.bf16.msrb.mxu3 %v4131_v36  ;;  %v3771_v31 = vor.u32 %v4432_v29, %v3768_v30  ;;  %v3504_v35 = vld [vmem:[%s5234_s6 + $0x90] sm:$0xf0]  ;;  %v3510_v36 = vld [vmem:[%s5234_s6 + $0x88] sm:$0xf]  ;;  %v3512_v39 = vld [vmem:[%s5234_s6 + $0x98] sm:$0xf0] }
  0x7c   : > { %1696 = vmatmul.bf16.gmra.mxu1 %v5278_v25  ;;  %1834 = vmatpush.bf16.msrb.mxu0 %v3631_v63  ;;  %v5338_v41 = vor.u32 %v4366_v34, %v3504_v35  ;;  %v5340_v42 = vor.u32 %v4369_v37, %v3510_v36  ;;  %v5342_v43 = vor.u32 %v4367_v38, %v3512_v39  ;;  %v4467_v44 = vld [vmem:[#allocation5 + $0x2ac] sm:$0xf]  ;;  %v3908_v45 = vld [vmem:[#allocation5 + $0x2bc] sm:$0xf0]  ;;  %v4372_v1 = vld [vmem:[%s5234_s6 + $0xac] sm:$0xf0] }
  0x7d   : > { %1745 = vmatmul.bf16.gmra.mxu2 %v5280_v26  ;;  %1883 = vmatpush.bf16.msrb.mxu1 %v3791_v3  ;;  %v4387_v46 = vld [vmem:[#allocation5 + $0x2c] sm:$0xf]  ;;  %v3911_v47 = vor.u32 %v4467_v44, %v3908_v45  ;;  %v3588_v55 = vld [vmem:[#allocation5 + $0x3c] sm:$0xf0]  ;;  %v4370_v2 = vld [vmem:[%s5234_s6 + $0xa4] sm:$0xf] }
  0x7e   : > { %1794 = vmatmul.bf16.gmra.mxu3 %v5282_v27  ;;  %1932 = vmatpush.bf16.msrb.mxu2 %v3951_v59  ;;  %v4507_v56 = vld [vmem:[#allocation5 + $0x3ec] sm:$0xf]  ;;  %v4068_v58 = vld [vmem:[#allocation5 + $0x3fc] sm:$0xf0]  ;;  %v3591_v59 = vor.u32 %v4387_v46, %v3588_v55  ;;  %v3520_v3 = vld [vmem:[%s5234_s6 + $0xb0] sm:$0xf0] }
  0x7f   : > { %1981 = vmatpush.bf16.msrb.mxu3 %v4111_v0  ;;  %v4071_v60 = vor.u32 %v4507_v56, %v4068_v58  ;;  %v4427_v61 = vld [vmem:[#allocation5 + $0x16c] sm:$0xf]  ;;  %v3748_v62 = vld [vmem:[#allocation5 + $0x17c] sm:$0xf0]  ;;  %v3526_v4 = vld [vmem:[%s5234_s6 + $0xa8] sm:$0xf]  ;;  %v5358_v9 = vor.u32 %v4370_v2, %v3520_v3 }
  0x80   : > { %1835 = vmatpush.bf16.msrb.mxu0 %v3611_v23  ;;  %v3751_v63 = vor.u32 %v4427_v61, %v3748_v62  ;;  %v3518_v0 = vld [vmem:[%s5234_s6 + $0xa0] sm:$0xf]  ;;  %v4373_v5 = vld [vmem:[%s5234_s6 + $0xb4] sm:$0xf0]  ;;  %v4371_v6 = vld [vmem:[%s5234_s6 + $0xac] sm:$0xf] }
  0x81   : > { %1884 = vmatpush.bf16.msrb.mxu1 %v3771_v31  ;;  %v3528_v7 = vld [vmem:[%s5234_s6 + $0xb8] sm:$0xf0]  ;;  %v5356_v8 = vor.u32 %v4372_v1, %v3518_v0  ;;  %v5360_v10 = vor.u32 %v4373_v5, %v3526_v4  ;;  %v4462_v16 = vld [vmem:[#allocation5 + $0x284] sm:$0xf]  ;;  %v3888_v17 = vld [vmem:[#allocation5 + $0x294] sm:$0xf0] }
  0x82   : > { %1933 = vmatpush.bf16.msrb.mxu2 %v3931_v19  ;;  %v5362_v11 = vor.u32 %v4371_v6, %v3528_v7  ;;  %v4382_v18 = vld [vmem:[#allocation5 + $0x4] sm:$0xf]  ;;  %v3891_v19 = vor.u32 %v4462_v16, %v3888_v17  ;;  %v3568_v20 = vld [vmem:[#allocation5 + $0x14] sm:$0xf0]  ;;  %v3534_v32 = vld [vmem:[%s5234_s6 + $0xc0] sm:$0xf] }
  0x83   : > { %1982 = vmatpush.bf16.msrb.mxu3 %v4091_v28  ;;  %v4502_v21 = vld [vmem:[#allocation5 + $0x3c4] sm:$0xf]  ;;  %v4048_v22 = vld [vmem:[#allocation5 + $0x3d4] sm:$0xf0]  ;;  %v3571_v23 = vor.u32 %v4382_v18, %v3568_v20  ;;  %v4376_v33 = vld [vmem:[%s5234_s6 + $0xcc] sm:$0xf0] }
  0x84   : > { %1836 = vmatpush.bf16.msrb.mxu0 %v3591_v59  ;;  %6014 = vst [vmem:[#allocation24_spill] sm:$0xff] %v5362_v11  ;;  %v4051_v28 = vor.u32 %v4502_v21, %v4048_v22  ;;  %v4422_v29 = vld [vmem:[#allocation5 + $0x144] sm:$0xf]  ;;  %v3728_v30 = vld [vmem:[#allocation5 + $0x154] sm:$0xf0]  ;;  %v5376_v44 = vor.u32 %v4376_v33, %v3534_v32  ;;  %s5505_s4 = scalar_lea.vmem [#allocation11], %s3428_s2 }
  0x85   : > { %1885 = vmatpush.bf16.msrb.mxu1 %v3751_v63  ;;  %v3731_v31 = vor.u32 %v4422_v29, %v3728_v30  ;;  %v4374_v34 = vld [vmem:[%s5234_s6 + $0xc4] sm:$0xf]  ;;  %v3536_v35 = vld [vmem:[%s5234_s6 + $0xd0] sm:$0xf0]  ;;  %v3542_v36 = vld [vmem:[%s5234_s6 + $0xc8] sm:$0xf] }
  0x86   : > { %1934 = vmatpush.bf16.msrb.mxu2 %v3911_v47  ;;  %v4377_v37 = vld [vmem:[%s5234_s6 + $0xd4] sm:$0xf0]  ;;  %v4375_v38 = vld [vmem:[%s5234_s6 + $0xcc] sm:$0xf]  ;;  %v3544_v39 = vld [vmem:[%s5234_s6 + $0xd8] sm:$0xf0]  ;;  %v5378_v45 = vor.u32 %v4374_v34, %v3536_v35 }
  0x87   : > { %1983 = vmatpush.bf16.msrb.mxu3 %v4071_v60  ;;  %v5380_v46 = vor.u32 %v4377_v37, %v3542_v36  ;;  %v5382_v47 = vor.u32 %v4375_v38, %v3544_v39  ;;  %v4034_v55 = vld [vmem:[#allocation5 + $0x3a0] sm:$0xf]  ;;  %v4500_v56 = vld [vmem:[#allocation5 + $0x3b0] sm:$0xf0]  ;;  %v4380_v5 = vld [vmem:[%s5234_s6 + $0xec] sm:$0xf0] }
  0x88   : > { %1837 = vmatpush.bf16.msrb.mxu0 %v3571_v23  ;;  %6015 = vst [vmem:[#allocation25_spill] sm:$0xff] %v5378_v45  ;;  %v3714_v58 = vld [vmem:[#allocation5 + $0x120] sm:$0xf]  ;;  %v4035_v59 = vor.u32 %v4500_v56, %v4034_v55  ;;  %v4420_v60 = vld [vmem:[#allocation5 + $0x130] sm:$0xf0]  ;;  %s3434_s24 = sshll.u32 %s5228_s1, 7 }
  0x89   : > { %1886 = vmatpush.bf16.msrb.mxu1 %v3731_v31  ;;  %6016 = vst [vmem:[#allocation26_spill] sm:$0xff] %v5380_v46  ;;  %v4194_v61 = vld [vmem:[#allocation5 + $0x4e0] sm:$0xf]  ;;  %v4540_v62 = vld [vmem:[#allocation5 + $0x4f0] sm:$0xf0]  ;;  %v3715_v63 = vor.u32 %v4420_v60, %v3714_v58  ;;  %s4574_s10 = sshll.u32 %s5016_s27, 6 }
  0x8a   : > { %1935 = vmatpush.bf16.msrb.mxu2 %v3891_v19  ;;  %6017 = vst [vmem:[#allocation27_spill] sm:$0xff] %v5382_v47  ;;  %v4195_v0 = vor.u32 %v4540_v62, %v4194_v61  ;;  %v3874_v1 = vld [vmem:[#allocation5 + $0x260] sm:$0xf]  ;;  %v4460_v2 = vld [vmem:[#allocation5 + $0x270] sm:$0xf0]  ;;  %s4337_s11 = sshll.u32 %s5020_s28, 7 }
  0x8b   : > { %1652 = vmatmul.bf16.gmra.mxu0 %v5296_v49  ;;  %1984 = vmatpush.bf16.msrb.mxu3 %v4051_v28  ;;  %v3875_v3 = vor.u32 %v4460_v2, %v3874_v1  ;;  %v3550_v4 = vld [vmem:[%s5234_s6 + $0xe0] sm:$0xf]  ;;  %v4378_v6 = vld [vmem:[%s5234_s6 + $0xe4] sm:$0xf]  ;;  %v3552_v7 = vld [vmem:[%s5234_s6 + $0xf0] sm:$0xf0]  ;;  %s3171_s12 = sadd.s32 %s4574_s10, %s4337_s11 }
  0x8c   : > { %1701 = vmatmul.bf16.gmra.mxu1 %v5298_v50  ;;  %2026 = vmatpush.bf16.msra.mxu0 %v3715_v63  ;;  %v3558_v16 = vld [vmem:[%s5234_s6 + $0xe8] sm:$0xf]  ;;  %v4381_v17 = vld [vmem:[%s5234_s6 + $0xf4] sm:$0xf0]  ;;  %v4379_v18 = vld [vmem:[%s5234_s6 + $0xec] sm:$0xf]  ;;  %v5396_v20 = vor.u32 %v4380_v5, %v3550_v4  ;;  %v5398_v21 = vor.u32 %v4378_v6, %v3552_v7 }
  0x8d   : > { %1750 = vmatmul.bf16.gmra.mxu2 %v5300_v51  ;;  %2075 = vmatpush.bf16.msra.mxu1 %v3875_v3  ;;  %v3560_v19 = vld [vmem:[%s5234_s6 + $0xf8] sm:$0xf0]  ;;  %v5400_v22 = vor.u32 %v4381_v17, %v3558_v16  ;;  %v4014_v28 = vld [vmem:[#allocation5 + $0x378] sm:$0xf]  ;;  %v4495_v29 = vld [vmem:[#allocation5 + $0x388] sm:$0xf0] }
  0x8e   : > { %1799 = vmatmul.bf16.gmra.mxu3 %v5302_v52  ;;  %2124 = vmatpush.bf16.msra.mxu2 %v4035_v59  ;;  %6018 = vst [vmem:[#allocation28_spill] sm:$0xff] %v5398_v21  ;;  %v5402_v23 = vor.u32 %v4379_v18, %v3560_v19  ;;  %v3694_v30 = vld [vmem:[#allocation5 + $0xf8] sm:$0xf]  ;;  %v4015_v31 = vor.u32 %v4495_v29, %v4014_v28  ;;  %v4415_v32 = vld [vmem:[#allocation5 + $0x108] sm:$0xf0]  ;;  %s5779_s16 = scalar_lea.vmem [#allocation12], %s3434_s24 }
  0x8f   : > { %2173 = vmatpush.bf16.msra.mxu3 %v4195_v0  ;;  %6019 = vst [vmem:[#allocation29_spill] sm:$0xff] %v5400_v22  ;;  %v4174_v33 = vld [vmem:[#allocation5 + $0x4b8] sm:$0xf]  ;;  %v4535_v34 = vld [vmem:[#allocation5 + $0x4c8] sm:$0xf0]  ;;  %v3695_v35 = vor.u32 %v4415_v32, %v3694_v30  ;;  %s4338_s15 = sshll.u32 %s3171_s12, 2 }
  0x90   : > { %6020 = vst [vmem:[#allocation30_spill] sm:$0xff] %v5402_v23  ;;  %v4175_v36 = vor.u32 %v4535_v34, %v4174_v33  ;;  %v5408_v37 = vld [vmem:[#allocation7] sm:$0x1f]  ;;  %v3854_v38 = vld [vmem:[#allocation5 + $0x238] sm:$0xf]  ;;  %s3173_s23 = scalar_lea.hbm %s5965_s5, %s4338_s15  ;;  %s3174_s17 = sshll.u32 %s5505_s4, 4  ;;  %s3175_s17 = int_to_ptr.vmem [resolvable:$true] %s3174_s17 }
  0x91   : > { %2027 = vmatpush.bf16.msra.mxu0 %v3695_v35  ;;  %v4455_v39 = vld [vmem:[#allocation5 + $0x248] sm:$0xf0]  ;;  %v5411_v56 = vperm.slane %v5408_v37, 0  ;;  %v3994_v62 = vld [vmem:[#allocation5 + $0x350] sm:$0xf]  ;;  %s3176_s3 = sshll.u32 %s3173_s23, 4  ;;  %s3177_s3 = int_to_ptr.hbm [resolvable:$true] %s3176_s3 }
  0x92   : > { %2125 = vmatpush.bf16.msra.mxu2 %v4015_v31  ;;  %v3855_v55 = vor.u32 %v4455_v39, %v3854_v38  ;;  %v4490_v63 = vld [vmem:[#allocation5 + $0x360] sm:$0xf0]  ;;  %v3674_v0 = vld [vmem:[#allocation5 + $0xd0] sm:$0xf]  ;;  %s5790_s14 = scalar_lea.vmem [#allocation14], %s3434_s24  ;;  %s3149_s22 = scalar_lea.sflag [#allocation4], %s5228_s1 }
  0x93   : > { %2174 = vmatpush.bf16.msra.mxu3 %v4175_v36  ;;  %v3995_v1 = vor.u32 %v4490_v63, %v3994_v62  ;;  %v4410_v2 = vld [vmem:[#allocation5 + $0xe0] sm:$0xf0]  ;;  %v4154_v3 = vld [vmem:[#allocation5 + $0x490] sm:$0xf]  ;;  %v3654_v62 = vld [vmem:[#allocation5 + $0xa8] sm:$0xf] }
  0x94   : > { %2076 = vmatpush.bf16.msra.mxu1 %v3855_v55  ;;  %v4530_v4 = vld [vmem:[#allocation5 + $0x4a0] sm:$0xf0]  ;;  %v3675_v6 = vor.u32 %v4410_v2, %v3674_v0  ;;  %v3834_v30 = vld [vmem:[#allocation5 + $0x210] sm:$0xf]  ;;  %v4405_v0 = vld [vmem:[#allocation5 + $0xb8] sm:$0xf0] }
  0x95   : > { %v4155_v7 = vor.u32 %v4530_v4, %v4154_v3  ;;  %v4450_v31 = vld [vmem:[#allocation5 + $0x220] sm:$0xf0]  ;;  %v4525_v2 = vld [vmem:[#allocation5 + $0x478] sm:$0xf0]  ;;  %v3655_v4 = vor.u32 %v4405_v0, %v3654_v62  ;;  %v3634_v62 = vld [vmem:[#allocation5 + $0x80] sm:$0xf] }
  0x96   : > { %2126 = vmatpush.bf16.msra.mxu2 %v3995_v1  ;;  %2028 = vmatpush.bf16.msra.mxu0 %v3675_v6  ;;  %v3835_v33 = vor.u32 %v4450_v31, %v3834_v30  ;;  %v4134_v1 = vld [vmem:[#allocation5 + $0x468] sm:$0xf]  ;;  %v4445_v30 = vld [vmem:[#allocation5 + $0x1f8] sm:$0xf0]  ;;  %v4400_v0 = vld [vmem:[#allocation5 + $0x90] sm:$0xf0] }
  0x97   : > { %2175 = vmatpush.bf16.msra.mxu3 %v4155_v7  ;;  %s4880_s2 = sshra.s32 %s3177_s3, 4  ;;  %s4886_s10 = scalar_lea.hbm %s5965_s5, 1024  ;;  %s4881_s2 = int_to_ptr.hbm [resolvable:$true] %s4880_s2 }
  0x98   : > { %2077 = vmatpush.bf16.msra.mxu1 %v3835_v33  ;;  %s4882_s7 = scalar_lea.hbm %s4881_s2, 256  ;;  %p4887_p10 = scmp.lt.s32.totalorder %s4881_s2, %s5965_s5 }
  0x99   : > { %p4883_p1 = scmp.ne.s32.totalorder %s4881_s2, %s4882_s7  ;;  %p4888_p11 = scmp.lt.s32.totalorder %s4886_s10, %s4882_s7 }
  0x9a   : > { %2029 = vmatpush.bf16.msra.mxu0 %v3655_v4  ;;  %v3635_v4 = vor.u32 %v4400_v0, %v3634_v62  ;;  %v3934_v62 = vld [vmem:[#allocation5 + $0x2d8] sm:$0xf] }
  0x9b   : > { %1657 = vmatmul.bf16.gmra.mxu0 %v5316_v12  ;;  %v3614_v0 = vld [vmem:[#allocation5 + $0x58] sm:$0xf]  ;;  %p4884_p4 = pnand %p4883_p1, %p5200_p5  ;;  %p4889_p12 = por %p4888_p11, %p4887_p10 }
  0x9c   : > { %1706 = vmatmul.bf16.gmra.mxu1 %v5318_v13 }
  0x9d   : > { %1755 = vmatmul.bf16.gmra.mxu2 %v5320_v14  ;;  %p4885_p8 = pneg %p4884_p4 }
  0x9e   : > { %1804 = vmatmul.bf16.gmra.mxu3 %v5322_v15  ;;  %2030 = vmatpush.bf16.msra.mxu0 %v3635_v4  ;;  %v4515_v4 = vld [vmem:[#allocation5 + $0x428] sm:$0xf0] }
  0x9f   : > { %p4890_p13 = pnand %p4889_p12, %p4885_p8 }
  0xab   : > { %1662 = vmatmul.bf16.gmra.mxu0 %v5336_v40 }
  0xac   : > { %1711 = vmatmul.bf16.gmra.mxu1 %v5338_v41 }
  0xad   : > { %1760 = vmatmul.bf16.gmra.mxu2 %v5340_v42 }
  0xae   : > { %1809 = vmatmul.bf16.gmra.mxu3 %v5342_v43 }
  0xbb   : > { %1667 = vmatmul.bf16.gmra.mxu0 %v5356_v8 }
  0xbc   : > { %1716 = vmatmul.bf16.gmra.mxu1 %v5358_v9 }
  0xbd   : > { %1765 = vmatmul.bf16.gmra.mxu2 %v5360_v10 }
  0xbe   : > { %1814 = vmatmul.bf16.gmra.mxu3 %v5362_v11 }
  0xcb   : > { %1672 = vmatmul.bf16.gmra.mxu0 %v5376_v44 }
  0xcc   : > { %1721 = vmatmul.bf16.gmra.mxu1 %v5378_v45 }
  0xcd   : > { %1770 = vmatmul.bf16.gmra.mxu2 %v5380_v46 }
  0xce   : > { %1819 = vmatmul.bf16.gmra.mxu3 %v5382_v47 }
  0xdb   : > { %1677 = vmatmul.bf16.gmra.mxu0 %v5396_v20 }
  0xdc   : > { %1726 = vmatmul.bf16.gmra.mxu1 %v5398_v21 }
  0xdd   : > { %1775 = vmatmul.bf16.gmra.mxu2 %v5400_v22 }
  0xde   : > { %1824 = vmatmul.bf16.gmra.mxu3 %v5402_v23 }
  0xe8   : > { %v1643_v58 = vpop.f32.mrf.mxu0 }
  0xe9   : > { %v1644_v59 = vadd.f32 %v1643_v58, %v5411_v56  ;;  %v1692_v60 = vpop.f32.mrf.mxu1 }
  0xeb   : > { %v1693_v61 = vadd.f32 %v1692_v60, %v1644_v59  ;;  %1838 = vmatmul.bf16.vlgmr.msrb.gmra.mxu0 %v5256_v48  ;;  %v3974_v60 = vld [vmem:[#allocation5 + $0x328] sm:$0xf] }
  0xec   : > { %1887 = vmatmul.bf16.vlgmr.msrb.gmra.mxu1 %v5258_v53 }
  0xed   : > { %1936 = vmatmul.bf16.vlgmr.msrb.gmra.mxu2 %v5260_v54 }
  0xee   : > { %1985 = vmatmul.bf16.vlgmr.msrb.gmra.mxu3 %v5262_v57 }
  0xf0   : > { %v1741_v5 = vpop.f32.mrf.mxu2  ;;  %v1645_v18 = vpop.f32.mrf.mxu0 }
  0xf1   : > { %v1742_v16 = vadd.f32 %v1741_v5, %v1693_v61  ;;  %v1790_v17 = vpop.f32.mrf.mxu3  ;;  %v1646_v19 = vadd.f32 %v1645_v18, %v5411_v56  ;;  %v1694_v28 = vpop.f32.mrf.mxu1  ;;  %v4485_v61 = vld [vmem:[#allocation5 + $0x338] sm:$0xf0]  ;;  %v4135_v5 = vor.u32 %v4525_v2, %v4134_v1  ;;  %v4114_v1 = vld [vmem:[#allocation5 + $0x440] sm:$0xf]  ;;  %v4520_v2 = vld [vmem:[#allocation5 + $0x450] sm:$0xf0] }
  0xf2   : > { %v3975_v63 = vor.u32 %v4485_v61, %v3974_v60  ;;  %v3954_v60 = vld [vmem:[#allocation5 + $0x300] sm:$0xf]  ;;  %v4480_v61 = vld [vmem:[#allocation5 + $0x310] sm:$0xf0] }
  0xf3   : > { %v5419_v29 = vadd.f32 %v1790_v17, %v1742_v16  ;;  %v1695_v32 = vadd.f32 %v1694_v28, %v1646_v19  ;;  %2176 = vmatpush.bf16.msra.mxu3 %v4135_v5  ;;  %v3814_v28 = vld [vmem:[#allocation5 + $0x1e8] sm:$0xf]  ;;  %v4115_v5 = vor.u32 %v4520_v2, %v4114_v1  ;;  %v4395_v2 = vld [vmem:[#allocation5 + $0x68] sm:$0xf0] }
  0xf4   : > { %2127 = vmatpush.bf16.msra.mxu2 %v3975_v63  ;;  %v3955_v63 = vor.u32 %v4480_v61, %v3954_v60 }
  0xf7   : > { %2177 = vmatpush.bf16.msra.mxu3 %v4115_v5 }
  0xf8   : > { %v1743_v34 = vpop.f32.mrf.mxu2  ;;  %v1648_v38 = vpop.f32.mrf.mxu0  ;;  %2128 = vmatpush.bf16.msra.mxu2 %v3955_v63  ;;  %v4475_v63 = vld [vmem:[#allocation5 + $0x2e8] sm:$0xf0] }
  0xf9   : > { %v1744_v35 = vadd.f32 %v1743_v34, %v1695_v32  ;;  %v1792_v36 = vpop.f32.mrf.mxu3  ;;  %v1649_v39 = vadd.f32 %v1648_v38, %v5411_v56  ;;  %v1697_v55 = vpop.f32.mrf.mxu1  ;;  %v3815_v32 = vor.u32 %v4445_v30, %v3814_v28  ;;  %v3794_v30 = vld [vmem:[#allocation5 + $0x1c0] sm:$0xf]  ;;  %v3935_v1 = vor.u32 %v4475_v63, %v3934_v62 }
  0xfb   : > { %v5422_v58 = vadd.f32 %v1792_v36, %v1744_v35  ;;  %v1698_v59 = vadd.f32 %v1697_v55, %v1649_v39  ;;  %1843 = vmatmul.bf16.gmra.mxu0 %v5276_v24  ;;  %2078 = vmatpush.bf16.msra.mxu1 %v3815_v32 }
  0xfc   : > { %1892 = vmatmul.bf16.gmra.mxu1 %v5278_v25  ;;  %2129 = vmatpush.bf16.msra.mxu2 %v3935_v1 }
  0xfd   : > { %1941 = vmatmul.bf16.gmra.mxu2 %v5280_v26 }
  0xfe   : > { %1990 = vmatmul.bf16.gmra.mxu3 %v5282_v27 }
 0x100   : > { %v1746_v3 = vpop.f32.mrf.mxu2  ;;  %v1650_v16 = vpop.f32.mrf.mxu0 }
 0x101   : > { %v1747_v6 = vadd.f32 %v1746_v3, %v1698_v59  ;;  %v1795_v7 = vpop.f32.mrf.mxu3  ;;  %v1651_v17 = vadd.f32 %v1650_v16, %v5411_v56  ;;  %v1699_v18 = vpop.f32.mrf.mxu1 }
 0x103   : > { %v5429_v19 = vadd.f32 %v1795_v7, %v1747_v6  ;;  %v1700_v31 = vadd.f32 %v1699_v18, %v1651_v17 }
 0x108   : > { %v1748_v33 = vpop.f32.mrf.mxu2  ;;  %v1653_v36 = vpop.f32.mrf.mxu0 }
 0x109   : > { %v1749_v34 = vadd.f32 %v1748_v33, %v1700_v31  ;;  %v1797_v35 = vpop.f32.mrf.mxu3  ;;  %v1654_v38 = vadd.f32 %v1653_v36, %v5411_v56  ;;  %v1702_v39 = vpop.f32.mrf.mxu1  ;;  %v4440_v31 = vld [vmem:[#allocation5 + $0x1d0] sm:$0xf0] }
 0x10a   : > { %v3795_v33 = vor.u32 %v4440_v31, %v3794_v30 }
 0x10b   : > { %v5432_v55 = vadd.f32 %v1797_v35, %v1749_v34  ;;  %v1703_v59 = vadd.f32 %v1702_v39, %v1654_v38  ;;  %1848 = vmatmul.bf16.gmra.mxu0 %v5296_v49 }
 0x10c   : > { %1897 = vmatmul.bf16.gmra.mxu1 %v5298_v50 }
 0x10d   : > { %1946 = vmatmul.bf16.gmra.mxu2 %v5300_v51  ;;  %2079 = vmatpush.bf16.msra.mxu1 %v3795_v33  ;;  %v3774_v33 = vld [vmem:[#allocation5 + $0x198] sm:$0xf] }
 0x10e   : > { %1995 = vmatmul.bf16.gmra.mxu3 %v5302_v52 }
 0x110   : > { %v1751_v3 = vpop.f32.mrf.mxu2  ;;  %v1655_v16 = vpop.f32.mrf.mxu0 }
 0x111   : > { %v1752_v6 = vadd.f32 %v1751_v3, %v1703_v59  ;;  %v1800_v7 = vpop.f32.mrf.mxu3  ;;  %v1656_v17 = vadd.f32 %v1655_v16, %v5411_v56  ;;  %v1704_v18 = vpop.f32.mrf.mxu1  ;;  %v4094_v3 = vld [vmem:[#allocation5 + $0x418] sm:$0xf] }
 0x113   : > { %v5439_v28 = vadd.f32 %v1800_v7, %v1752_v6  ;;  %v1705_v32 = vadd.f32 %v1704_v18, %v1656_v17  ;;  %v3615_v6 = vor.u32 %v4395_v2, %v3614_v0  ;;  %v4095_v7 = vor.u32 %v4515_v4, %v4094_v3  ;;  %v3914_v2 = vld [vmem:[#allocation5 + $0x2b0] sm:$0xf]  ;;  %v4470_v3 = vld [vmem:[#allocation5 + $0x2c0] sm:$0xf0] }
 0x114   : > { %v3594_v4 = vld [vmem:[#allocation5 + $0x30] sm:$0xf] }
 0x115   : > { %2031 = vmatpush.bf16.msra.mxu0 %v3615_v6  ;;  %2178 = vmatpush.bf16.msra.mxu3 %v4095_v7  ;;  %v4390_v6 = vld [vmem:[#allocation5 + $0x40] sm:$0xf0]  ;;  %v4074_v7 = vld [vmem:[#allocation5 + $0x3f0] sm:$0xf] }
 0x118   : > { %v1753_v34 = vpop.f32.mrf.mxu2  ;;  %v1658_v38 = vpop.f32.mrf.mxu0 }
 0x119   : > { %v1754_v35 = vadd.f32 %v1753_v34, %v1705_v32  ;;  %v1802_v36 = vpop.f32.mrf.mxu3  ;;  %v1659_v39 = vadd.f32 %v1658_v38, %v5411_v56  ;;  %v1707_v59 = vpop.f32.mrf.mxu1  ;;  %v4435_v34 = vld [vmem:[#allocation5 + $0x1a8] sm:$0xf0] }
 0x11b   : > { %v5442_v60 = vadd.f32 %v1802_v36, %v1754_v35  ;;  %v1708_v61 = vadd.f32 %v1707_v59, %v1659_v39  ;;  %1853 = vmatmul.bf16.gmra.mxu0 %v5316_v12  ;;  %v3775_v36 = vor.u32 %v4435_v34, %v3774_v33 }
 0x11c   : > { %1902 = vmatmul.bf16.gmra.mxu1 %v5318_v13 }
 0x11d   : > { %1951 = vmatmul.bf16.gmra.mxu2 %v5320_v14  ;;  %2080 = vmatpush.bf16.msra.mxu1 %v3775_v36 }
 0x11e   : > { %2000 = vmatmul.bf16.gmra.mxu3 %v5322_v15 }
 0x120   : > { %v1756_v5 = vpop.f32.mrf.mxu2  ;;  %v1660_v18 = vpop.f32.mrf.mxu0 }
 0x121   : > { %v1757_v16 = vadd.f32 %v1756_v5, %v1708_v61  ;;  %v1805_v17 = vpop.f32.mrf.mxu3  ;;  %v1661_v30 = vadd.f32 %v1660_v18, %v5411_v56  ;;  %v1709_v31 = vpop.f32.mrf.mxu1  ;;  %v3915_v5 = vor.u32 %v4470_v3, %v3914_v2  ;;  %v3595_v18 = vor.u32 %v4390_v6, %v3594_v4 }
 0x123   : > { %v5449_v32 = vadd.f32 %v1805_v17, %v1757_v16  ;;  %v1710_v35 = vadd.f32 %v1709_v31, %v1661_v30  ;;  %v4510_v16 = vld [vmem:[#allocation5 + $0x400] sm:$0xf0]  ;;  %2130 = vmatpush.bf16.msra.mxu2 %v3915_v5  ;;  %2032 = vmatpush.bf16.msra.mxu0 %v3595_v18  ;;  %v3574_v18 = vld [vmem:[#allocation5 + $0x8] sm:$0xf] }
 0x124   : > { %v4075_v30 = vor.u32 %v4510_v16, %v4074_v7  ;;  %v3894_v16 = vld [vmem:[#allocation5 + $0x288] sm:$0xf] }
 0x126   : > { %2179 = vmatpush.bf16.msra.mxu3 %v4075_v30 }
 0x128   : > { %v1758_v38 = vpop.f32.mrf.mxu2  ;;  %v1663_v62 = vpop.f32.mrf.mxu0 }
 0x129   : > { %v1759_v39 = vadd.f32 %v1758_v38, %v1710_v35  ;;  %v1807_v59 = vpop.f32.mrf.mxu3  ;;  %v1664_v61 = vadd.f32 %v1663_v62, %v5411_v56  ;;  %v1712_v63 = vpop.f32.mrf.mxu1 }
 0x12b   : > { %v5452_v0 = vadd.f32 %v1807_v59, %v1759_v39  ;;  %v1713_v1 = vadd.f32 %v1712_v63, %v1664_v61  ;;  %1858 = vmatmul.bf16.gmra.mxu0 %v5336_v40  ;;  %v3754_v39 = vld [vmem:[#allocation5 + $0x170] sm:$0xf]  ;;  %v4430_v59 = vld [vmem:[#allocation5 + $0x180] sm:$0xf0] }
 0x12c   : > { %1907 = vmatmul.bf16.gmra.mxu1 %v5338_v41  ;;  %v3755_v61 = vor.u32 %v4430_v59, %v3754_v39 }
 0x12d   : > { %1956 = vmatmul.bf16.gmra.mxu2 %v5340_v42 }
 0x12e   : > { %2005 = vmatmul.bf16.gmra.mxu3 %v5342_v43  ;;  %2081 = vmatpush.bf16.msra.mxu1 %v3755_v61 }
 0x130   : > { %v1761_v17 = vpop.f32.mrf.mxu2  ;;  %v1665_v34 = vpop.f32.mrf.mxu0 }
 0x131   : > { %v1762_v31 = vadd.f32 %v1761_v17, %v1713_v1  ;;  %v1810_v33 = vpop.f32.mrf.mxu3  ;;  %v1666_v35 = vadd.f32 %v1665_v34, %v5411_v56  ;;  %v1714_v36 = vpop.f32.mrf.mxu1  ;;  %v4465_v17 = vld [vmem:[#allocation5 + $0x298] sm:$0xf0] }
 0x132   : > { %v3895_v30 = vor.u32 %v4465_v17, %v3894_v16  ;;  %v4505_v34 = vld [vmem:[#allocation5 + $0x3d8] sm:$0xf0] }
 0x133   : > { %v5459_v38 = vadd.f32 %v1810_v33, %v1762_v31  ;;  %v1715_v62 = vadd.f32 %v1714_v36, %v1666_v35  ;;  %v4385_v31 = vld [vmem:[#allocation5 + $0x18] sm:$0xf0]  ;;  %v4054_v33 = vld [vmem:[#allocation5 + $0x3c8] sm:$0xf] }
 0x134   : > { %v3575_v36 = vor.u32 %v4385_v31, %v3574_v18  ;;  %v4055_v39 = vor.u32 %v4505_v34, %v4054_v33  ;;  %2131 = vmatpush.bf16.msra.mxu2 %v3895_v30 }
 0x136   : > { %2033 = vmatpush.bf16.msra.mxu0 %v3575_v36  ;;  %2180 = vmatpush.bf16.msra.mxu3 %v4055_v39  ;;  %v4036_v36 = vld [vmem:[#allocation5 + $0x3b4] sm:$0xf0]  ;;  %v4418_v39 = vld [vmem:[#allocation5 + $0x124] sm:$0xf] }
 0x138   : > { %v1763_v63 = vpop.f32.mrf.mxu2  ;;  %v1668_v4 = vpop.f32.mrf.mxu0 }
 0x139   : > { %v1764_v2 = vadd.f32 %v1763_v63, %v1715_v62  ;;  %v1812_v3 = vpop.f32.mrf.mxu3  ;;  %v1669_v1 = vadd.f32 %v1668_v4, %v5411_v56  ;;  %v1717_v6 = vpop.f32.mrf.mxu1  ;;  %v3734_v4 = vld [vmem:[#allocation5 + $0x148] sm:$0xf] }
 0x13b   : > { %v5462_v5 = vadd.f32 %v1812_v3, %v1764_v2  ;;  %v1718_v7 = vadd.f32 %v1717_v6, %v1669_v1  ;;  %1863 = vmatmul.bf16.gmra.mxu0 %v5356_v8  ;;  %v4425_v1 = vld [vmem:[#allocation5 + $0x158] sm:$0xf0] }
 0x13c   : > { %1912 = vmatmul.bf16.gmra.mxu1 %v5358_v9  ;;  %v3735_v16 = vor.u32 %v4425_v1, %v3734_v4 }
 0x13d   : > { %1961 = vmatmul.bf16.gmra.mxu2 %v5360_v10 }
 0x13e   : > { %2010 = vmatmul.bf16.gmra.mxu3 %v5362_v11  ;;  %2082 = vmatpush.bf16.msra.mxu1 %v3735_v16 }
 0x140   : > { %v1766_v35 = vpop.f32.mrf.mxu2  ;;  %v1670_v61 = vpop.f32.mrf.mxu0 }
 0x141   : > { %v1767_v59 = vadd.f32 %v1766_v35, %v1718_v7  ;;  %v1815_v62 = vpop.f32.mrf.mxu3  ;;  %v1671_v63 = vadd.f32 %v1670_v61, %v5411_v56  ;;  %v1719_v2 = vpop.f32.mrf.mxu1  ;;  %v4498_v35 = vld [vmem:[#allocation5 + $0x3a4] sm:$0xf] }
 0x142   : > { %v4538_v61 = vld [vmem:[#allocation5 + $0x4e4] sm:$0xf] }
 0x143   : > { %v5469_v3 = vadd.f32 %v1815_v62, %v1767_v59  ;;  %v1720_v6 = vadd.f32 %v1719_v2, %v1671_v63  ;;  %v4039_v59 = vor.u32 %v4498_v35, %v4036_v36  ;;  %v3716_v62 = vld [vmem:[#allocation5 + $0x134] sm:$0xf0] }
 0x144   : > { %v4196_v63 = vld [vmem:[#allocation5 + $0x4f4] sm:$0xf0]  ;;  %v3719_v4 = vor.u32 %v4418_v39, %v3716_v62 }
 0x145   : > { %2320 = vmatpush.bf16.msrb.mxu2 %v4039_v59  ;;  %v3876_v35 = vld [vmem:[#allocation5 + $0x274] sm:$0xf0] }
 0x146   : > { %2222 = vmatpush.bf16.msrb.mxu0 %v3719_v4  ;;  %v4413_v4 = vld [vmem:[#allocation5 + $0xfc] sm:$0xf] }
 0x148   : > { %v1768_v17 = vpop.f32.mrf.mxu2  ;;  %v1673_v31 = vpop.f32.mrf.mxu0 }
 0x149   : > { %v1769_v11 = vadd.f32 %v1768_v17, %v1720_v6  ;;  %v1817_v18 = vpop.f32.mrf.mxu3  ;;  %v1674_v7 = vadd.f32 %v1673_v31, %v5411_v56  ;;  %v1722_v33 = vpop.f32.mrf.mxu1 }
 0x14b   : > { %v5472_v30 = vadd.f32 %v1817_v18, %v1769_v11  ;;  %v1723_v34 = vadd.f32 %v1722_v33, %v1674_v7  ;;  %1868 = vmatmul.bf16.gmra.mxu0 %v5376_v44  ;;  %v4199_v11 = vor.u32 %v4538_v61, %v4196_v63  ;;  %v4458_v33 = vld [vmem:[#allocation5 + $0x264] sm:$0xf]  ;;  %v4493_v63 = vld [vmem:[#allocation5 + $0x37c] sm:$0xf] }
 0x14c   : > { %1917 = vmatmul.bf16.gmra.mxu1 %v5378_v45 }
 0x14d   : > { %1966 = vmatmul.bf16.gmra.mxu2 %v5380_v46  ;;  %2369 = vmatpush.bf16.msrb.mxu3 %v4199_v11 }
 0x14e   : > { %2015 = vmatmul.bf16.gmra.mxu3 %v5382_v47  ;;  %v3879_v47 = vor.u32 %v4458_v33, %v3876_v35 }
 0x150   : > { %v1771_v2 = vpop.f32.mrf.mxu2  ;;  %v1675_v16 = vpop.f32.mrf.mxu0  ;;  %2271 = vmatpush.bf16.msrb.mxu1 %v3879_v47 }
 0x151   : > { %v1772_v1 = vadd.f32 %v1771_v2, %v1723_v34  ;;  %v1820_v6 = vpop.f32.mrf.mxu3  ;;  %v1676_v17 = vadd.f32 %v1675_v16, %v5411_v56  ;;  %v1724_v18 = vpop.f32.mrf.mxu1  ;;  %v4016_v2 = vld [vmem:[#allocation5 + $0x38c] sm:$0xf0]  ;;  %v4533_v16 = vld [vmem:[#allocation5 + $0x4bc] sm:$0xf] }
 0x153   : > { %v5479_v31 = vadd.f32 %v1820_v6, %v1772_v1  ;;  %v1725_v7 = vadd.f32 %v1724_v18, %v1676_v17  ;;  %v4019_v1 = vor.u32 %v4493_v63, %v4016_v2  ;;  %v3696_v6 = vld [vmem:[#allocation5 + $0x10c] sm:$0xf0] }
 0x154   : > { %v4176_v17 = vld [vmem:[#allocation5 + $0x4cc] sm:$0xf0]  ;;  %v3699_v18 = vor.u32 %v4413_v4, %v3696_v6 }
 0x155   : > { %2321 = vmatpush.bf16.msrb.mxu2 %v4019_v1  ;;  %v3856_v63 = vld [vmem:[#allocation5 + $0x24c] sm:$0xf0] }
 0x156   : > { %2223 = vmatpush.bf16.msrb.mxu0 %v3699_v18  ;;  %v3676_v18 = vld [vmem:[#allocation5 + $0xe4] sm:$0xf0] }
 0x158   : > { %v1773_v36 = vpop.f32.mrf.mxu2  ;;  %v1678_v39 = vpop.f32.mrf.mxu0 }
 0x159   : > { %v1774_v46 = vadd.f32 %v1773_v36, %v1725_v7  ;;  %v1822_v45 = vpop.f32.mrf.mxu3  ;;  %v1679_v34 = vadd.f32 %v1678_v39, %v5411_v56  ;;  %v1727_v62 = vpop.f32.mrf.mxu1  ;;  %v4179_v7 = vor.u32 %v4533_v16, %v4176_v17  ;;  %v3996_v17 = vld [vmem:[#allocation5 + $0x364] sm:$0xf0] }
 0x15b   : > { %v5482_v59 = vadd.f32 %v1822_v45, %v1774_v46  ;;  %v1728_v61 = vadd.f32 %v1727_v62, %v1679_v34  ;;  %1873 = vmatmul.bf16.gmra.mxu0 %v5396_v20  ;;  %2370 = vmatpush.bf16.msrb.mxu3 %v4179_v7  ;;  %v5492_v34 = vperm.slane %v5408_v37, 1  ;;  %v4453_v62 = vld [vmem:[#allocation5 + $0x23c] sm:$0xf]  ;;  %v4488_v37 = vld [vmem:[#allocation5 + $0x354] sm:$0xf] }
 0x15c   : > { %1922 = vmatmul.bf16.gmra.mxu1 %v5398_v21  ;;  %v4528_v7 = vld [vmem:[#allocation5 + $0x494] sm:$0xf] }
 0x15d   : > { %1971 = vmatmul.bf16.gmra.mxu2 %v5400_v22 }
 0x15e   : > { %2020 = vmatmul.bf16.gmra.mxu3 %v5402_v23 }
 0x160   : > { %v1776_v11 = vpop.f32.mrf.mxu2  ;;  %v1680_v46 = vpop.f32.mrf.mxu0 }
 0x161   : > { %v1777_v47 = vadd.f32 %v1776_v11, %v1728_v61  ;;  %v1825_v45 = vpop.f32.mrf.mxu3  ;;  %v1681_v33 = vadd.f32 %v1680_v46, %v5411_v56  ;;  %v1729_v35 = vpop.f32.mrf.mxu1  ;;  %v3859_v61 = vor.u32 %v4453_v62, %v3856_v63  ;;  %v3999_v46 = vor.u32 %v4488_v37, %v3996_v17 }
 0x163   : > { %v5489_v36 = vadd.f32 %v1825_v45, %v1777_v47  ;;  %v1730_v39 = vadd.f32 %v1729_v35, %v1681_v33  ;;  %2272 = vmatpush.bf16.msrb.mxu1 %v3859_v61  ;;  %v4408_v47 = vld [vmem:[#allocation5 + $0xd4] sm:$0xf]  ;;  %v4156_v33 = vld [vmem:[#allocation5 + $0x4a4] sm:$0xf0]  ;;  %2322 = vmatpush.bf16.msrb.mxu2 %v3999_v46 }
 0x164   : > { %v3679_v62 = vor.u32 %v4408_v47, %v3676_v18  ;;  %v4159_v63 = vor.u32 %v4528_v7, %v4156_v33 }
 0x166   : > { %2224 = vmatpush.bf16.msrb.mxu0 %v3679_v62  ;;  %2371 = vmatpush.bf16.msrb.mxu3 %v4159_v63 }
 0x168   : > { %v1778_v2 = vpop.f32.mrf.mxu2  ;;  %v1839_v4 = vpop.f32.mrf.mxu0 }
 0x169   : > { %v1779_v11 = vadd.f32 %v1778_v2, %v1730_v39  ;;  %v1827_v23 = vpop.f32.mrf.mxu3  ;;  %v1840_v6 = vadd.f32 %v1839_v4, %v5492_v34  ;;  %v1888_v56 = vpop.f32.mrf.mxu1 }
 0x16b   : > { %v5495_v1 = vadd.f32 %v1827_v23, %v1779_v11  ;;  %2034 = vmatmul.bf16.vlgmr.msra.gmra.mxu0 %v5256_v48  ;;  %v1889_v16 = vadd.f32 %v1888_v56, %v1840_v6  ;;  %v4448_v56 = vld [vmem:[#allocation5 + $0x214] sm:$0xf] }
 0x16c   : > { %2083 = vmatmul.bf16.vlgmr.msra.gmra.mxu1 %v5258_v53 }
 0x16d   : > { %2132 = vmatmul.bf16.vlgmr.msra.gmra.mxu2 %v5260_v54 }
 0x16e   : > { %2181 = vmatmul.bf16.vlgmr.msra.gmra.mxu3 %v5262_v57 }
 0x170   : > { %v1937_v45 = vpop.f32.mrf.mxu2  ;;  %v1841_v39 = vpop.f32.mrf.mxu0 }
 0x171   : > { %v1938_v23 = vadd.f32 %v1937_v45, %v1889_v16  ;;  %v1986_v35 = vpop.f32.mrf.mxu3  ;;  %v1890_v2 = vpop.f32.mrf.mxu1  ;;  %v1842_v11 = vadd.f32 %v1841_v39, %v5492_v34  ;;  %v3836_v16 = vld [vmem:[#allocation5 + $0x224] sm:$0xf0]  ;;  %v3976_v39 = vld [vmem:[#allocation5 + $0x33c] sm:$0xf0] }
 0x172   : > { %v3839_v17 = vor.u32 %v4448_v56, %v3836_v16  ;;  %v4136_v16 = vld [vmem:[#allocation5 + $0x47c] sm:$0xf0] }
 0x173   : > { %v1987_v61 = vadd.f32 %v1986_v35, %v1938_v23  ;;  %v1891_v6 = vadd.f32 %v1890_v2, %v1842_v11  ;;  %v4483_v35 = vld [vmem:[#allocation5 + $0x32c] sm:$0xf] }
 0x174   : > { %2273 = vmatpush.bf16.msrb.mxu1 %v3839_v17  ;;  %v3979_v63 = vor.u32 %v4483_v35, %v3976_v39  ;;  %v4403_v2 = vld [vmem:[#allocation5 + $0xac] sm:$0xf] }
 0x175   : > { %v3020_v4 = vpack.c.bf16 %v1987_v61, %v5419_v29  ;;  %v3656_v61 = vld [vmem:[#allocation5 + $0xbc] sm:$0xf0]  ;;  %v4523_v11 = vld [vmem:[#allocation5 + $0x46c] sm:$0xf] }
 0x176   : > { %2323 = vmatpush.bf16.msrb.mxu2 %v3979_v63  ;;  %v4139_v17 = vor.u32 %v4523_v11, %v4136_v16  ;;  %v4398_v16 = vld [vmem:[#allocation5 + $0x84] sm:$0xf] }
 0x177   : > { %3052 = vst [vmem:[%s5505_s4] sm:$0xff] %v3020_v4 }
 0x178   : > { %v1939_v37 = vpop.f32.mrf.mxu2  ;;  %v1844_v46 = vpop.f32.mrf.mxu0  ;;  %2372 = vmatpush.bf16.msrb.mxu3 %v4139_v17  ;;  %v4518_v17 = vld [vmem:[#allocation5 + $0x444] sm:$0xf] }
 0x179   : > { %v1940_v47 = vadd.f32 %v1939_v37, %v1891_v6  ;;  %v1988_v45 = vpop.f32.mrf.mxu3  ;;  %v1845_v18 = vadd.f32 %v1844_v46, %v5492_v34  ;;  %v1893_v7 = vpop.f32.mrf.mxu1 }
 0x17b   : > { %v1989_v33 = vadd.f32 %v1988_v45, %v1940_v47  ;;  %2039 = vmatmul.bf16.gmra.mxu0 %v5276_v24  ;;  %v1894_v23 = vadd.f32 %v1893_v7, %v1845_v18  ;;  %v4443_v7 = vld [vmem:[#allocation5 + $0x1ec] sm:$0xf] }
 0x17c   : > { %2088 = vmatmul.bf16.gmra.mxu1 %v5278_v25 }
 0x17d   : > { %v3022_v29 = vpack.c.bf16 %v1989_v33, %v5422_v58  ;;  %2137 = vmatmul.bf16.gmra.mxu2 %v5280_v26  ;;  %v3659_v58 = vor.u32 %v4403_v2, %v3656_v61  ;;  %v3816_v33 = vld [vmem:[#allocation5 + $0x1fc] sm:$0xf0] }
 0x17e   : > { %2186 = vmatmul.bf16.gmra.mxu3 %v5282_v27 }
 0x17f   : > { %3054 = vst [vmem:[%s5505_s4 + $0x10] sm:$0xff] %v3022_v29  ;;  %2225 = vmatpush.bf16.msrb.mxu0 %v3659_v58 }
 0x180   : > { %v1942_v62 = vpop.f32.mrf.mxu2  ;;  %v1846_v56 = vpop.f32.mrf.mxu0 }
 0x181   : > { %v1943_v4 = vadd.f32 %v1942_v62, %v1894_v23  ;;  %v1991_v6 = vpop.f32.mrf.mxu3  ;;  %v1895_v37 = vpop.f32.mrf.mxu1  ;;  %v1847_v45 = vadd.f32 %v1846_v56, %v5492_v34  ;;  %v3819_v23 = vor.u32 %v4443_v7, %v3816_v33 }
 0x183   : > { %v1992_v47 = vadd.f32 %v1991_v6, %v1943_v4  ;;  %v1896_v18 = vadd.f32 %v1895_v37, %v1847_v45  ;;  %2274 = vmatpush.bf16.msrb.mxu1 %v3819_v23  ;;  %v4478_v4 = vld [vmem:[#allocation5 + $0x304] sm:$0xf]  ;;  %v3956_v6 = vld [vmem:[#allocation5 + $0x314] sm:$0xf0] }
 0x184   : > { %v3959_v58 = vor.u32 %v4478_v4, %v3956_v6  ;;  %v3636_v37 = vld [vmem:[#allocation5 + $0x94] sm:$0xf0] }
 0x185   : > { %v3024_v46 = vpack.c.bf16 %v1992_v47, %v5429_v19 }
 0x186   : > { %2324 = vmatpush.bf16.msrb.mxu2 %v3959_v58 }
 0x187   : > { %3056 = vst [vmem:[%s5505_s4 + $0x20] sm:$0xff] %v3024_v46 }
 0x188   : > { %v1944_v29 = vpop.f32.mrf.mxu2  ;;  %v1849_v62 = vpop.f32.mrf.mxu0 }
 0x189   : > { %v1945_v35 = vadd.f32 %v1944_v29, %v1896_v18  ;;  %v1993_v39 = vpop.f32.mrf.mxu3  ;;  %v1850_v63 = vadd.f32 %v1849_v62, %v5492_v34  ;;  %v1898_v2 = vpop.f32.mrf.mxu1  ;;  %v4116_v18 = vld [vmem:[#allocation5 + $0x454] sm:$0xf0]  ;;  %v4438_v62 = vld [vmem:[#allocation5 + $0x1c4] sm:$0xf] }
 0x18a   : > { %v4119_v33 = vor.u32 %v4518_v17, %v4116_v18  ;;  %v3936_v17 = vld [vmem:[#allocation5 + $0x2ec] sm:$0xf0]  ;;  %v4513_v18 = vld [vmem:[#allocation5 + $0x41c] sm:$0xf] }
 0x18b   : > { %v1994_v61 = vadd.f32 %v1993_v39, %v1945_v35  ;;  %2044 = vmatmul.bf16.gmra.mxu0 %v5296_v49  ;;  %v1899_v19 = vadd.f32 %v1898_v2, %v1850_v63  ;;  %v3796_v63 = vld [vmem:[#allocation5 + $0x1d4] sm:$0xf0] }
 0x18c   : > { %2093 = vmatmul.bf16.gmra.mxu1 %v5298_v50  ;;  %2373 = vmatpush.bf16.msrb.mxu3 %v4119_v33 }
 0x18d   : > { %v3026_v11 = vpack.c.bf16 %v1994_v61, %v5432_v55  ;;  %2142 = vmatmul.bf16.gmra.mxu2 %v5300_v51  ;;  %v3639_v55 = vor.u32 %v4398_v16, %v3636_v37  ;;  %v3799_v61 = vor.u32 %v4438_v62, %v3796_v63  ;;  %v4473_v37 = vld [vmem:[#allocation5 + $0x2dc] sm:$0xf] }
 0x18e   : > { %2191 = vmatmul.bf16.gmra.mxu3 %v5302_v52 }
 0x18f   : > { %3058 = vst [vmem:[%s5505_s4 + $0x30] sm:$0xff] %v3026_v11  ;;  %2226 = vmatpush.bf16.msrb.mxu0 %v3639_v55  ;;  %2275 = vmatpush.bf16.msrb.mxu1 %v3799_v61  ;;  %v3616_v55 = vld [vmem:[#allocation5 + $0x6c] sm:$0xf0] }
 0x190   : > { %v1947_v56 = vpop.f32.mrf.mxu2  ;;  %v1851_v46 = vpop.f32.mrf.mxu0 }
 0x191   : > { %v1948_v47 = vadd.f32 %v1947_v56, %v1899_v19  ;;  %v1996_v45 = vpop.f32.mrf.mxu3  ;;  %v1900_v7 = vpop.f32.mrf.mxu1  ;;  %v1852_v23 = vadd.f32 %v1851_v46, %v5492_v34  ;;  %v4393_v46 = vld [vmem:[#allocation5 + $0x5c] sm:$0xf] }
 0x193   : > { %v1997_v29 = vadd.f32 %v1996_v45, %v1948_v47  ;;  %v1901_v39 = vadd.f32 %v1900_v7, %v1852_v23  ;;  %v3939_v45 = vor.u32 %v4473_v37, %v3936_v17  ;;  %v4096_v23 = vld [vmem:[#allocation5 + $0x42c] sm:$0xf0] }
 0x195   : > { %v3028_v35 = vpack.c.bf16 %v1997_v29, %v5439_v28  ;;  %2325 = vmatpush.bf16.msrb.mxu2 %v3939_v45  ;;  %v4468_v45 = vld [vmem:[#allocation5 + $0x2b4] sm:$0xf] }
 0x197   : > { %3060 = vst [vmem:[%s5505_s4 + $0x40] sm:$0xff] %v3028_v35 }
 0x198   : > { %v1949_v2 = vpop.f32.mrf.mxu2  ;;  %v1854_v4 = vpop.f32.mrf.mxu0 }
 0x199   : > { %v1950_v11 = vadd.f32 %v1949_v2, %v1901_v39  ;;  %v1998_v19 = vpop.f32.mrf.mxu3  ;;  %v1855_v6 = vadd.f32 %v1854_v4, %v5492_v34  ;;  %v1903_v56 = vpop.f32.mrf.mxu1  ;;  %v4099_v39 = vor.u32 %v4513_v18, %v4096_v23 }
 0x19b   : > { %v1999_v58 = vadd.f32 %v1998_v19, %v1950_v11  ;;  %2049 = vmatmul.bf16.gmra.mxu0 %v5316_v12  ;;  %v1904_v28 = vadd.f32 %v1903_v56, %v1855_v6  ;;  %2374 = vmatpush.bf16.msrb.mxu3 %v4099_v39  ;;  %v4433_v11 = vld [vmem:[#allocation5 + $0x19c] sm:$0xf]  ;;  %v3776_v19 = vld [vmem:[#allocation5 + $0x1ac] sm:$0xf0]  ;;  %v4076_v39 = vld [vmem:[#allocation5 + $0x404] sm:$0xf0] }
 0x19c   : > { %2098 = vmatmul.bf16.gmra.mxu1 %v5318_v13  ;;  %v3779_v6 = vor.u32 %v4433_v11, %v3776_v19 }
 0x19d   : > { %v3030_v16 = vpack.c.bf16 %v1999_v58, %v5442_v60  ;;  %2147 = vmatmul.bf16.gmra.mxu2 %v5320_v14  ;;  %v3619_v60 = vor.u32 %v4393_v46, %v3616_v55  ;;  %v3916_v46 = vld [vmem:[#allocation5 + $0x2c4] sm:$0xf0] }
 0x19e   : > { %2196 = vmatmul.bf16.gmra.mxu3 %v5322_v15  ;;  %2276 = vmatpush.bf16.msrb.mxu1 %v3779_v6  ;;  %v3919_v18 = vor.u32 %v4468_v45, %v3916_v46  ;;  %v3756_v6 = vld [vmem:[#allocation5 + $0x184] sm:$0xf0] }
 0x19f   : > { %3062 = vst [vmem:[%s5505_s4 + $0x50] sm:$0xff] %v3030_v16  ;;  %2227 = vmatpush.bf16.msrb.mxu0 %v3619_v60  ;;  %v6021_v46 = vld [vmem:[#allocation24_spill] sm:$0xff] }
 0x1a0   : > { %v1952_v47 = vpop.f32.mrf.mxu2  ;;  %v1856_v29 = vpop.f32.mrf.mxu0  ;;  %2326 = vmatpush.bf16.msrb.mxu2 %v3919_v18  ;;  %v3896_v18 = vld [vmem:[#allocation5 + $0x29c] sm:$0xf0] }
 0x1a1   : > { %v1953_v7 = vadd.f32 %v1952_v47, %v1904_v28  ;;  %v2001_v33 = vpop.f32.mrf.mxu3  ;;  %v1905_v35 = vpop.f32.mrf.mxu1  ;;  %v1857_v63 = vadd.f32 %v1856_v29, %v5492_v34  ;;  %v4508_v29 = vld [vmem:[#allocation5 + $0x3f4] sm:$0xf] }
 0x1a3   : > { %v2002_v62 = vadd.f32 %v2001_v33, %v1953_v7  ;;  %v1906_v61 = vadd.f32 %v1905_v35, %v1857_v63  ;;  %v4388_v7 = vld [vmem:[#allocation5 + $0x34] sm:$0xf]  ;;  %v3596_v33 = vld [vmem:[#allocation5 + $0x44] sm:$0xf0]  ;;  %v4079_v63 = vor.u32 %v4508_v29, %v4076_v39  ;;  %v4383_v29 = vld [vmem:[#allocation5 + $0xc] sm:$0xf] }
 0x1a5   : > { %v3032_v2 = vpack.c.bf16 %v2002_v62, %v5449_v32  ;;  %2375 = vmatpush.bf16.msrb.mxu3 %v4079_v63 }
 0x1a7   : > { %3064 = vst [vmem:[%s5505_s4 + $0x60] sm:$0xff] %v3032_v2 }
 0x1a8   : > { %v1954_v4 = vpop.f32.mrf.mxu2  ;;  %v1859_v16 = vpop.f32.mrf.mxu0 }
 0x1a9   : > { %v1955_v56 = vadd.f32 %v1954_v4, %v1906_v61  ;;  %v2003_v58 = vpop.f32.mrf.mxu3  ;;  %v1860_v28 = vadd.f32 %v1859_v16, %v5492_v34  ;;  %v1908_v37 = vpop.f32.mrf.mxu1  ;;  %v4428_v4 = vld [vmem:[#allocation5 + $0x174] sm:$0xf] }
 0x1ab   : > { %v2004_v17 = vadd.f32 %v2003_v58, %v1955_v56  ;;  %2054 = vmatmul.bf16.gmra.mxu0 %v5336_v40  ;;  %v1909_v32 = vadd.f32 %v1908_v37, %v1860_v28  ;;  %v3759_v58 = vor.u32 %v4428_v4, %v3756_v6  ;;  %v4423_v6 = vld [vmem:[#allocation5 + $0x14c] sm:$0xf] }
 0x1ac   : > { %2103 = vmatmul.bf16.gmra.mxu1 %v5338_v41 }
 0x1ad   : > { %v3034_v47 = vpack.c.bf16 %v2004_v17, %v5452_v0  ;;  %2152 = vmatmul.bf16.gmra.mxu2 %v5340_v42  ;;  %v3599_v0 = vor.u32 %v4388_v7, %v3596_v33  ;;  %2277 = vmatpush.bf16.msrb.mxu1 %v3759_v58 }
 0x1ae   : > { %2201 = vmatmul.bf16.gmra.mxu3 %v5342_v43 }
 0x1af   : > { %3066 = vst [vmem:[%s5505_s4 + $0x70] sm:$0xff] %v3034_v47  ;;  %2228 = vmatpush.bf16.msrb.mxu0 %v3599_v0 }
 0x1b0   : > { %v1957_v55 = vpop.f32.mrf.mxu2  ;;  %v1861_v35 = vpop.f32.mrf.mxu0 }
 0x1b1   : > { %v1958_v60 = vadd.f32 %v1957_v55, %v1909_v32  ;;  %v2006_v23 = vpop.f32.mrf.mxu3  ;;  %v1910_v62 = vpop.f32.mrf.mxu1  ;;  %v1862_v61 = vadd.f32 %v1861_v35, %v5492_v34  ;;  %v4463_v55 = vld [vmem:[#allocation5 + $0x28c] sm:$0xf] }
 0x1b2   : > { %v3899_v33 = vor.u32 %v4463_v55, %v3896_v18  ;;  %v6022_v55 = vld [vmem:[#allocation25_spill] sm:$0xff]  ;;  %v6023_v18 = vld [vmem:[#allocation26_spill] sm:$0xff] }
 0x1b3   : > { %v2007_v2 = vadd.f32 %v2006_v23, %v1958_v60  ;;  %v1911_v19 = vadd.f32 %v1910_v62, %v1862_v61  ;;  %v3576_v60 = vld [vmem:[#allocation5 + $0x1c] sm:$0xf0]  ;;  %v4503_v23 = vld [vmem:[#allocation5 + $0x3cc] sm:$0xf] }
 0x1b4   : > { %v4056_v62 = vld [vmem:[#allocation5 + $0x3dc] sm:$0xf0]  ;;  %2327 = vmatpush.bf16.msrb.mxu2 %v3899_v33  ;;  %v4042_v33 = vld [vmem:[#allocation5 + $0x3a8] sm:$0xf] }
 0x1b5   : > { %v3036_v11 = vpack.c.bf16 %v2007_v2, %v5459_v38  ;;  %v4059_v2 = vor.u32 %v4503_v23, %v4056_v62 }
 0x1b7   : > { %3068 = vst [vmem:[%s5505_s4 + $0x80] sm:$0xff] %v3036_v11  ;;  %2376 = vmatpush.bf16.msrb.mxu3 %v4059_v2  ;;  %v4541_v2 = vld [vmem:[#allocation5 + $0x4f8] sm:$0xf0] }
 0x1b8   : > { %v1959_v56 = vpop.f32.mrf.mxu2  ;;  %v1864_v37 = vpop.f32.mrf.mxu0 }
 0x1b9   : > { %v1960_v16 = vadd.f32 %v1959_v56, %v1911_v19  ;;  %v2008_v28 = vpop.f32.mrf.mxu3  ;;  %v1865_v17 = vadd.f32 %v1864_v37, %v5492_v34  ;;  %v1913_v47 = vpop.f32.mrf.mxu1  ;;  %v3736_v56 = vld [vmem:[#allocation5 + $0x15c] sm:$0xf0] }
 0x1bb   : > { %v2009_v32 = vadd.f32 %v2008_v28, %v1960_v16  ;;  %2059 = vmatmul.bf16.gmra.mxu0 %v5356_v8  ;;  %v1914_v38 = vadd.f32 %v1913_v47, %v1865_v17  ;;  %v3739_v16 = vor.u32 %v4423_v6, %v3736_v56  ;;  %v3882_v6 = vld [vmem:[#allocation5 + $0x268] sm:$0xf]  ;;  %v4461_v56 = vld [vmem:[#allocation5 + $0x278] sm:$0xf0] }
 0x1bc   : > { %2108 = vmatmul.bf16.gmra.mxu1 %v5358_v9 }
 0x1bd   : > { %v3038_v45 = vpack.c.bf16 %v2009_v32, %v5462_v5  ;;  %2157 = vmatmul.bf16.gmra.mxu2 %v5360_v10  ;;  %v3579_v5 = vor.u32 %v4383_v29, %v3576_v60  ;;  %2278 = vmatpush.bf16.msrb.mxu1 %v3739_v16  ;;  %v4501_v29 = vld [vmem:[#allocation5 + $0x3b8] sm:$0xf0] }
 0x1be   : > { %2206 = vmatmul.bf16.gmra.mxu3 %v6021_v46  ;;  %v4043_v23 = vor.u32 %v4501_v29, %v4042_v33 }
 0x1bf   : > { %3070 = vst [vmem:[%s5505_s4 + $0x90] sm:$0xff] %v3038_v45  ;;  %2229 = vmatpush.bf16.msrb.mxu0 %v3579_v5 }
 0x1c0   : > { %v1962_v7 = vpop.f32.mrf.mxu2  ;;  %v1866_v39 = vpop.f32.mrf.mxu0  ;;  %2516 = vmatpush.bf16.msra.mxu2 %v4043_v23  ;;  %v4496_v23 = vld [vmem:[#allocation5 + $0x390] sm:$0xf0] }
 0x1c1   : > { %v1963_v35 = vadd.f32 %v1962_v7, %v1914_v38  ;;  %v2011_v0 = vpop.f32.mrf.mxu3  ;;  %v1915_v63 = vpop.f32.mrf.mxu1  ;;  %v1867_v11 = vadd.f32 %v1866_v39, %v5492_v34  ;;  %v6024_v7 = vld [vmem:[#allocation27_spill] sm:$0xff] }
 0x1c2   : > { %v4202_v39 = vld [vmem:[#allocation5 + $0x4e8] sm:$0xf] }
 0x1c3   : > { %v2012_v61 = vadd.f32 %v2011_v0, %v1963_v35  ;;  %v1916_v4 = vadd.f32 %v1915_v63, %v1867_v11  ;;  %v3722_v35 = vld [vmem:[#allocation5 + $0x128] sm:$0xf]  ;;  %v4421_v0 = vld [vmem:[#allocation5 + $0x138] sm:$0xf0]  ;;  %v4203_v11 = vor.u32 %v4541_v2, %v4202_v39  ;;  %v4416_v39 = vld [vmem:[#allocation5 + $0x110] sm:$0xf0] }
 0x1c5   : > { %v3040_v19 = vpack.c.bf16 %v2012_v61, %v5469_v3  ;;  %2565 = vmatpush.bf16.msra.mxu3 %v4203_v11 }
 0x1c7   : > { %3072 = vst [vmem:[%s5505_s4 + $0xa0] sm:$0xff] %v3040_v19 }
 0x1c8   : > { %v1964_v58 = vpop.f32.mrf.mxu2  ;;  %v1869_v17 = vpop.f32.mrf.mxu0 }
 0x1c9   : > { %v1965_v28 = vadd.f32 %v1964_v58, %v1916_v4  ;;  %v2013_v37 = vpop.f32.mrf.mxu3  ;;  %v1870_v47 = vadd.f32 %v1869_v17, %v5492_v34  ;;  %v1918_v32 = vpop.f32.mrf.mxu1  ;;  %v3883_v58 = vor.u32 %v4461_v56, %v3882_v6  ;;  %v3862_v56 = vld [vmem:[#allocation5 + $0x240] sm:$0xf] }
 0x1cb   : > { %v2014_v45 = vadd.f32 %v2013_v37, %v1965_v28  ;;  %2064 = vmatmul.bf16.gmra.mxu0 %v5376_v44  ;;  %v1919_v3 = vadd.f32 %v1918_v32, %v1870_v47  ;;  %2467 = vmatpush.bf16.msra.mxu1 %v3883_v58  ;;  %v4456_v58 = vld [vmem:[#allocation5 + $0x250] sm:$0xf0] }
 0x1cc   : > { %2113 = vmatmul.bf16.gmra.mxu1 %v6022_v55 }
 0x1cd   : > { %v3042_v38 = vpack.c.bf16 %v2014_v45, %v5472_v30  ;;  %2162 = vmatmul.bf16.gmra.mxu2 %v6023_v18  ;;  %v3723_v30 = vor.u32 %v4421_v0, %v3722_v35  ;;  %v3702_v35 = vld [vmem:[#allocation5 + $0x100] sm:$0xf] }
 0x1ce   : > { %2211 = vmatmul.bf16.gmra.mxu3 %v6024_v7 }
 0x1cf   : > { %3074 = vst [vmem:[%s5505_s4 + $0xb0] sm:$0xff] %v3042_v38  ;;  %2418 = vmatpush.bf16.msra.mxu0 %v3723_v30  ;;  %v4536_v30 = vld [vmem:[#allocation5 + $0x4d0] sm:$0xf0] }
 0x1d0   : > { %v1967_v60 = vpop.f32.mrf.mxu2  ;;  %v1871_v63 = vpop.f32.mrf.mxu0 }
 0x1d1   : > { %v1968_v5 = vadd.f32 %v1967_v60, %v1919_v3  ;;  %v2016_v62 = vpop.f32.mrf.mxu3  ;;  %v1920_v61 = vpop.f32.mrf.mxu1  ;;  %v1872_v4 = vadd.f32 %v1871_v63, %v5492_v34  ;;  %v4022_v60 = vld [vmem:[#allocation5 + $0x380] sm:$0xf]  ;;  %v3703_v63 = vor.u32 %v4416_v39, %v3702_v35  ;;  %v4491_v35 = vld [vmem:[#allocation5 + $0x368] sm:$0xf0] }
 0x1d2   : > { %v4023_v0 = vor.u32 %v4496_v23, %v4022_v60  ;;  %v4002_v23 = vld [vmem:[#allocation5 + $0x358] sm:$0xf] }
 0x1d3   : > { %v2017_v19 = vadd.f32 %v2016_v62, %v1968_v5  ;;  %v1921_v28 = vadd.f32 %v1920_v61, %v1872_v4  ;;  %v4182_v5 = vld [vmem:[#allocation5 + $0x4c0] sm:$0xf]  ;;  %2419 = vmatpush.bf16.msra.mxu0 %v3703_v63  ;;  %v4003_v39 = vor.u32 %v4491_v35, %v4002_v23  ;;  %v3662_v23 = vld [vmem:[#allocation5 + $0xb0] sm:$0xf] }
 0x1d4   : > { %2517 = vmatpush.bf16.msra.mxu2 %v4023_v0  ;;  %v4183_v11 = vor.u32 %v4536_v30, %v4182_v5  ;;  %v3682_v0 = vld [vmem:[#allocation5 + $0xd8] sm:$0xf]  ;;  %v4411_v5 = vld [vmem:[#allocation5 + $0xe8] sm:$0xf0] }
 0x1d5   : > { %v3044_v16 = vpack.c.bf16 %v2017_v19, %v5479_v31  ;;  %v6025_v31 = vld [vmem:[#allocation30_spill] sm:$0xff]  ;;  %v3683_v30 = vor.u32 %v4411_v5, %v3682_v0  ;;  %v4406_v0 = vld [vmem:[#allocation5 + $0xc0] sm:$0xf0] }
 0x1d6   : > { %2566 = vmatpush.bf16.msra.mxu3 %v4183_v11  ;;  %v4526_v5 = vld [vmem:[#allocation5 + $0x480] sm:$0xf0] }
 0x1d7   : > { %3076 = vst [vmem:[%s5505_s4 + $0xc0] sm:$0xff] %v3044_v16  ;;  %v3863_v16 = vor.u32 %v4456_v58, %v3862_v56  ;;  %2420 = vmatpush.bf16.msra.mxu0 %v3683_v30  ;;  %v3842_v56 = vld [vmem:[#allocation5 + $0x218] sm:$0xf]  ;;  %v4451_v58 = vld [vmem:[#allocation5 + $0x228] sm:$0xf0] }
 0x1d8   : > { %v1969_v37 = vpop.f32.mrf.mxu2  ;;  %v1874_v32 = vpop.f32.mrf.mxu0  ;;  %2518 = vmatpush.bf16.msra.mxu2 %v4003_v39  ;;  %v4142_v39 = vld [vmem:[#allocation5 + $0x470] sm:$0xf] }
 0x1d9   : > { %v1970_v17 = vadd.f32 %v1969_v37, %v1921_v28  ;;  %v2018_v47 = vpop.f32.mrf.mxu3  ;;  %v1875_v45 = vadd.f32 %v1874_v32, %v5492_v34  ;;  %v1923_v38 = vpop.f32.mrf.mxu1  ;;  %v5577_v37 = vld [vmem:[#allocation7] sm:$0x1f]  ;;  %2468 = vmatpush.bf16.msra.mxu1 %v3863_v16  ;;  %v4143_v30 = vor.u32 %v4526_v5, %v4142_v39  ;;  %v4122_v39 = vld [vmem:[#allocation5 + $0x448] sm:$0xf]  ;;  %v4521_v5 = vld [vmem:[#allocation5 + $0x458] sm:$0xf0] }
 0x1db   : > { %v2019_v3 = vadd.f32 %v2018_v47, %v1970_v17  ;;  %2069 = vmatmul.bf16.gmra.mxu0 %v5396_v20  ;;  %v1924_v29 = vadd.f32 %v1923_v38, %v1875_v45  ;;  %v5580_v17 = vperm.slane %v5577_v37, 2 }
 0x1dc   : > { %2118 = vmatmul.bf16.gmra.mxu1 %v5398_v21 }
 0x1dd   : > { %v3046_v33 = vpack.c.bf16 %v2019_v3, %v5482_v59  ;;  %2167 = vmatmul.bf16.gmra.mxu2 %v5400_v22 }
 0x1de   : > { %2216 = vmatmul.bf16.gmra.mxu3 %v6025_v31 }
 0x1df   : > { %3078 = vst [vmem:[%s5505_s4 + $0xd0] sm:$0xff] %v3046_v33 }
 0x1e0   : > { %v1972_v62 = vpop.f32.mrf.mxu2  ;;  %v1876_v59 = vpop.f32.mrf.mxu0 }
 0x1e1   : > { %v1973_v2 = vadd.f32 %v1972_v62, %v1924_v29  ;;  %v2021_v61 = vpop.f32.mrf.mxu3  ;;  %v1925_v19 = vpop.f32.mrf.mxu1  ;;  %v1877_v6 = vadd.f32 %v1876_v59, %v5492_v34  ;;  %v4162_v62 = vld [vmem:[#allocation5 + $0x498] sm:$0xf] }
 0x1e3   : > { %v2022_v4 = vadd.f32 %v2021_v61, %v1973_v2  ;;  %v1926_v47 = vadd.f32 %v1925_v19, %v1877_v6  ;;  %v4531_v2 = vld [vmem:[#allocation5 + $0x4a8] sm:$0xf0] }
 0x1e5   : > { %v3048_v28 = vpack.c.bf16 %v2022_v4, %v5489_v36 }
 0x1e7   : > { %3080 = vst [vmem:[%s5505_s4 + $0xe0] sm:$0xff] %v3048_v28  ;;  %v3843_v28 = vor.u32 %v4451_v58, %v3842_v56  ;;  %v4446_v56 = vld [vmem:[#allocation5 + $0x200] sm:$0xf0] }
 0x1e8   : > { %v1974_v32 = vpop.f32.mrf.mxu2  ;;  %v2035_v3 = vpop.f32.mrf.mxu0 }
 0x1e9   : > { %v1975_v45 = vadd.f32 %v1974_v32, %v1926_v47  ;;  %v2023_v38 = vpop.f32.mrf.mxu3  ;;  %v2036_v34 = vadd.f32 %v2035_v3, %v5580_v17  ;;  %v2084_v33 = vpop.f32.mrf.mxu1  ;;  %2469 = vmatpush.bf16.msra.mxu1 %v3843_v28 }
 0x1eb   : > { %v2024_v29 = vadd.f32 %v2023_v38, %v1975_v45  ;;  %v2085_v60 = vadd.f32 %v2084_v33, %v2036_v34  ;;  %2230 = vmatmul.bf16.vlgmr.msrb.gmra.mxu0 %v5256_v48 }
 0x1ec   : > { %2279 = vmatmul.bf16.vlgmr.msrb.gmra.mxu1 %v5258_v53 }
 0x1ed   : > { %v3050_v36 = vpack.c.bf16 %v2024_v29, %v5495_v1  ;;  %2328 = vmatmul.bf16.vlgmr.msrb.gmra.mxu2 %v5260_v54  ;;  %v4163_v1 = vor.u32 %v4531_v2, %v4162_v62 }
 0x1ee   : > { %2377 = vmatmul.bf16.vlgmr.msrb.gmra.mxu3 %v5262_v57 }
 0x1ef   : > { %3082 = vst [vmem:[%s5505_s4 + $0xf0] sm:$0xff] %v3050_v36  ;;  %2567 = vmatpush.bf16.msra.mxu3 %v4163_v1  ;;  %v4486_v36 = vld [vmem:[#allocation5 + $0x340] sm:$0xf0] }
 0x1f0   : > { %v2133_v63 = vpop.f32.mrf.mxu2  ;;  %v2037_v11 = vpop.f32.mrf.mxu0 }
 0x1f1   : > { %v2134_v61 = vadd.f32 %v2133_v63, %v2085_v60  ;;  %v2182_v59 = vpop.f32.mrf.mxu3  ;;  %v2038_v19 = vadd.f32 %v2037_v11, %v5580_v17  ;;  %v2086_v4 = vpop.f32.mrf.mxu1  ;;  %v3982_v60 = vld [vmem:[#allocation5 + $0x330] sm:$0xf]  ;;  %v3663_v63 = vor.u32 %v4406_v0, %v3662_v23  ;;  %v3642_v23 = vld [vmem:[#allocation5 + $0x88] sm:$0xf]  ;;  %v4401_v0 = vld [vmem:[#allocation5 + $0x98] sm:$0xf0] }
 0x1f2   : > { %v3983_v35 = vor.u32 %v4486_v36, %v3982_v60  ;;  %v3962_v60 = vld [vmem:[#allocation5 + $0x308] sm:$0xf]  ;;  %v4481_v36 = vld [vmem:[#allocation5 + $0x318] sm:$0xf0] }
 0x1f3   : > { %v5591_v6 = vadd.f32 %v2182_v59, %v2134_v61  ;;  %v2087_v16 = vadd.f32 %v2086_v4, %v2038_v19  ;;  %2421 = vmatpush.bf16.msra.mxu0 %v3663_v63  ;;  %2568 = vmatpush.bf16.msra.mxu3 %v4143_v30  ;;  %v3822_v4 = vld [vmem:[#allocation5 + $0x1f0] sm:$0xf]  ;;  %v3643_v63 = vor.u32 %v4401_v0, %v3642_v23  ;;  %v3942_v23 = vld [vmem:[#allocation5 + $0x2e0] sm:$0xf] }
 0x1f4   : > { %2519 = vmatpush.bf16.msra.mxu2 %v3983_v35  ;;  %v3963_v35 = vor.u32 %v4481_v36, %v3962_v60  ;;  %v4123_v30 = vor.u32 %v4521_v5, %v4122_v39  ;;  %v3622_v0 = vld [vmem:[#allocation5 + $0x60] sm:$0xf]  ;;  %v4396_v5 = vld [vmem:[#allocation5 + $0x70] sm:$0xf0] }
 0x1f7   : > { %2422 = vmatpush.bf16.msra.mxu0 %v3643_v63  ;;  %2569 = vmatpush.bf16.msra.mxu3 %v4123_v30  ;;  %v4516_v63 = vld [vmem:[#allocation5 + $0x430] sm:$0xf0] }
 0x1f8   : > { %v2135_v47 = vpop.f32.mrf.mxu2  ;;  %v2040_v38 = vpop.f32.mrf.mxu0  ;;  %2520 = vmatpush.bf16.msra.mxu2 %v3963_v35  ;;  %v4476_v35 = vld [vmem:[#allocation5 + $0x2f0] sm:$0xf0] }
 0x1f9   : > { %v2136_v32 = vadd.f32 %v2135_v47, %v2087_v16  ;;  %v2184_v45 = vpop.f32.mrf.mxu3  ;;  %v2041_v3 = vadd.f32 %v2040_v38, %v5580_v17  ;;  %v2089_v34 = vpop.f32.mrf.mxu1  ;;  %v3823_v16 = vor.u32 %v4446_v56, %v3822_v4  ;;  %v3802_v56 = vld [vmem:[#allocation5 + $0x1c8] sm:$0xf]  ;;  %v3943_v39 = vor.u32 %v4476_v35, %v3942_v23 }
 0x1fb   : > { %v5594_v33 = vadd.f32 %v2184_v45, %v2136_v32  ;;  %v2090_v29 = vadd.f32 %v2089_v34, %v2041_v3  ;;  %2235 = vmatmul.bf16.gmra.mxu0 %v5276_v24  ;;  %2470 = vmatpush.bf16.msra.mxu1 %v3823_v16 }
 0x1fc   : > { %2284 = vmatmul.bf16.gmra.mxu1 %v5278_v25  ;;  %2521 = vmatpush.bf16.msra.mxu2 %v3943_v39 }
 0x1fd   : > { %2333 = vmatmul.bf16.gmra.mxu2 %v5280_v26 }
 0x1fe   : > { %2382 = vmatmul.bf16.gmra.mxu3 %v5282_v27 }
 0x200   : > { %v2138_v62 = vpop.f32.mrf.mxu2  ;;  %v2042_v59 = vpop.f32.mrf.mxu0 }
 0x201   : > { %v2139_v2 = vadd.f32 %v2138_v62, %v2090_v29  ;;  %v2187_v61 = vpop.f32.mrf.mxu3  ;;  %v2043_v11 = vadd.f32 %v2042_v59, %v5580_v17  ;;  %v2091_v1 = vpop.f32.mrf.mxu1 }
 0x203   : > { %v5601_v19 = vadd.f32 %v2187_v61, %v2139_v2  ;;  %v2092_v58 = vadd.f32 %v2091_v1, %v2043_v11 }
 0x208   : > { %v2140_v28 = vpop.f32.mrf.mxu2  ;;  %v2045_v45 = vpop.f32.mrf.mxu0 }
 0x209   : > { %v2141_v47 = vadd.f32 %v2140_v28, %v2092_v58  ;;  %v2189_v32 = vpop.f32.mrf.mxu3  ;;  %v2046_v38 = vadd.f32 %v2045_v45, %v5580_v17  ;;  %v2094_v3 = vpop.f32.mrf.mxu1  ;;  %v4441_v58 = vld [vmem:[#allocation5 + $0x1d8] sm:$0xf0] }
 0x20a   : > { %v3803_v28 = vor.u32 %v4441_v58, %v3802_v56 }
 0x20b   : > { %v5604_v34 = vadd.f32 %v2189_v32, %v2141_v47  ;;  %v2095_v29 = vadd.f32 %v2094_v3, %v2046_v38  ;;  %2240 = vmatmul.bf16.gmra.mxu0 %v5296_v49 }
 0x20c   : > { %2289 = vmatmul.bf16.gmra.mxu1 %v5298_v50 }
 0x20d   : > { %2338 = vmatmul.bf16.gmra.mxu2 %v5300_v51  ;;  %2471 = vmatpush.bf16.msra.mxu1 %v3803_v28  ;;  %v3782_v28 = vld [vmem:[#allocation5 + $0x1a0] sm:$0xf] }
 0x20e   : > { %2387 = vmatmul.bf16.gmra.mxu3 %v5302_v52 }
 0x210   : > { %v2143_v62 = vpop.f32.mrf.mxu2  ;;  %v2047_v59 = vpop.f32.mrf.mxu0 }
 0x211   : > { %v2144_v2 = vadd.f32 %v2143_v62, %v2095_v29  ;;  %v2192_v61 = vpop.f32.mrf.mxu3  ;;  %v2048_v11 = vadd.f32 %v2047_v59, %v5580_v17  ;;  %v2096_v1 = vpop.f32.mrf.mxu1  ;;  %v4102_v62 = vld [vmem:[#allocation5 + $0x420] sm:$0xf] }
 0x213   : > { %v5611_v4 = vadd.f32 %v2192_v61, %v2144_v2  ;;  %v2097_v16 = vadd.f32 %v2096_v1, %v2048_v11  ;;  %v3623_v2 = vor.u32 %v4396_v5, %v3622_v0  ;;  %v4103_v61 = vor.u32 %v4516_v63, %v4102_v62  ;;  %v3922_v5 = vld [vmem:[#allocation5 + $0x2b8] sm:$0xf]  ;;  %v4471_v62 = vld [vmem:[#allocation5 + $0x2c8] sm:$0xf0] }
 0x214   : > { %v3602_v63 = vld [vmem:[#allocation5 + $0x38] sm:$0xf] }
 0x215   : > { %2423 = vmatpush.bf16.msra.mxu0 %v3623_v2  ;;  %2570 = vmatpush.bf16.msra.mxu3 %v4103_v61  ;;  %v4391_v2 = vld [vmem:[#allocation5 + $0x48] sm:$0xf0]  ;;  %v4082_v61 = vld [vmem:[#allocation5 + $0x3f8] sm:$0xf] }
 0x218   : > { %v2145_v47 = vpop.f32.mrf.mxu2  ;;  %v2050_v38 = vpop.f32.mrf.mxu0 }
 0x219   : > { %v2146_v32 = vadd.f32 %v2145_v47, %v2097_v16  ;;  %v2194_v45 = vpop.f32.mrf.mxu3  ;;  %v2051_v3 = vadd.f32 %v2050_v38, %v5580_v17  ;;  %v2099_v29 = vpop.f32.mrf.mxu1  ;;  %v4436_v47 = vld [vmem:[#allocation5 + $0x1b0] sm:$0xf0] }
 0x21b   : > { %v5614_v60 = vadd.f32 %v2194_v45, %v2146_v32  ;;  %v2100_v36 = vadd.f32 %v2099_v29, %v2051_v3  ;;  %2245 = vmatmul.bf16.gmra.mxu0 %v5316_v12  ;;  %v3783_v45 = vor.u32 %v4436_v47, %v3782_v28 }
 0x21c   : > { %2294 = vmatmul.bf16.gmra.mxu1 %v5318_v13 }
 0x21d   : > { %2343 = vmatmul.bf16.gmra.mxu2 %v5320_v14  ;;  %2472 = vmatpush.bf16.msra.mxu1 %v3783_v45 }
 0x21e   : > { %2392 = vmatmul.bf16.gmra.mxu3 %v5322_v15 }
 0x220   : > { %v2148_v30 = vpop.f32.mrf.mxu2  ;;  %v2052_v1 = vpop.f32.mrf.mxu0 }
 0x221   : > { %v2149_v59 = vadd.f32 %v2148_v30, %v2100_v36  ;;  %v2197_v11 = vpop.f32.mrf.mxu3  ;;  %v2053_v56 = vadd.f32 %v2052_v1, %v5580_v17  ;;  %v2101_v58 = vpop.f32.mrf.mxu1  ;;  %v3923_v30 = vor.u32 %v4471_v62, %v3922_v5  ;;  %v3603_v1 = vor.u32 %v4391_v2, %v3602_v63 }
 0x223   : > { %v5621_v16 = vadd.f32 %v2197_v11, %v2149_v59  ;;  %v2102_v32 = vadd.f32 %v2101_v58, %v2053_v56  ;;  %v4511_v59 = vld [vmem:[#allocation5 + $0x408] sm:$0xf0]  ;;  %2522 = vmatpush.bf16.msra.mxu2 %v3923_v30  ;;  %2424 = vmatpush.bf16.msra.mxu0 %v3603_v1  ;;  %v3582_v1 = vld [vmem:[#allocation5 + $0x10] sm:$0xf] }
 0x224   : > { %v4083_v56 = vor.u32 %v4511_v59, %v4082_v61  ;;  %v3902_v59 = vld [vmem:[#allocation5 + $0x290] sm:$0xf] }
 0x226   : > { %2571 = vmatpush.bf16.msra.mxu3 %v4083_v56 }
 0x228   : > { %v2150_v38 = vpop.f32.mrf.mxu2  ;;  %v2055_v23 = vpop.f32.mrf.mxu0 }
 0x229   : > { %v2151_v3 = vadd.f32 %v2150_v38, %v2102_v32  ;;  %v2199_v29 = vpop.f32.mrf.mxu3  ;;  %v2056_v36 = vadd.f32 %v2055_v23, %v5580_v17  ;;  %v2104_v35 = vpop.f32.mrf.mxu1 }
 0x22b   : > { %v5624_v0 = vadd.f32 %v2199_v29, %v2151_v3  ;;  %v2105_v39 = vadd.f32 %v2104_v35, %v2056_v36  ;;  %2250 = vmatmul.bf16.gmra.mxu0 %v5336_v40  ;;  %v3762_v3 = vld [vmem:[#allocation5 + $0x178] sm:$0xf]  ;;  %v4431_v29 = vld [vmem:[#allocation5 + $0x188] sm:$0xf0] }
 0x22c   : > { %2299 = vmatmul.bf16.gmra.mxu1 %v5338_v41  ;;  %v3763_v36 = vor.u32 %v4431_v29, %v3762_v3 }
 0x22d   : > { %2348 = vmatmul.bf16.gmra.mxu2 %v5340_v42 }
 0x22e   : > { %2397 = vmatmul.bf16.gmra.mxu3 %v5342_v43  ;;  %2473 = vmatpush.bf16.msra.mxu1 %v3763_v36 }
 0x230   : > { %v2153_v11 = vpop.f32.mrf.mxu2  ;;  %v2057_v47 = vpop.f32.mrf.mxu0 }
 0x231   : > { %v2154_v58 = vadd.f32 %v2153_v11, %v2105_v39  ;;  %v2202_v28 = vpop.f32.mrf.mxu3  ;;  %v2058_v32 = vadd.f32 %v2057_v47, %v5580_v17  ;;  %v2106_v45 = vpop.f32.mrf.mxu1  ;;  %v4466_v11 = vld [vmem:[#allocation5 + $0x2a0] sm:$0xf0] }
 0x232   : > { %v3903_v56 = vor.u32 %v4466_v11, %v3902_v59  ;;  %v4506_v47 = vld [vmem:[#allocation5 + $0x3e0] sm:$0xf0] }
 0x233   : > { %v5631_v38 = vadd.f32 %v2202_v28, %v2154_v58  ;;  %v2107_v23 = vadd.f32 %v2106_v45, %v2058_v32  ;;  %v4386_v58 = vld [vmem:[#allocation5 + $0x20] sm:$0xf0]  ;;  %v4062_v28 = vld [vmem:[#allocation5 + $0x3d0] sm:$0xf] }
 0x234   : > { %v3583_v45 = vor.u32 %v4386_v58, %v3582_v1  ;;  %v4063_v3 = vor.u32 %v4506_v47, %v4062_v28  ;;  %2523 = vmatpush.bf16.msra.mxu2 %v3903_v56 }
 0x236   : > { %2425 = vmatpush.bf16.msra.mxu0 %v3583_v45  ;;  %2572 = vmatpush.bf16.msra.mxu3 %v4063_v3 }
 0x238   : > { %v2155_v35 = vpop.f32.mrf.mxu2  ;;  %v2060_v63 = vpop.f32.mrf.mxu0 }
 0x239   : > { %v2156_v5 = vadd.f32 %v2155_v35, %v2107_v23  ;;  %v2204_v62 = vpop.f32.mrf.mxu3  ;;  %v2061_v39 = vadd.f32 %v2060_v63, %v5580_v17  ;;  %v2109_v2 = vpop.f32.mrf.mxu1  ;;  %v3742_v63 = vld [vmem:[#allocation5 + $0x150] sm:$0xf] }
 0x23b   : > { %v5634_v30 = vadd.f32 %v2204_v62, %v2156_v5  ;;  %v2110_v61 = vadd.f32 %v2109_v2, %v2061_v39  ;;  %2255 = vmatmul.bf16.gmra.mxu0 %v5356_v8  ;;  %v4426_v39 = vld [vmem:[#allocation5 + $0x160] sm:$0xf0] }
 0x23c   : > { %2304 = vmatmul.bf16.gmra.mxu1 %v5358_v9  ;;  %v3743_v59 = vor.u32 %v4426_v39, %v3742_v63 }
 0x23d   : > { %2353 = vmatmul.bf16.gmra.mxu2 %v5360_v10 }
 0x23e   : > { %2402 = vmatmul.bf16.gmra.mxu3 %v6021_v46  ;;  %2474 = vmatpush.bf16.msra.mxu1 %v3743_v59 }
 0x240   : > { %v2158_v32 = vpop.f32.mrf.mxu2  ;;  %v2062_v36 = vpop.f32.mrf.mxu0 }
 0x241   : > { %v2159_v29 = vadd.f32 %v2158_v32, %v2110_v61  ;;  %v2207_v23 = vpop.f32.mrf.mxu3  ;;  %v2063_v35 = vadd.f32 %v2062_v36, %v5580_v17  ;;  %v2111_v5 = vpop.f32.mrf.mxu1 }
 0x243   : > { %v5641_v62 = vadd.f32 %v2207_v23, %v2159_v29  ;;  %v2112_v2 = vadd.f32 %v2111_v5, %v2063_v35 }
 0x248   : > { %v2160_v11 = vpop.f32.mrf.mxu2  ;;  %v2065_v58 = vpop.f32.mrf.mxu0 }
 0x249   : > { %v2161_v46 = vadd.f32 %v2160_v11, %v2112_v2  ;;  %v2209_v1 = vpop.f32.mrf.mxu3  ;;  %v2066_v61 = vadd.f32 %v2065_v58, %v5580_v17  ;;  %v2114_v28 = vpop.f32.mrf.mxu1 }
 0x24b   : > { %v5644_v56 = vadd.f32 %v2209_v1, %v2161_v46  ;;  %v2115_v47 = vadd.f32 %v2114_v28, %v2066_v61  ;;  %2260 = vmatmul.bf16.gmra.mxu0 %v5376_v44  ;;  %v4326_v61 = vld [vmem:[#allocation8 + $0xe8] sm:$0xf]  ;;  %v4573_v28 = vld [vmem:[#allocation8 + $0xf4] sm:$0xf0] }
 0x24c   : > { %2309 = vmatmul.bf16.gmra.mxu1 %v6022_v55 }
 0x24d   : > { %2358 = vmatmul.bf16.gmra.mxu2 %v6023_v18 }
 0x24e   : > { %2407 = vmatmul.bf16.gmra.mxu3 %v6024_v7 }
 0x250   : > { %v2163_v32 = vpop.f32.mrf.mxu2  ;;  %v2067_v29 = vpop.f32.mrf.mxu0 }
 0x251   : > { %v2164_v45 = vadd.f32 %v2163_v32, %v2115_v47  ;;  %v2212_v3 = vpop.f32.mrf.mxu3  ;;  %v2068_v23 = vadd.f32 %v2067_v29, %v5580_v17  ;;  %v2116_v36 = vpop.f32.mrf.mxu1  ;;  %v4571_v47 = vld [vmem:[#allocation8 + $0xec] sm:$0xf] }
 0x253   : > { %v5651_v35 = vadd.f32 %v2212_v3, %v2164_v45  ;;  %v2117_v46 = vadd.f32 %v2116_v36, %v2068_v23  ;;  %v4327_v45 = vor.u32 %v4573_v28, %v4326_v61  ;;  %v4328_v3 = vld [vmem:[#allocation8 + $0xf8] sm:$0xf0] }
 0x255   : > { %2922 = vmatpush.bf16.msrb.mxu2 %v4327_v45 }
 0x258   : > { %v2165_v5 = vpop.f32.mrf.mxu2  ;;  %v2070_v2 = vpop.f32.mrf.mxu0 }
 0x259   : > { %v2166_v63 = vadd.f32 %v2165_v5, %v2117_v46  ;;  %v2214_v39 = vpop.f32.mrf.mxu3  ;;  %v2071_v59 = vadd.f32 %v2070_v2, %v5580_v17  ;;  %v2119_v11 = vpop.f32.mrf.mxu1  ;;  %v4331_v46 = vor.u32 %v4571_v47, %v4328_v3 }
 0x25b   : > { %v5654_v1 = vadd.f32 %v2214_v39, %v2166_v63  ;;  %v2120_v58 = vadd.f32 %v2119_v11, %v2071_v59  ;;  %2265 = vmatmul.bf16.gmra.mxu0 %v5396_v20  ;;  %2971 = vmatpush.bf16.msrb.mxu3 %v4331_v46  ;;  %v5664_v59 = vperm.slane %v5577_v37, 3  ;;  %v4318_v11 = vld [vmem:[#allocation8 + $0xe0] sm:$0xf] }
 0x25c   : > { %2314 = vmatmul.bf16.gmra.mxu1 %v5398_v21 }
 0x25d   : > { %2363 = vmatmul.bf16.gmra.mxu2 %v5400_v22  ;;  %v4570_v22 = vld [vmem:[#allocation8 + $0xe4] sm:$0xf] }
 0x25e   : > { %2412 = vmatmul.bf16.gmra.mxu3 %v6025_v31  ;;  %v4572_v31 = vld [vmem:[#allocation8 + $0xec] sm:$0xf0] }
 0x25f   : > { %v4319_v28 = vor.u32 %v4572_v31, %v4318_v11  ;;  %v4310_v31 = vld [vmem:[#allocation8 + $0xc8] sm:$0xf] }
 0x260   : > { %v2168_v32 = vpop.f32.mrf.mxu2  ;;  %v2072_v36 = vpop.f32.mrf.mxu0 }
 0x261   : > { %v2169_v29 = vadd.f32 %v2168_v32, %v2120_v58  ;;  %v2217_v23 = vpop.f32.mrf.mxu3  ;;  %v2073_v5 = vadd.f32 %v2072_v36, %v5580_v17  ;;  %v2121_v63 = vpop.f32.mrf.mxu1  ;;  %v4320_v58 = vld [vmem:[#allocation8 + $0xf0] sm:$0xf0]  ;;  %2824 = vmatpush.bf16.msrb.mxu0 %v4319_v28  ;;  %v4302_v28 = vld [vmem:[#allocation8 + $0xc0] sm:$0xf] }
 0x262   : > { %v4323_v3 = vor.u32 %v4570_v22, %v4320_v58  ;;  %v4567_v22 = vld [vmem:[#allocation8 + $0xcc] sm:$0xf]  ;;  %v4568_v58 = vld [vmem:[#allocation8 + $0xcc] sm:$0xf0] }
 0x263   : > { %v5661_v39 = vadd.f32 %v2217_v23, %v2169_v29  ;;  %v2122_v2 = vadd.f32 %v2121_v63, %v2073_v5  ;;  %v4569_v23 = vld [vmem:[#allocation8 + $0xd4] sm:$0xf0]  ;;  %v4312_v5 = vld [vmem:[#allocation8 + $0xd8] sm:$0xf0] }
 0x264   : > { %2873 = vmatpush.bf16.msrb.mxu1 %v4323_v3  ;;  %v4311_v46 = vor.u32 %v4569_v23, %v4310_v31  ;;  %v4315_v11 = vor.u32 %v4567_v22, %v4312_v5  ;;  %v4566_v3 = vld [vmem:[#allocation8 + $0xc4] sm:$0xf] }
 0x266   : > { %2923 = vmatpush.bf16.msrb.mxu2 %v4311_v46  ;;  %2972 = vmatpush.bf16.msrb.mxu3 %v4315_v11 }
 0x268   : > { %v2170_v61 = vpop.f32.mrf.mxu2  ;;  %v2231_v47 = vpop.f32.mrf.mxu0 }
 0x269   : > { %v2171_v32 = vadd.f32 %v2170_v61, %v2122_v2  ;;  %v2219_v21 = vpop.f32.mrf.mxu3  ;;  %v2232_v17 = vadd.f32 %v2231_v47, %v5664_v59  ;;  %v2280_v45 = vpop.f32.mrf.mxu1  ;;  %v4303_v47 = vor.u32 %v4568_v58, %v4302_v28  ;;  %v4286_v58 = vld [vmem:[#allocation8 + $0xa0] sm:$0xf] }
 0x26b   : > { %v5667_v29 = vadd.f32 %v2219_v21, %v2171_v32  ;;  %2426 = vmatmul.bf16.vlgmr.msra.gmra.mxu0 %v5256_v48  ;;  %v2281_v37 = vadd.f32 %v2280_v45, %v2232_v17  ;;  %v4304_v17 = vld [vmem:[#allocation8 + $0xd0] sm:$0xf0] }
 0x26c   : > { %2475 = vmatmul.bf16.vlgmr.msra.gmra.mxu1 %v5258_v53  ;;  %v4307_v23 = vor.u32 %v4566_v3, %v4304_v17  ;;  %2825 = vmatpush.bf16.msrb.mxu0 %v4303_v47  ;;  %v4562_v17 = vld [vmem:[#allocation8 + $0xa4] sm:$0xf] }
 0x26d   : > { %2524 = vmatmul.bf16.vlgmr.msra.gmra.mxu2 %v5260_v54 }
 0x26e   : > { %2573 = vmatmul.bf16.vlgmr.msra.gmra.mxu3 %v5262_v57  ;;  %2874 = vmatpush.bf16.msrb.mxu1 %v4307_v23 }
 0x270   : > { %v2329_v36 = vpop.f32.mrf.mxu2  ;;  %v2233_v2 = vpop.f32.mrf.mxu0 }
 0x271   : > { %v2330_v63 = vadd.f32 %v2329_v36, %v2281_v37  ;;  %v2378_v21 = vpop.f32.mrf.mxu3  ;;  %v2282_v61 = vpop.f32.mrf.mxu1  ;;  %v2234_v53 = vadd.f32 %v2233_v2, %v5664_v59 }
 0x273   : > { %v2379_v48 = vadd.f32 %v2378_v21, %v2330_v63  ;;  %v2283_v57 = vadd.f32 %v2282_v61, %v2234_v53  ;;  %v4294_v63 = vld [vmem:[#allocation8 + $0xa8] sm:$0xf]  ;;  %v4565_v21 = vld [vmem:[#allocation8 + $0xb4] sm:$0xf0]  ;;  %v4563_v61 = vld [vmem:[#allocation8 + $0xac] sm:$0xf] }
 0x274   : > { %v4295_v11 = vor.u32 %v4565_v21, %v4294_v63  ;;  %v4278_v63 = vld [vmem:[#allocation8 + $0x88] sm:$0xf]  ;;  %v4561_v21 = vld [vmem:[#allocation8 + $0x94] sm:$0xf0] }
 0x275   : > { %v3021_v54 = vpack.c.bf16 %v2379_v48, %v5591_v6  ;;  %v4296_v48 = vld [vmem:[#allocation8 + $0xb8] sm:$0xf0] }
 0x276   : > { %2924 = vmatpush.bf16.msrb.mxu2 %v4295_v11  ;;  %v4279_v11 = vor.u32 %v4561_v21, %v4278_v63 }
 0x277   : > { %3053 = vst [vmem:[%s5505_s4 + $0x8] sm:$0xff] %v3021_v54 }
 0x278   : > { %v2331_v32 = vpop.f32.mrf.mxu2  ;;  %v2236_v31 = vpop.f32.mrf.mxu0 }
 0x279   : > { %v2332_v45 = vadd.f32 %v2331_v32, %v2283_v57  ;;  %v2380_v37 = vpop.f32.mrf.mxu3  ;;  %v2237_v22 = vadd.f32 %v2236_v31, %v5664_v59  ;;  %v2285_v36 = vpop.f32.mrf.mxu1  ;;  %v4299_v57 = vor.u32 %v4563_v61, %v4296_v48  ;;  %v4564_v32 = vld [vmem:[#allocation8 + $0xac] sm:$0xf0]  ;;  %v4559_v61 = vld [vmem:[#allocation8 + $0x8c] sm:$0xf]  ;;  %v4280_v48 = vld [vmem:[#allocation8 + $0x98] sm:$0xf0] }
 0x27a   : > { %v4287_v3 = vor.u32 %v4564_v32, %v4286_v58  ;;  %2925 = vmatpush.bf16.msrb.mxu2 %v4279_v11  ;;  %v4272_v58 = vld [vmem:[#allocation8 + $0x90] sm:$0xf0] }
 0x27b   : > { %v2381_v46 = vadd.f32 %v2380_v37, %v2332_v45  ;;  %2431 = vmatmul.bf16.gmra.mxu0 %v5276_v24  ;;  %v2286_v5 = vadd.f32 %v2285_v36, %v2237_v22  ;;  %2973 = vmatpush.bf16.msrb.mxu3 %v4299_v57  ;;  %v4288_v45 = vld [vmem:[#allocation8 + $0xb0] sm:$0xf0] }
 0x27c   : > { %2480 = vmatmul.bf16.gmra.mxu1 %v5278_v25  ;;  %v4291_v22 = vor.u32 %v4562_v17, %v4288_v45  ;;  %2826 = vmatpush.bf16.msrb.mxu0 %v4287_v3 }
 0x27d   : > { %v3023_v6 = vpack.c.bf16 %v2381_v46, %v5594_v33  ;;  %2529 = vmatmul.bf16.gmra.mxu2 %v5280_v26 }
 0x27e   : > { %2578 = vmatmul.bf16.gmra.mxu3 %v5282_v27  ;;  %2875 = vmatpush.bf16.msrb.mxu1 %v4291_v22  ;;  %v4262_v22 = vld [vmem:[#allocation8 + $0x68] sm:$0xf] }
 0x27f   : > { %3055 = vst [vmem:[%s5505_s4 + $0x18] sm:$0xff] %v3023_v6 }
 0x280   : > { %v2334_v2 = vpop.f32.mrf.mxu2  ;;  %v2238_v24 = vpop.f32.mrf.mxu0 }
 0x281   : > { %v2335_v53 = vadd.f32 %v2334_v2, %v2286_v5  ;;  %v2383_v54 = vpop.f32.mrf.mxu3  ;;  %v2287_v33 = vpop.f32.mrf.mxu1  ;;  %v2239_v25 = vadd.f32 %v2238_v24, %v5664_v59  ;;  %v4283_v24 = vor.u32 %v4559_v61, %v4280_v48  ;;  %v4254_v61 = vld [vmem:[#allocation8 + $0x60] sm:$0xf]  ;;  %v4556_v48 = vld [vmem:[#allocation8 + $0x6c] sm:$0xf0] }
 0x283   : > { %v2384_v28 = vadd.f32 %v2383_v54, %v2335_v53  ;;  %v2288_v27 = vadd.f32 %v2287_v33, %v2239_v25  ;;  %2974 = vmatpush.bf16.msrb.mxu3 %v4283_v24  ;;  %v4270_v33 = vld [vmem:[#allocation8 + $0x80] sm:$0xf]  ;;  %v4256_v24 = vld [vmem:[#allocation8 + $0x70] sm:$0xf0] }
 0x285   : > { %v3025_v26 = vpack.c.bf16 %v2384_v28, %v5601_v19  ;;  %v4560_v28 = vld [vmem:[#allocation8 + $0x8c] sm:$0xf0] }
 0x287   : > { %3057 = vst [vmem:[%s5505_s4 + $0x28] sm:$0xff] %v3025_v26  ;;  %v4271_v26 = vor.u32 %v4560_v28, %v4270_v33 }
 0x288   : > { %v2336_v47 = vpop.f32.mrf.mxu2  ;;  %v2241_v23 = vpop.f32.mrf.mxu0 }
 0x289   : > { %v2337_v37 = vadd.f32 %v2336_v47, %v2288_v27  ;;  %v2385_v31 = vpop.f32.mrf.mxu3  ;;  %v2242_v36 = vadd.f32 %v2241_v23, %v5664_v59  ;;  %v2290_v46 = vpop.f32.mrf.mxu1  ;;  %v4558_v27 = vld [vmem:[#allocation8 + $0x84] sm:$0xf]  ;;  %2827 = vmatpush.bf16.msrb.mxu0 %v4271_v26  ;;  %v4246_v26 = vld [vmem:[#allocation8 + $0x48] sm:$0xf] }
 0x28a   : > { %v4275_v17 = vor.u32 %v4558_v27, %v4272_v58  ;;  %v4553_v27 = vld [vmem:[#allocation8 + $0x54] sm:$0xf0] }
 0x28b   : > { %v2386_v6 = vadd.f32 %v2385_v31, %v2337_v37  ;;  %2436 = vmatmul.bf16.gmra.mxu0 %v5296_v49  ;;  %v2291_v5 = vadd.f32 %v2290_v46, %v2242_v36  ;;  %v4557_v36 = vld [vmem:[#allocation8 + $0x74] sm:$0xf0] }
 0x28c   : > { %2485 = vmatmul.bf16.gmra.mxu1 %v5298_v50 }
 0x28d   : > { %v3027_v19 = vpack.c.bf16 %v2386_v6, %v5604_v34  ;;  %2534 = vmatmul.bf16.gmra.mxu2 %v5300_v51  ;;  %2876 = vmatpush.bf16.msrb.mxu1 %v4275_v17  ;;  %v4263_v6 = vor.u32 %v4557_v36, %v4262_v22 }
 0x28e   : > { %2583 = vmatmul.bf16.gmra.mxu3 %v5302_v52 }
 0x28f   : > { %3059 = vst [vmem:[%s5505_s4 + $0x38] sm:$0xff] %v3027_v19  ;;  %v4555_v19 = vld [vmem:[#allocation8 + $0x6c] sm:$0xf]  ;;  %2926 = vmatpush.bf16.msrb.mxu2 %v4263_v6  ;;  %v4240_v6 = vld [vmem:[#allocation8 + $0x50] sm:$0xf0] }
 0x290   : > { %v2339_v2 = vpop.f32.mrf.mxu2  ;;  %v2243_v49 = vpop.f32.mrf.mxu0 }
 0x291   : > { %v2340_v53 = vadd.f32 %v2339_v2, %v2291_v5  ;;  %v2388_v54 = vpop.f32.mrf.mxu3  ;;  %v2292_v34 = vpop.f32.mrf.mxu1  ;;  %v2244_v50 = vadd.f32 %v2243_v49, %v5664_v59  ;;  %v4264_v5 = vld [vmem:[#allocation8 + $0x78] sm:$0xf0]  ;;  %v4554_v49 = vld [vmem:[#allocation8 + $0x64] sm:$0xf] }
 0x292   : > { %v4267_v2 = vor.u32 %v4555_v19, %v4264_v5 }
 0x293   : > { %v2389_v57 = vadd.f32 %v2388_v54, %v2340_v53  ;;  %v2293_v52 = vadd.f32 %v2292_v34, %v2244_v50  ;;  %v4255_v54 = vor.u32 %v4556_v48, %v4254_v61 }
 0x294   : > { %2975 = vmatpush.bf16.msrb.mxu3 %v4267_v2 }
 0x295   : > { %v3029_v51 = vpack.c.bf16 %v2389_v57, %v5611_v4  ;;  %2828 = vmatpush.bf16.msrb.mxu0 %v4255_v54  ;;  %v4232_v54 = vld [vmem:[#allocation8 + $0x38] sm:$0xf0] }
 0x297   : > { %3061 = vst [vmem:[%s5505_s4 + $0x48] sm:$0xff] %v3029_v51  ;;  %v4259_v51 = vor.u32 %v4554_v49, %v4256_v24 }
 0x298   : > { %v2341_v25 = vpop.f32.mrf.mxu2  ;;  %v2246_v3 = vpop.f32.mrf.mxu0 }
 0x299   : > { %v2342_v32 = vadd.f32 %v2341_v25, %v2293_v52  ;;  %v2390_v47 = vpop.f32.mrf.mxu3  ;;  %v2247_v45 = vadd.f32 %v2246_v3, %v5664_v59  ;;  %v2295_v37 = vpop.f32.mrf.mxu1  ;;  %2877 = vmatpush.bf16.msrb.mxu1 %v4259_v51  ;;  %v4248_v3 = vld [vmem:[#allocation8 + $0x58] sm:$0xf0]  ;;  %v4222_v51 = vld [vmem:[#allocation8 + $0x20] sm:$0xf] }
 0x29b   : > { %v2391_v31 = vadd.f32 %v2390_v47, %v2342_v32  ;;  %2441 = vmatmul.bf16.gmra.mxu0 %v5316_v12  ;;  %v2296_v23 = vadd.f32 %v2295_v37, %v2247_v45  ;;  %v4247_v32 = vor.u32 %v4553_v27, %v4246_v26  ;;  %v4551_v47 = vld [vmem:[#allocation8 + $0x4c] sm:$0xf] }
 0x29c   : > { %2490 = vmatmul.bf16.gmra.mxu1 %v5318_v13  ;;  %v4251_v37 = vor.u32 %v4551_v47, %v4248_v3 }
 0x29d   : > { %v3031_v4 = vpack.c.bf16 %v2391_v31, %v5614_v60  ;;  %2539 = vmatmul.bf16.gmra.mxu2 %v5320_v14 }
 0x29e   : > { %2588 = vmatmul.bf16.gmra.mxu3 %v5322_v15  ;;  %2927 = vmatpush.bf16.msrb.mxu2 %v4247_v32 }
 0x29f   : > { %3063 = vst [vmem:[%s5505_s4 + $0x58] sm:$0xff] %v3031_v4  ;;  %2976 = vmatpush.bf16.msrb.mxu3 %v4251_v37  ;;  %v4238_v4 = vld [vmem:[#allocation8 + $0x40] sm:$0xf]  ;;  %v4545_v37 = vld [vmem:[#allocation8 + $0x14] sm:$0xf0] }
 0x2a0   : > { %v2344_v46 = vpop.f32.mrf.mxu2  ;;  %v2248_v12 = vpop.f32.mrf.mxu0 }
 0x2a1   : > { %v2345_v63 = vadd.f32 %v2344_v46, %v2296_v23  ;;  %v2393_v21 = vpop.f32.mrf.mxu3  ;;  %v2297_v60 = vpop.f32.mrf.mxu1  ;;  %v2249_v13 = vadd.f32 %v2248_v12, %v5664_v59  ;;  %v4552_v23 = vld [vmem:[#allocation8 + $0x4c] sm:$0xf0]  ;;  %v4550_v46 = vld [vmem:[#allocation8 + $0x44] sm:$0xf] }
 0x2a2   : > { %v4239_v36 = vor.u32 %v4552_v23, %v4238_v4 }
 0x2a3   : > { %v2394_v11 = vadd.f32 %v2393_v21, %v2345_v63  ;;  %v2298_v15 = vadd.f32 %v2297_v60, %v2249_v13  ;;  %v4243_v21 = vor.u32 %v4550_v46, %v4240_v6  ;;  %v6026_v13 = vld [vmem:[#allocation24_spill] sm:$0xff] }
 0x2a4   : > { %2829 = vmatpush.bf16.msrb.mxu0 %v4239_v36  ;;  %v4542_v36 = vld [vmem:[#allocation8 + $0x4] sm:$0xf] }
 0x2a5   : > { %v3033_v14 = vpack.c.bf16 %v2394_v11, %v5621_v16  ;;  %2878 = vmatpush.bf16.msrb.mxu1 %v4243_v21 }
 0x2a7   : > { %3065 = vst [vmem:[%s5505_s4 + $0x68] sm:$0xff] %v3033_v14  ;;  %v4230_v14 = vld [vmem:[#allocation8 + $0x28] sm:$0xf] }
 0x2a8   : > { %v2346_v53 = vpop.f32.mrf.mxu2  ;;  %v2251_v50 = vpop.f32.mrf.mxu0 }
 0x2a9   : > { %v2347_v34 = vadd.f32 %v2346_v53, %v2298_v15  ;;  %v2395_v57 = vpop.f32.mrf.mxu3  ;;  %v2252_v52 = vadd.f32 %v2251_v50, %v5664_v59  ;;  %v2300_v33 = vpop.f32.mrf.mxu1  ;;  %v4549_v15 = vld [vmem:[#allocation8 + $0x34] sm:$0xf0]  ;;  %v4547_v53 = vld [vmem:[#allocation8 + $0x2c] sm:$0xf] }
 0x2aa   : > { %v4231_v48 = vor.u32 %v4549_v15, %v4230_v14  ;;  %v6027_v15 = vld [vmem:[#allocation28_spill] sm:$0xff] }
 0x2ab   : > { %v2396_v28 = vadd.f32 %v2395_v57, %v2347_v34  ;;  %2446 = vmatmul.bf16.gmra.mxu0 %v5336_v40  ;;  %v2301_v25 = vadd.f32 %v2300_v33, %v2252_v52  ;;  %v4235_v34 = vor.u32 %v4547_v53, %v4232_v54  ;;  %v4548_v52 = vld [vmem:[#allocation8 + $0x2c] sm:$0xf0] }
 0x2ac   : > { %2495 = vmatmul.bf16.gmra.mxu1 %v5338_v41  ;;  %2928 = vmatpush.bf16.msrb.mxu2 %v4231_v48  ;;  %v6029_v48 = vld [vmem:[#allocation30_spill] sm:$0xff] }
 0x2ad   : > { %v3035_v16 = vpack.c.bf16 %v2396_v28, %v5624_v0  ;;  %2544 = vmatmul.bf16.gmra.mxu2 %v5340_v42  ;;  %2977 = vmatpush.bf16.msrb.mxu3 %v4235_v34  ;;  %v4223_v28 = vor.u32 %v4548_v52, %v4222_v51 }
 0x2ae   : > { %2593 = vmatmul.bf16.gmra.mxu3 %v5342_v43 }
 0x2af   : > { %3067 = vst [vmem:[%s5505_s4 + $0x78] sm:$0xff] %v3035_v16  ;;  %v4546_v16 = vld [vmem:[#allocation8 + $0x24] sm:$0xf]  ;;  %2830 = vmatpush.bf16.msrb.mxu0 %v4223_v28 }
 0x2b0   : > { %v2349_v58 = vpop.f32.mrf.mxu2  ;;  %v2253_v40 = vpop.f32.mrf.mxu0 }
 0x2b1   : > { %v2350_v17 = vadd.f32 %v2349_v58, %v2301_v25  ;;  %v2398_v45 = vpop.f32.mrf.mxu3  ;;  %v2302_v0 = vpop.f32.mrf.mxu1  ;;  %v2254_v41 = vadd.f32 %v2253_v40, %v5664_v59  ;;  %v4224_v25 = vld [vmem:[#allocation8 + $0x30] sm:$0xf0]  ;;  %v4214_v40 = vld [vmem:[#allocation8 + $0x8] sm:$0xf] }
 0x2b2   : > { %v4227_v32 = vor.u32 %v4546_v16, %v4224_v25 }
 0x2b3   : > { %v2399_v31 = vadd.f32 %v2398_v45, %v2350_v17  ;;  %v2303_v43 = vadd.f32 %v2302_v0, %v2254_v41  ;;  %v4543_v41 = vld [vmem:[#allocation8 + $0xc] sm:$0xf] }
 0x2b4   : > { %2879 = vmatpush.bf16.msrb.mxu1 %v4227_v32 }
 0x2b5   : > { %v3037_v42 = vpack.c.bf16 %v2399_v31, %v5631_v38  ;;  %v4215_v31 = vor.u32 %v4545_v37, %v4214_v40 }
 0x2b7   : > { %3069 = vst [vmem:[%s5505_s4 + $0x88] sm:$0xff] %v3037_v42  ;;  %v4216_v42 = vld [vmem:[#allocation8 + $0x18] sm:$0xf0]  ;;  %2929 = vmatpush.bf16.msrb.mxu2 %v4215_v31 }
 0x2b8   : > { %v2351_v22 = vpop.f32.mrf.mxu2  ;;  %v2256_v63 = vpop.f32.mrf.mxu0  ;;  %v4219_v23 = vor.u32 %v4543_v41, %v4216_v42 }
 0x2b9   : > { %v2352_v19 = vadd.f32 %v2351_v22, %v2303_v43  ;;  %v2400_v5 = vpop.f32.mrf.mxu3  ;;  %v2257_v12 = vadd.f32 %v2256_v63, %v5664_v59  ;;  %v2305_v2 = vpop.f32.mrf.mxu1 }
 0x2ba   : > { %2978 = vmatpush.bf16.msrb.mxu3 %v4219_v23 }
 0x2bb   : > { %v2401_v60 = vadd.f32 %v2400_v5, %v2352_v19  ;;  %2451 = vmatmul.bf16.gmra.mxu0 %v5356_v8  ;;  %v2306_v11 = vadd.f32 %v2305_v2, %v2257_v12  ;;  %v4208_v19 = vld [vmem:[#allocation8 + $0x10] sm:$0xf0] }
 0x2bc   : > { %2500 = vmatmul.bf16.gmra.mxu1 %v5358_v9  ;;  %v4211_v5 = vor.u32 %v4542_v36, %v4208_v19 }
 0x2bd   : > { %v3039_v38 = vpack.c.bf16 %v2401_v60, %v5634_v30  ;;  %2549 = vmatmul.bf16.gmra.mxu2 %v5360_v10 }
 0x2be   : > { %2598 = vmatmul.bf16.gmra.mxu3 %v6026_v13  ;;  %2880 = vmatpush.bf16.msrb.mxu1 %v4211_v5 }
 0x2bf   : > { %3071 = vst [vmem:[%s5505_s4 + $0x98] sm:$0xff] %v3039_v38 }
 0x2c0   : > { %v2354_v61 = vpop.f32.mrf.mxu2  ;;  %v2258_v8 = vpop.f32.mrf.mxu0 }
 0x2c1   : > { %v2355_v49 = vadd.f32 %v2354_v61, %v2306_v11  ;;  %v2403_v24 = vpop.f32.mrf.mxu3  ;;  %v2307_v30 = vpop.f32.mrf.mxu1  ;;  %v2259_v9 = vadd.f32 %v2258_v8, %v5664_v59  ;;  %v6028_v61 = vld [vmem:[#allocation29_spill] sm:$0xff] }
 0x2c3   : > { %v2404_v57 = vadd.f32 %v2403_v24, %v2355_v49  ;;  %v2308_v50 = vadd.f32 %v2307_v30, %v2259_v9 }
 0x2c5   : > { %v3041_v10 = vpack.c.bf16 %v2404_v57, %v5641_v62 }
 0x2c7   : > { %3073 = vst [vmem:[%s5505_s4 + $0xa8] sm:$0xff] %v3041_v10 }
 0x2c8   : > { %v2356_v33 = vpop.f32.mrf.mxu2  ;;  %v2261_v58 = vpop.f32.mrf.mxu0 }
 0x2c9   : > { %v2357_v26 = vadd.f32 %v2356_v33, %v2308_v50  ;;  %v2405_v27 = vpop.f32.mrf.mxu3  ;;  %v2262_v47 = vadd.f32 %v2261_v58, %v5664_v59  ;;  %v2310_v3 = vpop.f32.mrf.mxu1  ;;  %v4715_v33 = vld [vmem:[#allocation7] sm:$0x1f] }
 0x2ca   : > { %v5746_v28 = vperm.slane %v4715_v33, 4 }
 0x2cb   : > { %v2406_v17 = vadd.f32 %v2405_v27, %v2357_v26  ;;  %2456 = vmatmul.bf16.gmra.mxu0 %v5376_v44  ;;  %v2311_v45 = vadd.f32 %v2310_v3, %v2262_v47 }
 0x2cc   : > { %2505 = vmatmul.bf16.gmra.mxu1 %v6022_v55 }
 0x2cd   : > { %v3043_v62 = vpack.c.bf16 %v2406_v17, %v5644_v56  ;;  %2554 = vmatmul.bf16.gmra.mxu2 %v6023_v18  ;;  %v4206_v18 = vld [vmem:[#allocation8] sm:$0xf] }
 0x2ce   : > { %2603 = vmatmul.bf16.gmra.mxu3 %v6024_v7  ;;  %v4544_v7 = vld [vmem:[#allocation8 + $0xc] sm:$0xf0] }
 0x2cf   : > { %3075 = vst [vmem:[%s5505_s4 + $0xb8] sm:$0xff] %v3043_v62  ;;  %v4207_v6 = vor.u32 %v4544_v7, %v4206_v18 }
 0x2d0   : > { %v2359_v0 = vpop.f32.mrf.mxu2  ;;  %v2263_v44 = vpop.f32.mrf.mxu0 }
 0x2d1   : > { %v2360_v43 = vadd.f32 %v2359_v0, %v2311_v45  ;;  %v2408_v4 = vpop.f32.mrf.mxu3  ;;  %v2312_v56 = vpop.f32.mrf.mxu1  ;;  %v2264_v55 = vadd.f32 %v2263_v44, %v5664_v59  ;;  %2831 = vmatpush.bf16.msrb.mxu0 %v4207_v6 }
 0x2d3   : > { %v2409_v22 = vadd.f32 %v2408_v4, %v2360_v43  ;;  %v2313_v63 = vadd.f32 %v2312_v56, %v2264_v55 }
 0x2d5   : > { %v3045_v46 = vpack.c.bf16 %v2409_v22, %v5651_v35 }
 0x2d7   : > { %3077 = vst [vmem:[%s5505_s4 + $0xc8] sm:$0xff] %v3045_v46 }
 0x2d8   : > { %v2361_v21 = vpop.f32.mrf.mxu2  ;;  %v2266_v60 = vpop.f32.mrf.mxu0 }
 0x2d9   : > { %v2362_v12 = vadd.f32 %v2361_v21, %v2313_v63  ;;  %v2410_v2 = vpop.f32.mrf.mxu3  ;;  %v2267_v38 = vadd.f32 %v2266_v60, %v5664_v59  ;;  %v2315_v11 = vpop.f32.mrf.mxu1 }
 0x2db   : > { %v2411_v13 = vadd.f32 %v2410_v2, %v2362_v12  ;;  %2461 = vmatmul.bf16.gmra.mxu0 %v5396_v20  ;;  %v2316_v14 = vadd.f32 %v2315_v11, %v2267_v38 }
 0x2dc   : > { %2510 = vmatmul.bf16.gmra.mxu1 %v6027_v15 }
 0x2dd   : > { %v3047_v35 = vpack.c.bf16 %v2411_v13, %v5654_v1  ;;  %2559 = vmatmul.bf16.gmra.mxu2 %v6028_v61 }
 0x2de   : > { %2608 = vmatmul.bf16.gmra.mxu3 %v6029_v48 }
 0x2df   : > { %3079 = vst [vmem:[%s5505_s4 + $0xd8] sm:$0xff] %v3047_v35 }
 0x2e0   : > { %v2364_v53 = vpop.f32.mrf.mxu2  ;;  %v2268_v24 = vpop.f32.mrf.mxu0 }
 0x2e1   : > { %v2365_v54 = vadd.f32 %v2364_v53, %v2316_v14  ;;  %v2413_v49 = vpop.f32.mrf.mxu3  ;;  %v2317_v8 = vpop.f32.mrf.mxu1  ;;  %v2269_v30 = vadd.f32 %v2268_v24, %v5664_v59 }
 0x2e3   : > { %v2414_v34 = vadd.f32 %v2413_v49, %v2365_v54  ;;  %v2318_v1 = vadd.f32 %v2317_v8, %v2269_v30 }
 0x2e5   : > { %v3049_v20 = vpack.c.bf16 %v2414_v34, %v5661_v39 }
 0x2e7   : > { %3081 = vst [vmem:[%s5505_s4 + $0xe8] sm:$0xff] %v3049_v20 }
 0x2e8   : > { %v2366_v57 = vpop.f32.mrf.mxu2  ;;  %v2427_v50 = vpop.f32.mrf.mxu0 }
 0x2e9   : > { %v2367_v9 = vadd.f32 %v2366_v57, %v2318_v1  ;;  %v2415_v10 = vpop.f32.mrf.mxu3  ;;  %v2476_v51 = vpop.f32.mrf.mxu1  ;;  %v2428_v25 = vadd.f32 %v2427_v50, %v5746_v28 }
 0x2eb   : > { %v2416_v52 = vadd.f32 %v2415_v10, %v2367_v9  ;;  %v2477_v58 = vadd.f32 %v2476_v51, %v2428_v25 }
 0x2ed   : > { %v3051_v16 = vpack.c.bf16 %v2416_v52, %v5667_v29 }
 0x2ef   : > { %3083 = vst [vmem:[%s5505_s4 + $0xf8] sm:$0xff] %v3051_v16 }
 0x2f0   : > { %v2525_v26 = vpop.f32.mrf.mxu2  ;;  %v2429_v27 = vpop.f32.mrf.mxu0 }
 0x2f1   : > { %v2574_v59 = vpop.f32.mrf.mxu3  ;;  %v2478_v39 = vpop.f32.mrf.mxu1  ;;  %v2430_v32 = vadd.f32 %v2429_v27, %v5746_v28  ;;  %v2526_v47 = vadd.f32 %v2525_v26, %v2477_v58 }
 0x2f3   : > { %v2479_v3 = vadd.f32 %v2478_v39, %v2430_v32  ;;  %v2575_v0 = vadd.f32 %v2574_v59, %v2526_v47 }
 0x2f8   : > { %v2527_v17 = vpop.f32.mrf.mxu2  ;;  %v2432_v40 = vpop.f32.mrf.mxu0 }
 0x2f9   : > { %v2528_v62 = vadd.f32 %v2527_v17, %v2479_v3  ;;  %v2576_v45 = vpop.f32.mrf.mxu3  ;;  %v2481_v37 = vpop.f32.mrf.mxu1  ;;  %v2433_v41 = vadd.f32 %v2432_v40, %v5746_v28 }
 0x2fb   : > { %v2577_v31 = vadd.f32 %v2576_v45, %v2528_v62  ;;  %v2482_v23 = vadd.f32 %v2481_v37, %v2433_v41 }
 0x2fd   : > { %v2614_v29 = vpack.c.bf16 %v2577_v31, %v2575_v0 }
 0x2ff   : > { %2832 = vmatmul.bf16.vlgmr.msrb.gmra.mxu0 %v2614_v29  ;;  %2881 = vmatmul.bf16.vlgmr.msrb.gmra.mxu1 %v2614_v29 }
 0x300   : > { %2930 = vmatmul.bf16.vlgmr.msrb.gmra.mxu2 %v2614_v29  ;;  %2979 = vmatmul.bf16.vlgmr.msrb.gmra.mxu3 %v2614_v29  ;;  %v2530_v42 = vpop.f32.mrf.mxu2  ;;  %v2434_v4 = vpop.f32.mrf.mxu0 }
 0x301   : > { %v2579_v43 = vpop.f32.mrf.mxu3  ;;  %v2483_v44 = vpop.f32.mrf.mxu1  ;;  %v2435_v56 = vadd.f32 %v2434_v4, %v5746_v28  ;;  %v2531_v22 = vadd.f32 %v2530_v42, %v2482_v23 }
 0x303   : > { %v2484_v55 = vadd.f32 %v2483_v44, %v2435_v56  ;;  %v2580_v19 = vadd.f32 %v2579_v43, %v2531_v22 }
 0x308   : > { %v2532_v18 = vpop.f32.mrf.mxu2  ;;  %v2437_v46 = vpop.f32.mrf.mxu0 }
 0x309   : > { %v2533_v7 = vadd.f32 %v2532_v18, %v2484_v55  ;;  %v2581_v36 = vpop.f32.mrf.mxu3  ;;  %v2486_v6 = vpop.f32.mrf.mxu1  ;;  %v2438_v21 = vadd.f32 %v2437_v46, %v5746_v28 }
 0x30b   : > { %v2582_v5 = vadd.f32 %v2581_v36, %v2533_v7  ;;  %v2487_v11 = vadd.f32 %v2486_v6, %v2438_v21 }
 0x30d   : > { %v2615_v63 = vpack.c.bf16 %v2582_v5, %v2580_v19 }
 0x30f   : > { %2837 = vmatmul.bf16.gmra.mxu0 %v2615_v63  ;;  %2886 = vmatmul.bf16.gmra.mxu1 %v2615_v63 }
 0x310   : > { %2935 = vmatmul.bf16.gmra.mxu2 %v2615_v63  ;;  %2984 = vmatmul.bf16.gmra.mxu3 %v2615_v63  ;;  %v2535_v12 = vpop.f32.mrf.mxu2  ;;  %v2439_v60 = vpop.f32.mrf.mxu0 }
 0x311   : > { %v2584_v2 = vpop.f32.mrf.mxu3  ;;  %v2488_v38 = vpop.f32.mrf.mxu1  ;;  %v2440_v13 = vadd.f32 %v2439_v60, %v5746_v28  ;;  %v2536_v35 = vadd.f32 %v2535_v12, %v2487_v11 }
 0x313   : > { %v2489_v14 = vadd.f32 %v2488_v38, %v2440_v13  ;;  %v2585_v49 = vadd.f32 %v2584_v2, %v2536_v35 }
 0x318   : > { %v2537_v15 = vpop.f32.mrf.mxu2  ;;  %v2442_v53 = vpop.f32.mrf.mxu0 }
 0x319   : > { %v2538_v61 = vadd.f32 %v2537_v15, %v2489_v14  ;;  %v2586_v48 = vpop.f32.mrf.mxu3  ;;  %v2491_v54 = vpop.f32.mrf.mxu1  ;;  %v2443_v34 = vadd.f32 %v2442_v53, %v5746_v28 }
 0x31b   : > { %v2587_v24 = vadd.f32 %v2586_v48, %v2538_v61  ;;  %v2492_v9 = vadd.f32 %v2491_v54, %v2443_v34 }
 0x31d   : > { %v2616_v8 = vpack.c.bf16 %v2587_v24, %v2585_v49 }
 0x31f   : > { %2842 = vmatmul.bf16.gmra.mxu0 %v2616_v8  ;;  %2891 = vmatmul.bf16.gmra.mxu1 %v2616_v8 }
 0x320   : > { %2940 = vmatmul.bf16.gmra.mxu2 %v2616_v8  ;;  %2989 = vmatmul.bf16.gmra.mxu3 %v2616_v8  ;;  %v2540_v30 = vpop.f32.mrf.mxu2  ;;  %v2444_v1 = vpop.f32.mrf.mxu0 }
 0x321   : > { %v2589_v20 = vpop.f32.mrf.mxu3  ;;  %v2493_v57 = vpop.f32.mrf.mxu1  ;;  %v2445_v10 = vadd.f32 %v2444_v1, %v5746_v28  ;;  %v2541_v50 = vadd.f32 %v2540_v30, %v2492_v9 }
 0x323   : > { %v2494_v51 = vadd.f32 %v2493_v57, %v2445_v10  ;;  %v2590_v59 = vadd.f32 %v2589_v20, %v2541_v50 }
 0x328   : > { %v2542_v52 = vpop.f32.mrf.mxu2  ;;  %v2447_v25 = vpop.f32.mrf.mxu0 }
 0x329   : > { %v2543_v33 = vadd.f32 %v2542_v52, %v2494_v51  ;;  %v2591_v16 = vpop.f32.mrf.mxu3  ;;  %v2496_v26 = vpop.f32.mrf.mxu1  ;;  %v2448_v58 = vadd.f32 %v2447_v25, %v5746_v28 }
 0x32b   : > { %v2592_v27 = vadd.f32 %v2591_v16, %v2543_v33  ;;  %v2497_v62 = vadd.f32 %v2496_v26, %v2448_v58 }
 0x32d   : > { %v2617_v39 = vpack.c.bf16 %v2592_v27, %v2590_v59 }
 0x32f   : > { %2847 = vmatmul.bf16.gmra.mxu0 %v2617_v39  ;;  %2896 = vmatmul.bf16.gmra.mxu1 %v2617_v39 }
 0x330   : > { %2945 = vmatmul.bf16.gmra.mxu2 %v2617_v39  ;;  %2994 = vmatmul.bf16.gmra.mxu3 %v2617_v39  ;;  %v2545_v32 = vpop.f32.mrf.mxu2  ;;  %v2449_v3 = vpop.f32.mrf.mxu0 }
 0x331   : > { %v2594_v47 = vpop.f32.mrf.mxu3  ;;  %v2498_v17 = vpop.f32.mrf.mxu1  ;;  %v2450_v45 = vadd.f32 %v2449_v3, %v5746_v28  ;;  %v2546_v40 = vadd.f32 %v2545_v32, %v2497_v62  ;;  %v2654_v3 = vld [vmem:[#allocation10] sm:$0xf] }
 0x333   : > { %v2499_v37 = vadd.f32 %v2498_v17, %v2450_v45  ;;  %v2595_v43 = vadd.f32 %v2594_v47, %v2546_v40  ;;  %v5766_v17 = vperm.slane %v2654_v3, 0 }
 0x338   : > { %v2547_v0 = vpop.f32.mrf.mxu2  ;;  %v2452_v41 = vpop.f32.mrf.mxu0 }
 0x339   : > { %v2548_v31 = vadd.f32 %v2547_v0, %v2499_v37  ;;  %v2596_v29 = vpop.f32.mrf.mxu3  ;;  %v2501_v42 = vpop.f32.mrf.mxu1  ;;  %v2453_v23 = vadd.f32 %v2452_v41, %v5746_v28 }
 0x33b   : > { %v2597_v4 = vadd.f32 %v2596_v29, %v2548_v31  ;;  %v2502_v7 = vadd.f32 %v2501_v42, %v2453_v23  ;;  %v5775_v31 = vperm.slane %v2654_v3, 2  ;;  %v5777_v29 = vperm.slane %v2654_v3, 3 }
 0x33d   : > { %v2618_v44 = vpack.c.bf16 %v2597_v4, %v2595_v43 }
 0x33f   : > { %2852 = vmatmul.bf16.gmra.mxu0 %v2618_v44  ;;  %2901 = vmatmul.bf16.gmra.mxu1 %v2618_v44 }
 0x340   : > { %2950 = vmatmul.bf16.gmra.mxu2 %v2618_v44  ;;  %2999 = vmatmul.bf16.gmra.mxu3 %v2618_v44  ;;  %v2550_v56 = vpop.f32.mrf.mxu2  ;;  %v2454_v55 = vpop.f32.mrf.mxu0 }
 0x341   : > { %v2599_v22 = vpop.f32.mrf.mxu3  ;;  %v2503_v18 = vpop.f32.mrf.mxu1  ;;  %v2455_v36 = vadd.f32 %v2454_v55, %v5746_v28  ;;  %v2551_v46 = vadd.f32 %v2550_v56, %v2502_v7 }
 0x343   : > { %v2504_v6 = vadd.f32 %v2503_v18, %v2455_v36  ;;  %v2600_v2 = vadd.f32 %v2599_v22, %v2551_v46 }
 0x348   : > { %v2552_v19 = vpop.f32.mrf.mxu2  ;;  %v2457_v21 = vpop.f32.mrf.mxu0 }
 0x349   : > { %v2553_v5 = vadd.f32 %v2552_v19, %v2504_v6  ;;  %v2601_v63 = vpop.f32.mrf.mxu3  ;;  %v2506_v12 = vpop.f32.mrf.mxu1  ;;  %v2458_v11 = vadd.f32 %v2457_v21, %v5746_v28 }
 0x34b   : > { %v2602_v60 = vadd.f32 %v2601_v63, %v2553_v5  ;;  %v2507_v61 = vadd.f32 %v2506_v12, %v2458_v11 }
 0x34d   : > { %v2619_v38 = vpack.c.bf16 %v2602_v60, %v2600_v2 }
 0x34f   : > { %2857 = vmatmul.bf16.gmra.mxu0 %v2619_v38  ;;  %2906 = vmatmul.bf16.gmra.mxu1 %v2619_v38 }
 0x350   : > { %2955 = vmatmul.bf16.gmra.mxu2 %v2619_v38  ;;  %3004 = vmatmul.bf16.gmra.mxu3 %v2619_v38  ;;  %v2555_v13 = vpop.f32.mrf.mxu2  ;;  %v2459_v14 = vpop.f32.mrf.mxu0 }
 0x351   : > { %v2604_v35 = vpop.f32.mrf.mxu3  ;;  %v2508_v15 = vpop.f32.mrf.mxu1  ;;  %v2460_v48 = vadd.f32 %v2459_v14, %v5746_v28  ;;  %v2556_v53 = vadd.f32 %v2555_v13, %v2507_v61 }
 0x353   : > { %v2509_v54 = vadd.f32 %v2508_v15, %v2460_v48  ;;  %v2605_v30 = vadd.f32 %v2604_v35, %v2556_v53 }
 0x358   : > { %v2557_v49 = vpop.f32.mrf.mxu2  ;;  %v2462_v34 = vpop.f32.mrf.mxu0 }
 0x359   : > { %v2558_v24 = vadd.f32 %v2557_v49, %v2509_v54  ;;  %v2606_v8 = vpop.f32.mrf.mxu3  ;;  %v2511_v1 = vpop.f32.mrf.mxu1  ;;  %v2463_v9 = vadd.f32 %v2462_v34, %v5746_v28 }
 0x35b   : > { %v2607_v20 = vadd.f32 %v2606_v8, %v2558_v24  ;;  %v2512_v52 = vadd.f32 %v2511_v1, %v2463_v9 }
 0x35d   : > { %v2620_v57 = vpack.c.bf16 %v2607_v20, %v2605_v30 }
 0x35f   : > { %2862 = vmatmul.bf16.gmra.mxu0 %v2620_v57  ;;  %2911 = vmatmul.bf16.gmra.mxu1 %v2620_v57 }
 0x360   : > { %2960 = vmatmul.bf16.gmra.mxu2 %v2620_v57  ;;  %3009 = vmatmul.bf16.gmra.mxu3 %v2620_v57  ;;  %v2560_v10 = vpop.f32.mrf.mxu2  ;;  %v2464_v51 = vpop.f32.mrf.mxu0 }
 0x361   : > { %v2609_v50 = vpop.f32.mrf.mxu3  ;;  %v2465_v33 = vadd.f32 %v2464_v51, %v5746_v28  ;;  %v2513_v16 = vpop.f32.mrf.mxu1  ;;  %v2561_v25 = vadd.f32 %v2560_v10, %v2512_v52  ;;  %v5768_v28 = vperm.slane %v2654_v3, 1 }
 0x363   : > { %v2514_v26 = vadd.f32 %v2513_v16, %v2465_v33  ;;  %v2610_v58 = vadd.f32 %v2609_v50, %v2561_v25 }
 0x368   : > { %v2562_v59 = vpop.f32.mrf.mxu2 }
 0x369   : > { %v2563_v27 = vadd.f32 %v2562_v59, %v2514_v26  ;;  %v2611_v39 = vpop.f32.mrf.mxu3 }
 0x36b   : > { %v2612_v32 = vadd.f32 %v2611_v39, %v2563_v27 }
 0x36d   : > { %v2621_v47 = vpack.c.bf16 %v2612_v32, %v2610_v58 }
 0x36f   : > { %2867 = vmatmul.bf16.gmra.mxu0 %v2621_v47  ;;  %2916 = vmatmul.bf16.gmra.mxu1 %v2621_v47 }
 0x370   : > { %2965 = vmatmul.bf16.gmra.mxu2 %v2621_v47  ;;  %3014 = vmatmul.bf16.gmra.mxu3 %v2621_v47 }
 0x37c   : > { %v2833_v62 = vpop.f32.mrf.mxu0  ;;  %v2882_v45 = vpop.f32.mrf.mxu1 }
 0x37d   : > { %v2834_v40 = vadd.f32 %v2833_v62, %v5766_v17  ;;  %v2883_v37 = vadd.f32 %v2882_v45, %v5768_v28 }
 0x37f   : > { %v3084_v0 = vpack.c.bf16 %v2883_v37, %v2834_v40 }
 0x381   : > { %3100 = vst [vmem:[%s5779_s16] sm:$0xff] %v3084_v0 }
 0x383   : > { %v2931_v41 = vpop.f32.mrf.mxu2  ;;  %v2980_v42 = vpop.f32.mrf.mxu3 }
 0x384   : > { %v2932_v43 = vadd.f32 %v2931_v41, %v5775_v31  ;;  %v2981_v4 = vadd.f32 %v2980_v42, %v5777_v29  ;;  %v2835_v44 = vpop.f32.mrf.mxu0  ;;  %v2884_v23 = vpop.f32.mrf.mxu1 }
 0x385   : > { %v2836_v56 = vadd.f32 %v2835_v44, %v5766_v17  ;;  %v2885_v22 = vadd.f32 %v2884_v23, %v5768_v28 }
 0x386   : > { %v3116_v55 = vpack.c.bf16 %v2981_v4, %v2932_v43 }
 0x387   : > { %v3085_v18 = vpack.c.bf16 %v2885_v22, %v2836_v56 }
 0x388   : > { %3132 = vst [vmem:[%s5790_s14] sm:$0xff] %v3116_v55 }
 0x389   : > { %3101 = vst [vmem:[%s5779_s16 + $0x8] sm:$0xff] %v3085_v18 }
 0x38a   : > { %4893 = shalt.err (!%p4890_p13)
}
 0x38b   : > { %s5042_s1 = smov 256   ;;  %s5043_s24 = smov 16   ;;  %v2933_v7 = vpop.f32.mrf.mxu2  ;;  %v2982_v36 = vpop.f32.mrf.mxu3 }
 0x38c   : > { %4595 = dma.vmem_to_hbm [thread:$0]  (%p5200_p5), %s3175_s17, 4096, %s3177_s3, %s3149_s22, %s5042_s1, %s5042_s1, %s5043_s24   ;;  %v2934_v46 = vadd.f32 %v2933_v7, %v5775_v31  ;;  %v2983_v6 = vadd.f32 %v2982_v36, %v5777_v29  ;;  %v2838_v19 = vpop.f32.mrf.mxu0  ;;  %v2887_v5 = vpop.f32.mrf.mxu1 }
 0x38d   : > { %v2839_v63 = vadd.f32 %v2838_v19, %v5766_v17  ;;  %v2888_v21 = vadd.f32 %v2887_v5, %v5768_v28  ;;  %s4575_s15 = sshll.u32 %s5016_s27, 5  ;;  %s4341_s18 = sshll.u32 %s5020_s28, 6 }
 0x38e   : > { %v3117_v12 = vpack.c.bf16 %v2983_v6, %v2934_v46  ;;  %s5879_s19 = sadd.s32 %s4575_s15, %s4341_s18  ;;  %s6031_s17 = sld [smem:[#allocation35_spill]] }
 0x38f   : > { %v3086_v2 = vpack.c.bf16 %v2888_v21, %v2839_v63  ;;  %s4342_s27 = sshll.u32 %s5879_s19, 2  ;;  %s3153_s22 = sand.u32 1, %s5127_s9  }
 0x390   : > { %3133 = vst [vmem:[%s5790_s14 + $0x8] sm:$0xff] %v3117_v12  ;;  %s3194_s2 = sshll.u32 %s5779_s16, 4  ;;  %s6032_s4 = sld [smem:[#allocation36_spill]]  ;;  %s3195_s2 = int_to_ptr.vmem [resolvable:$true] %s3194_s2 }
 0x391   : > { %3102 = vst [vmem:[%s5779_s16 + $0x10] sm:$0xff] %v3086_v2  ;;  %s5902_s11 = scalar_lea.sflag [#allocation13], %s3153_s22 }
 0x393   : > { %v2936_v60 = vpop.f32.mrf.mxu2  ;;  %v2985_v38 = vpop.f32.mrf.mxu3 }
 0x394   : > { %v2937_v11 = vadd.f32 %v2936_v60, %v5775_v31  ;;  %v2986_v13 = vadd.f32 %v2985_v38, %v5777_v29  ;;  %v2840_v35 = vpop.f32.mrf.mxu0  ;;  %v2889_v14 = vpop.f32.mrf.mxu1  ;;  %s3193_s3 = scalar_lea.hbm %s6031_s17, %s4342_s27  ;;  %s4914_s18 = scalar_lea.hbm %s6031_s17, 512 }
 0x395   : > { %v2841_v15 = vadd.f32 %v2840_v35, %v5766_v17  ;;  %v2890_v61 = vadd.f32 %v2889_v14, %v5768_v28  ;;  %s3196_s7 = sshll.u32 %s3193_s3, 4  ;;  %s3197_s7 = int_to_ptr.hbm [resolvable:$true] %s3196_s7 }
 0x396   : > { %v3118_v48 = vpack.c.bf16 %v2986_v13, %v2937_v11  ;;  %s3213_s10 = scalar_lea.hbm %s6032_s4, %s4342_s27  ;;  %s4908_s12 = sshra.s32 %s3197_s7, 4  ;;  %s4909_s12 = int_to_ptr.hbm [resolvable:$true] %s4908_s12 }
 0x397   : > { %v3087_v53 = vpack.c.bf16 %v2890_v61, %v2841_v15  ;;  %s4910_s1 = scalar_lea.hbm %s4909_s12, 128  ;;  %p4915_p9 = scmp.lt.s32.totalorder %s4909_s12, %s6031_s17 }
 0x398   : > { %3134 = vst [vmem:[%s5790_s14 + $0x10] sm:$0xff] %v3118_v48  ;;  %p4911_p0 = scmp.ne.s32.totalorder %s4909_s12, %s4910_s1  ;;  %p4916_p2 = scmp.lt.s32.totalorder %s4914_s18, %s4910_s1 }
 0x399   : > { %3103 = vst [vmem:[%s5779_s16 + $0x18] sm:$0xff] %v3087_v53 }
 0x39a   : > { %p4912_p3 = pnand %p4911_p0, %p5200_p5  ;;  %p4917_p1 = por %p4916_p2, %p4915_p9 }
 0x39b   : > { %v2938_v54 = vpop.f32.mrf.mxu2  ;;  %v2987_v49 = vpop.f32.mrf.mxu3 }
 0x39c   : > { %v2939_v24 = vadd.f32 %v2938_v54, %v5775_v31  ;;  %v2988_v8 = vadd.f32 %v2987_v49, %v5777_v29  ;;  %v2843_v34 = vpop.f32.mrf.mxu0  ;;  %v2892_v30 = vpop.f32.mrf.mxu1  ;;  %p4913_p7 = pneg %p4912_p3 }
 0x39d   : > { %v2844_v20 = vadd.f32 %v2843_v34, %v5766_v17  ;;  %v2893_v1 = vadd.f32 %v2892_v30, %v5768_v28 }
 0x39e   : > { %v3119_v57 = vpack.c.bf16 %v2988_v8, %v2939_v24  ;;  %p4918_p4 = pnand %p4917_p1, %p4913_p7 }
 0x39f   : > { %v3088_v9 = vpack.c.bf16 %v2893_v1, %v2844_v20 }
 0x3a0   : > { %3135 = vst [vmem:[%s5790_s14 + $0x18] sm:$0xff] %v3119_v57 }
 0x3a1   : > { %3104 = vst [vmem:[%s5779_s16 + $0x20] sm:$0xff] %v3088_v9 }
 0x3a3   : > { %v2941_v10 = vpop.f32.mrf.mxu2  ;;  %v2990_v50 = vpop.f32.mrf.mxu3 }
 0x3a4   : > { %v2942_v51 = vadd.f32 %v2941_v10, %v5775_v31  ;;  %v2991_v52 = vadd.f32 %v2990_v50, %v5777_v29  ;;  %v2845_v33 = vpop.f32.mrf.mxu0  ;;  %v2894_v16 = vpop.f32.mrf.mxu1 }
 0x3a5   : > { %v2846_v25 = vadd.f32 %v2845_v33, %v5766_v17  ;;  %v2895_v26 = vadd.f32 %v2894_v16, %v5768_v28 }
 0x3a6   : > { %v3120_v59 = vpack.c.bf16 %v2991_v52, %v2942_v51 }
 0x3a7   : > { %v3089_v27 = vpack.c.bf16 %v2895_v26, %v2846_v25 }
 0x3a8   : > { %3136 = vst [vmem:[%s5790_s14 + $0x20] sm:$0xff] %v3120_v59 }
 0x3a9   : > { %3105 = vst [vmem:[%s5779_s16 + $0x28] sm:$0xff] %v3089_v27 }
 0x3ab   : > { %v2943_v39 = vpop.f32.mrf.mxu2  ;;  %v2992_v58 = vpop.f32.mrf.mxu3 }
 0x3ac   : > { %v2944_v32 = vadd.f32 %v2943_v39, %v5775_v31  ;;  %v2993_v47 = vadd.f32 %v2992_v58, %v5777_v29  ;;  %v2848_v3 = vpop.f32.mrf.mxu0  ;;  %v2897_v62 = vpop.f32.mrf.mxu1 }
 0x3ad   : > { %v2849_v45 = vadd.f32 %v2848_v3, %v5766_v17  ;;  %v2898_v40 = vadd.f32 %v2897_v62, %v5768_v28 }
 0x3ae   : > { %v3121_v37 = vpack.c.bf16 %v2993_v47, %v2944_v32 }
 0x3af   : > { %v3090_v0 = vpack.c.bf16 %v2898_v40, %v2849_v45 }
 0x3b0   : > { %3137 = vst [vmem:[%s5790_s14 + $0x28] sm:$0xff] %v3121_v37 }
 0x3b1   : > { %3106 = vst [vmem:[%s5779_s16 + $0x30] sm:$0xff] %v3090_v0 }
 0x3b3   : > { %v2946_v41 = vpop.f32.mrf.mxu2  ;;  %v2995_v42 = vpop.f32.mrf.mxu3 }
 0x3b4   : > { %v2947_v43 = vadd.f32 %v2946_v41, %v5775_v31  ;;  %v2996_v4 = vadd.f32 %v2995_v42, %v5777_v29  ;;  %v2850_v44 = vpop.f32.mrf.mxu0  ;;  %v2899_v23 = vpop.f32.mrf.mxu1 }
 0x3b5   : > { %v2851_v56 = vadd.f32 %v2850_v44, %v5766_v17  ;;  %v2900_v22 = vadd.f32 %v2899_v23, %v5768_v28 }
 0x3b6   : > { %v3122_v55 = vpack.c.bf16 %v2996_v4, %v2947_v43 }
 0x3b7   : > { %v3091_v18 = vpack.c.bf16 %v2900_v22, %v2851_v56 }
 0x3b8   : > { %3138 = vst [vmem:[%s5790_s14 + $0x30] sm:$0xff] %v3122_v55 }
 0x3b9   : > { %3107 = vst [vmem:[%s5779_s16 + $0x38] sm:$0xff] %v3091_v18 }
 0x3bb   : > { %v2948_v7 = vpop.f32.mrf.mxu2  ;;  %v2997_v36 = vpop.f32.mrf.mxu3 }
 0x3bc   : > { %v2949_v46 = vadd.f32 %v2948_v7, %v5775_v31  ;;  %v2998_v6 = vadd.f32 %v2997_v36, %v5777_v29  ;;  %v2853_v19 = vpop.f32.mrf.mxu0  ;;  %v2902_v5 = vpop.f32.mrf.mxu1 }
 0x3bd   : > { %v2854_v63 = vadd.f32 %v2853_v19, %v5766_v17  ;;  %v2903_v21 = vadd.f32 %v2902_v5, %v5768_v28 }
 0x3be   : > { %v3123_v12 = vpack.c.bf16 %v2998_v6, %v2949_v46 }
 0x3bf   : > { %v3092_v2 = vpack.c.bf16 %v2903_v21, %v2854_v63 }
 0x3c0   : > { %3139 = vst [vmem:[%s5790_s14 + $0x38] sm:$0xff] %v3123_v12 }
 0x3c1   : > { %3108 = vst [vmem:[%s5779_s16 + $0x40] sm:$0xff] %v3092_v2 }
 0x3c3   : > { %v2951_v60 = vpop.f32.mrf.mxu2  ;;  %v3000_v38 = vpop.f32.mrf.mxu3 }
 0x3c4   : > { %v2952_v11 = vadd.f32 %v2951_v60, %v5775_v31  ;;  %v3001_v13 = vadd.f32 %v3000_v38, %v5777_v29  ;;  %v2855_v35 = vpop.f32.mrf.mxu0  ;;  %v2904_v14 = vpop.f32.mrf.mxu1 }
 0x3c5   : > { %v2856_v15 = vadd.f32 %v2855_v35, %v5766_v17  ;;  %v2905_v61 = vadd.f32 %v2904_v14, %v5768_v28 }
 0x3c6   : > { %v3124_v48 = vpack.c.bf16 %v3001_v13, %v2952_v11 }
 0x3c7   : > { %v3093_v53 = vpack.c.bf16 %v2905_v61, %v2856_v15 }
 0x3c8   : > { %3140 = vst [vmem:[%s5790_s14 + $0x40] sm:$0xff] %v3124_v48 }
 0x3c9   : > { %3109 = vst [vmem:[%s5779_s16 + $0x48] sm:$0xff] %v3093_v53 }
 0x3cb   : > { %v2953_v54 = vpop.f32.mrf.mxu2  ;;  %v3002_v49 = vpop.f32.mrf.mxu3 }
 0x3cc   : > { %v2954_v24 = vadd.f32 %v2953_v54, %v5775_v31  ;;  %v3003_v8 = vadd.f32 %v3002_v49, %v5777_v29  ;;  %v2858_v34 = vpop.f32.mrf.mxu0  ;;  %v2907_v30 = vpop.f32.mrf.mxu1 }
 0x3cd   : > { %v2859_v20 = vadd.f32 %v2858_v34, %v5766_v17  ;;  %v2908_v1 = vadd.f32 %v2907_v30, %v5768_v28 }
 0x3ce   : > { %v3125_v57 = vpack.c.bf16 %v3003_v8, %v2954_v24 }
 0x3cf   : > { %v3094_v9 = vpack.c.bf16 %v2908_v1, %v2859_v20 }
 0x3d0   : > { %3141 = vst [vmem:[%s5790_s14 + $0x48] sm:$0xff] %v3125_v57 }
 0x3d1   : > { %3110 = vst [vmem:[%s5779_s16 + $0x50] sm:$0xff] %v3094_v9 }
 0x3d3   : > { %v2956_v10 = vpop.f32.mrf.mxu2  ;;  %v3005_v50 = vpop.f32.mrf.mxu3 }
 0x3d4   : > { %v2957_v51 = vadd.f32 %v2956_v10, %v5775_v31  ;;  %v3006_v52 = vadd.f32 %v3005_v50, %v5777_v29  ;;  %v2860_v33 = vpop.f32.mrf.mxu0  ;;  %v2909_v16 = vpop.f32.mrf.mxu1 }
 0x3d5   : > { %v2861_v25 = vadd.f32 %v2860_v33, %v5766_v17  ;;  %v2910_v26 = vadd.f32 %v2909_v16, %v5768_v28 }
 0x3d6   : > { %v3126_v59 = vpack.c.bf16 %v3006_v52, %v2957_v51 }
 0x3d7   : > { %v3095_v27 = vpack.c.bf16 %v2910_v26, %v2861_v25 }
 0x3d8   : > { %3142 = vst [vmem:[%s5790_s14 + $0x50] sm:$0xff] %v3126_v59 }
 0x3d9   : > { %3111 = vst [vmem:[%s5779_s16 + $0x58] sm:$0xff] %v3095_v27 }
 0x3db   : > { %v2958_v39 = vpop.f32.mrf.mxu2  ;;  %v3007_v58 = vpop.f32.mrf.mxu3 }
 0x3dc   : > { %v2959_v32 = vadd.f32 %v2958_v39, %v5775_v31  ;;  %v3008_v47 = vadd.f32 %v3007_v58, %v5777_v29  ;;  %v2863_v3 = vpop.f32.mrf.mxu0  ;;  %v2912_v62 = vpop.f32.mrf.mxu1 }
 0x3dd   : > { %v2864_v45 = vadd.f32 %v2863_v3, %v5766_v17  ;;  %v2913_v40 = vadd.f32 %v2912_v62, %v5768_v28 }
 0x3de   : > { %v3127_v37 = vpack.c.bf16 %v3008_v47, %v2959_v32 }
 0x3df   : > { %v3096_v0 = vpack.c.bf16 %v2913_v40, %v2864_v45 }
 0x3e0   : > { %3143 = vst [vmem:[%s5790_s14 + $0x58] sm:$0xff] %v3127_v37 }
 0x3e1   : > { %3112 = vst [vmem:[%s5779_s16 + $0x60] sm:$0xff] %v3096_v0 }
 0x3e3   : > { %v2961_v41 = vpop.f32.mrf.mxu2  ;;  %v3010_v42 = vpop.f32.mrf.mxu3 }
 0x3e4   : > { %v2962_v43 = vadd.f32 %v2961_v41, %v5775_v31  ;;  %v3011_v4 = vadd.f32 %v3010_v42, %v5777_v29  ;;  %v2865_v44 = vpop.f32.mrf.mxu0  ;;  %v2914_v23 = vpop.f32.mrf.mxu1 }
 0x3e5   : > { %v2866_v56 = vadd.f32 %v2865_v44, %v5766_v17  ;;  %v2915_v22 = vadd.f32 %v2914_v23, %v5768_v28 }
 0x3e6   : > { %v3128_v55 = vpack.c.bf16 %v3011_v4, %v2962_v43 }
 0x3e7   : > { %v3097_v18 = vpack.c.bf16 %v2915_v22, %v2866_v56 }
 0x3e8   : > { %3144 = vst [vmem:[%s5790_s14 + $0x60] sm:$0xff] %v3128_v55 }
 0x3e9   : > { %3113 = vst [vmem:[%s5779_s16 + $0x68] sm:$0xff] %v3097_v18 }
 0x3eb   : > { %v2963_v7 = vpop.f32.mrf.mxu2  ;;  %v3012_v36 = vpop.f32.mrf.mxu3 }
 0x3ec   : > { %v2964_v46 = vadd.f32 %v2963_v7, %v5775_v31  ;;  %v3013_v6 = vadd.f32 %v3012_v36, %v5777_v29  ;;  %v2868_v19 = vpop.f32.mrf.mxu0  ;;  %v2917_v5 = vpop.f32.mrf.mxu1 }
 0x3ed   : > { %v2869_v63 = vadd.f32 %v2868_v19, %v5766_v17  ;;  %v2918_v21 = vadd.f32 %v2917_v5, %v5768_v28 }
 0x3ee   : > { %v3129_v12 = vpack.c.bf16 %v3013_v6, %v2964_v46 }
 0x3ef   : > { %v3098_v2 = vpack.c.bf16 %v2918_v21, %v2869_v63 }
 0x3f0   : > { %3145 = vst [vmem:[%s5790_s14 + $0x68] sm:$0xff] %v3129_v12 }
 0x3f1   : > { %3114 = vst [vmem:[%s5779_s16 + $0x70] sm:$0xff] %v3098_v2 }
 0x3f3   : > { %v2966_v60 = vpop.f32.mrf.mxu2  ;;  %v3015_v38 = vpop.f32.mrf.mxu3 }
 0x3f4   : > { %v2967_v11 = vadd.f32 %v2966_v60, %v5775_v31  ;;  %v3016_v13 = vadd.f32 %v3015_v38, %v5777_v29  ;;  %v2870_v35 = vpop.f32.mrf.mxu0  ;;  %v2919_v14 = vpop.f32.mrf.mxu1 }
 0x3f5   : > { %v2871_v15 = vadd.f32 %v2870_v35, %v5766_v17  ;;  %v2920_v61 = vadd.f32 %v2919_v14, %v5768_v28 }
 0x3f6   : > { %v3130_v48 = vpack.c.bf16 %v3016_v13, %v2967_v11 }
 0x3f7   : > { %v3099_v53 = vpack.c.bf16 %v2920_v61, %v2871_v15 }
 0x3f8   : > { %3146 = vst [vmem:[%s5790_s14 + $0x70] sm:$0xff] %v3130_v48 }
 0x3f9   : > { %3115 = vst [vmem:[%s5779_s16 + $0x78] sm:$0xff] %v3099_v53 }
 0x3fa   : > { %4921 = shalt.err (!%p4918_p4)
}
 0x3fb   : > { %s5044_s16 = smov 128   ;;  %s5045_s27 = smov 8   ;;  %v2968_v17 = vpop.f32.mrf.mxu2  ;;  %v3017_v28 = vpop.f32.mrf.mxu3 }
 0x3fc   : > { %4596 = dma.vmem_to_hbm [thread:$0]  (%p5200_p5), %s3195_s2, 2048, %s3197_s7, %s5902_s11, %s5044_s16, %s5044_s16, %s5045_s27   ;;  %v2969_v54 = vadd.f32 %v2968_v17, %v5775_v31  ;;  %v3018_v49 = vadd.f32 %v3017_v28, %v5777_v29 }
 0x3fd   : > { %s3216_s23 = sshll.u32 %s3213_s10, 4  ;;  %s3214_s3 = sshll.u32 %s5790_s14, 4  ;;  %s3217_s23 = int_to_ptr.hbm [resolvable:$true] %s3216_s23  ;;  %s3215_s3 = int_to_ptr.vmem [resolvable:$true] %s3214_s3 }
 0x3fe   : > { %v3131_v24 = vpack.c.bf16 %v3018_v49, %v2969_v54  ;;  %s4936_s22 = sshra.s32 %s3217_s23, 4  ;;  %s4942_s6 = scalar_lea.hbm %s6032_s4, 512  ;;  %s4937_s22 = int_to_ptr.hbm [resolvable:$true] %s4936_s22 }
 0x3ff   : > { %s4938_s9 = scalar_lea.hbm %s4937_s22, 128  ;;  %p4943_p12 = scmp.lt.s32.totalorder %s4937_s22, %s6032_s4 }
 0x400   : > { %3147 = vst [vmem:[%s5790_s14 + $0x78] sm:$0xff] %v3131_v24  ;;  %p4939_p8 = scmp.ne.s32.totalorder %s4937_s22, %s4938_s9  ;;  %p4944_p13 = scmp.lt.s32.totalorder %s4942_s6, %s4938_s9 }
 0x402   : > { %p4940_p10 = pnand %p4939_p8, %p5200_p5  ;;  %p4945_p0 = por %p4944_p13, %p4943_p12 }
 0x404   : > { %p4941_p11 = pneg %p4940_p10 }
 0x406   : > { %p4946_p3 = pnand %p4945_p0, %p4941_p11 }
 0x408   : > { %4949 = shalt.err (!%p4946_p3)
}
 0x409   : > { %4597 = dma.vmem_to_hbm [thread:$0]  (%p5200_p5), %s3215_s3, 2048, %s3217_s23, %s5902_s11, %s5044_s16, %s5044_s16, %s5045_s27  }
 0x40a PF: > { %s6033_s14 = sld [smem:[#allocation20_spill]]  ;;  %p4637_p7 = scmp.ge.s32.totalorder %s5032_s8, 2 }
 0x40c   : > { %p4619_p9 = pnand %p4637_p7, %p5143_p6 }
 0x40e   : > { %p4620_p2 = pneg %p4619_p9 }
 0x410   : > { %s3231_s24 = sand.u32 1, %s6033_s14  }
 0x411   : > { %s3232_s15 = scalar_lea.sflag [#allocation4], %s3231_s24 }
 0x412   : > { %4995 = dma.done.wait (%p4620_p2), %s3232_s15, 4096  }
 0x413   : > { %4997 = vsyncadd (%p4620_p2), %s3232_s15, 4294963200  ;;  %s6035_s18 = sadd.s32 4294967294, %s5032_s8  }
 0x414   : > { %s3241_s19 = sand.u32 1, %s6035_s18  }
 0x415   : > { %s3242_s28 = scalar_lea.sflag [#allocation13], %s3241_s19 }
 0x416   : > { %4999 = dma.done.wait (%p4620_p2), %s3242_s28, 4096  }
 0x417   : > { %5001 = vsyncadd (%p4620_p2), %s3242_s28, 4294963200  ;;  %s29_s8 = sadd.s32 1, %s5032_s8   ;;  %s6036_s13 = sld [smem:[#allocation22_spill]] }
 0x418   : > { %p26_p5 = scmp.ge.s32.totalorder %s29_s8, 6   ;;  %s6037_s24 = smov %s5008_s25 }
 0x419   : > { %s6038_s25 = smov %s5012_s26  ;;  %s6039_s26 = smov %s5213_s20 }
 0x41a   : > { %s6040_s27 = smov %s5024_s29  ;;  %s6041_s28 = smov %s5028_s30 }
 0x41b   : > { %s6043_s30 = smov %s6049_s21  ;;  %28 = sbr.rel (!%p26_p5) target bundleno = 18 (0x12), region = 133 }
 0x41d   : > { %s6042_s29 = smov %s6036_s13 }
 0x420   :  { %3258 = vsyncpa [#allocation3], 1 }
 0x421   :  { %3260 = vsyncpa [#allocation3 + $0x1], 1 }
 0x422   :  { %3261 = vsyncpa [#allocation6], 1 }
 0x423   :  { %3262 = vsyncpa [#allocation9], 1 }
 0x424   :  { %3263 = vsyncpa [#allocation4], 1 }
 0x425   :  { %3265 = vsyncpa [#allocation4 + $0x1], 1 }
 0x426   :  { %3266 = vsyncpa [#allocation13], 1 }
 0x427   :  { %3268 = vsyncpa [#allocation13 + $0x1], 1 }

</bundles_post_ra>
